<compile_context>
chip_gen: v5e
topology: v5e:2x2
jax: 0.10.0
libtpu: 0.0.40
codegen_flags: <defaults>
</compile_context>

<pallas_src>
import math

import jax
import jax.numpy as jnp
import numpy as np
from jax import lax
from jax.experimental import pallas as pl
from jax.experimental.pallas import tpu as pltpu


def _round_up(x, m):
    return ((x + m - 1) // m) * m


def _make_kernel(E2, E1_pad, E2_pad, Cp, n_src_p, n_mid_p, n_dst_p):
    """Builds the kernel closure for static (padded) sizes."""
    f32 = jnp.float32
    # dot_general dimension numbers:
    #   dn_ta: contract FIRST axes  ->  A^T @ B   (gather rows, transposed result)
    #   dn_tb: contract LAST  axes  ->  A @ B^T   (scatter-add over the edge axis)
    dn_ta = (((0,), (0,)), ((), ()))
    dn_tb = (((1,), (1,)), ((), ()))

    def kernel(x_src_ref, x_mid_ref, x_dst_ref,
               src1_ref, mid1_ref, mid2_ref, dst2_ref,
               w_ref, b_ref, out_ref):
        # ---- node-level linear layers (one MXU matmul each, fused biases) ----
        # z_mid = x_mid @ W1^T + (b1 + b2)   (per-edge fused-layer bias added once)
        zmid = (jnp.dot(x_mid_ref[...], w_ref[:, 0:Cp],
                        preferred_element_type=f32) + b_ref[:, 0:Cp])
        # y_src = x_src @ W2^T               (its bias folded into b_fuse above)
        ysrc = jnp.dot(x_src_ref[...], w_ref[:, Cp:2 * Cp],
                       preferred_element_type=f32)
        # Q table = x_dst @ (Wq / sqrt(C))^T + bq / sqrt(C)  (scale folded in wrapper)
        q = (jnp.dot(x_dst_ref[...], w_ref[:, 2 * Cp:3 * Cp],
                     preferred_element_type=f32) + b_ref[:, 2 * Cp:3 * Cp])

        # ---- hop 1: vectorized gather + scatter-add via one-hot MXU matmuls ----
        # Scatter one-hots [N, E1_pad]; padded edge slots carry index -1, which
        # never matches the iota, so they form all-zero columns (contribute 0).
        src1 = src1_ref[...]                                    # [1, E1_pad] int32
        mid1 = mid1_ref[...]                                    # [1, E1_pad] int32
        s_src1 = (lax.broadcasted_iota(jnp.int32, (n_src_p, E1_pad), 0)
                  == src1).astype(f32)                          # [n_src_p, E1_pad]
        s_mid1 = (lax.broadcasted_iota(jnp.int32, (n_mid_p, E1_pad), 0)
                  == mid1).astype(f32)                          # [n_mid_p, E1_pad]

        # contrib_t[c, e] = z_mid[mid1[e], c] + y_src[src1[e], c]
        contrib_t = (lax.dot_general(zmid, s_mid1, dn_ta, preferred_element_type=f32)
                     + lax.dot_general(ysrc, s_src1, dn_ta, preferred_element_type=f32))
        # h_mid_agg[m, c] = sum_{e: mid1[e]==m} contrib_t[c, e]   (index_add_)
        agg = lax.dot_general(s_mid1, contrib_t, dn_tb, preferred_element_type=f32)

        # ---- hop 2: fused K|V projection + attention (global softmax) --------
        kv = (jnp.dot(agg, w_ref[:, 3 * Cp:5 * Cp],
                      preferred_element_type=f32) + b_ref[:, 3 * Cp:5 * Cp])

        mid2 = mid2_ref[...]                                    # [1, E2_pad]
        dst2 = dst2_ref[...]                                    # [1, E2_pad]
        s_mid2 = (lax.broadcasted_iota(jnp.int32, (n_mid_p, E2_pad), 0)
                  == mid2).astype(f32)                          # [n_mid_p, E2_pad]
        s_dst2 = (lax.broadcasted_iota(jnp.int32, (n_dst_p, E2_pad), 0)
                  == dst2).astype(f32)                          # [n_dst_p, E2_pad]

        # Gathered (transposed) K / V / Q tables, [Cp, E2_pad] — edges on lanes.
        k_t = lax.dot_general(kv[:, 0:Cp], s_mid2, dn_ta, preferred_element_type=f32)
        v_t = lax.dot_general(kv[:, Cp:2 * Cp], s_mid2, dn_ta, preferred_element_type=f32)
        q_t = lax.dot_general(q, s_dst2, dn_ta, preferred_element_type=f32)

        # Lane-major scores [1, E2_pad]; padded edge slots masked to -1e30 so
        # exp() underflows to exactly 0 — softmax stays global over all E2 edges.
        score = jnp.sum(k_t * q_t, axis=0, keepdims=True)
        edge_iota = lax.broadcasted_iota(jnp.int32, (1, E2_pad), 1)
        score = jnp.where(edge_iota < E2, score, -1e30)

        m_max = jnp.max(score, axis=1, keepdims=True)
        ex = jnp.exp(score - m_max)
        denom = jnp.sum(ex, axis=1, keepdims=True)
        alpha = ex * pl.reciprocal(denom)                       # [1, E2_pad]

        # out[d, c] = sum_{e: dst2[e]==d} alpha[e] * v[mid2[e], c]
        # (alpha scales the gathered V columns; scatter-add is one MXU matmul)
        out_ref[...] = lax.dot_general(s_dst2, alpha * v_t, dn_tb,
                                       preferred_element_type=f32)

    return kernel


def atomic_route_conv(x_dict, edge_index_1, edge_index_2, params, channels):
    """Composite route forward: returns {"dst": out} with out [N_dst, channels]."""
    x_src, x_mid, x_dst = x_dict["src"], x_dict["mid"], x_dict["dst"]
    E1 = int(edge_index_1.shape[1])
    E2 = int(edge_index_2.shape[1])
    if E1 == 0 or E2 == 0:
        return {}  # mirror the PyTorch module's early return

    C = channels
    Cp = _round_up(max(C, 1), 128)            # lane-dense channel width
    n_src, n_mid, n_dst = int(x_src.shape[0]), int(x_mid.shape[0]), int(x_dst.shape[0])
    n_src_p = _round_up(n_src, 8)
    n_mid_p = _round_up(n_mid, 8)
    n_dst_p = _round_up(n_dst, 8)
    E1_pad = _round_up(E1, 128)               # edges padded to full lanes
    E2_pad = _round_up(E2, 128)

    def pad_feat(x, n_p):
        out = jnp.zeros((n_p, Cp), jnp.float32)
        return out.at[:x.shape[0], :C].set(x.astype(jnp.float32))

    x_src_p = pad_feat(x_src, n_src_p)
    x_mid_p = pad_feat(x_mid, n_mid_p)
    x_dst_p = pad_feat(x_dst, n_dst_p)

    (W1, b1), (W2, b2), (Wq, bq), (Wk, bk), (Wv, bv) = params
    scale = 1.0 / math.sqrt(C)

    def pad_wt(W):  # nn.Linear computes x @ W^T + b: store W^T, zero-padded
        out = jnp.zeros((Cp, Cp), jnp.float32)
        return out.at[:C, :C].set(W.T.astype(jnp.float32))

    def pad_b(b):
        out = jnp.zeros((1, Cp), jnp.float32)
        return out.at[0, :C].set(b.astype(jnp.float32))

    # Packed weights [Cp, 5Cp]: W1^T | W2^T | (Wq^T * scale) | Wk^T | Wv^T
    w_all = jnp.concatenate(
        [pad_wt(W1), pad_wt(W2), pad_wt(Wq) * scale, pad_wt(Wk), pad_wt(Wv)], axis=1)
    # Packed biases [1, 5Cp]: (b1+b2) | 0 | bq*scale | bk | bv
    b_all = jnp.concatenate(
        [pad_b(b1 + b2), jnp.zeros((1, Cp), jnp.float32),
         pad_b(bq) * scale, pad_b(bk), pad_b(bv)], axis=1)

    # Edge indices as lane-major [1, E_pad] int32 VMEM rows; padding slots = -1
    # (never matches the in-kernel iota -> all-zero one-hot column).
    def pad_idx(idx, e_pad):
        out = jnp.full((1, e_pad), -1, jnp.int32)
        return out.at[0, :idx.shape[0]].set(idx.astype(jnp.int32))

    src1_row = pad_idx(edge_index_1[0], E1_pad)
    mid1_row = pad_idx(edge_index_1[1], E1_pad)
    mid2_row = pad_idx(edge_index_2[0], E2_pad)
    dst2_row = pad_idx(edge_index_2[1], E2_pad)

    kernel = _make_kernel(E2, E1_pad, E2_pad, Cp, n_src_p, n_mid_p, n_dst_p)

    vmem_spec = pl.BlockSpec(memory_space=pltpu.MemorySpace.VMEM)

    # Accurate VMEM footprint (inputs + output + in-kernel temporaries).
    est_bytes = 4 * (
        (n_src_p + n_mid_p + n_dst_p) * Cp            # padded features
        + Cp * 5 * Cp + 5 * Cp                        # packed weights + biases
        + 2 * (E1_pad + E2_pad)                       # int32 index rows
        + n_dst_p * Cp                                # output
        + (n_src_p + 4 * n_mid_p + n_dst_p) * Cp      # zmid/ysrc/q/agg/kv temps
        + (n_src_p + n_mid_p) * E1_pad                # hop-1 one-hots
        + (n_mid_p + n_dst_p) * E2_pad                # hop-2 one-hots
        + Cp * E1_pad + 3 * Cp * E2_pad               # contrib_t, k_t/q_t/v_t
    )
    try:
        cap_bytes = int(pltpu.get_tpu_info().vmem_capacity_bytes)
    except Exception:  # fallback if the query is unavailable
        cap_bytes = 128 * 2 ** 20
    # Generation-aware limit: ~80% of physical (v7x: ~51 MiB, v5e/v6e: ~102 MiB),
    # with a floor that comfortably covers this footprint + compiler scratch.
    vmem_limit = int(min(int(0.8 * cap_bytes),
                         max(32 * 2 ** 20, int(1.5 * est_bytes))))

    out_p = pl.pallas_call(
        kernel,
        out_shape=jax.ShapeDtypeStruct((n_dst_p, Cp), jnp.float32),
        in_specs=[vmem_spec, vmem_spec, vmem_spec,
                  vmem_spec, vmem_spec, vmem_spec, vmem_spec,
                  vmem_spec, vmem_spec],
        out_specs=vmem_spec,
        compiler_params=pltpu.CompilerParams(vmem_limit_bytes=vmem_limit),
    )(x_src_p, x_mid_p, x_dst_p, src1_row, mid1_row, mid2_row, dst2_row,
      w_all, b_all)

    return {"dst": out_p[:n_dst, :C]}


def reference(x_dict, edge_index_1, edge_index_2, params, channels):
    """Pure-JAX reference mirroring the PyTorch forward."""
    x_src, x_mid, x_dst = x_dict["src"], x_dict["mid"], x_dict["dst"]
    (W1, b1), (W2, b2), (Wq, bq), (Wk, bk), (Wv, bv) = params
    s1, m1 = edge_index_1
    h_src = x_src[s1]
    h_mid = x_mid[m1]
    h_fuse = h_mid @ W1.T + b1 + h_src @ W2.T + b2
    h_mid_agg = jnp.zeros((x_mid.shape[0], channels), jnp.float32).at[m1].add(h_fuse)
    m2, d2 = edge_index_2
    k = h_mid_agg[m2] @ Wk.T + bk
    v = h_mid_agg[m2] @ Wv.T + bv
    q = x_dst[d2] @ Wq.T + bq
    alpha = jax.nn.softmax((q * k).sum(-1) / math.sqrt(channels), axis=0)
    msg = v * alpha[:, None]
    return jnp.zeros((x_dst.shape[0], channels), jnp.float32).at[d2].add(msg)


def make_linear_params(key, channels):
    kw, kb = jax.random.split(key)
    bound = 1.0 / math.sqrt(channels)
    W = jax.random.uniform(kw, (channels, channels), jnp.float32, -bound, bound)
    b = jax.random.uniform(kb, (channels,), jnp.float32, -bound, bound)
    return W, b


if __name__ == "__main__":
    # Full-precision matmuls everywhere (kernel and reference) so the
    # correctness check is meaningful at tight tolerance.
    jax.config.update("jax_default_matmul_precision", "highest")

    C = 32
    N_SRC, N_MID, N_DST = 12, 10, 8
    E1, E2 = 24, 20

    key = jax.random.PRNGKey(0)
    keys = jax.random.split(key, 12)

    x_dict = {
        "src": jax.random.normal(keys[0], (N_SRC, C), jnp.float32),
        "mid": jax.random.normal(keys[1], (N_MID, C), jnp.float32),
        "dst": jax.random.normal(keys[2], (N_DST, C), jnp.float32),
    }
    edge_index_1 = jnp.stack([
        jax.random.randint(keys[3], (E1,), 0, N_SRC),
        jax.random.randint(keys[4], (E1,), 0, N_MID),
    ]).astype(jnp.int32)
    edge_index_2 = jnp.stack([
        jax.random.randint(keys[5], (E2,), 0, N_MID),
        jax.random.randint(keys[6], (E2,), 0, N_DST),
    ]).astype(jnp.int32)

    params = tuple(make_linear_params(keys[7 + i], C) for i in range(5))

    out = atomic_route_conv(x_dict, edge_index_1, edge_index_2, params, C)
    jax.block_until_ready(out["dst"])

    ref = reference(x_dict, edge_index_1, edge_index_2, params, C)
    np.testing.assert_allclose(np.asarray(out["dst"]), np.asarray(ref),
                               rtol=1e-4, atol=1e-4)
    print("KERNEL_OK")
</pallas_src>

<mosaic_0001>
module attributes {stable_mosaic.version = 11 : i64} {
  func.func @kernel(%arg0: memref<16x128xf32, #tpu.memory_space<vmem>>, %arg1: memref<16x128xf32, #tpu.memory_space<vmem>>, %arg2: memref<8x128xf32, #tpu.memory_space<vmem>>, %arg3: memref<1x128xi32, #tpu.memory_space<vmem>>, %arg4: memref<1x128xi32, #tpu.memory_space<vmem>>, %arg5: memref<1x128xi32, #tpu.memory_space<vmem>>, %arg6: memref<1x128xi32, #tpu.memory_space<vmem>>, %arg7: memref<128x640xf32, #tpu.memory_space<vmem>>, %arg8: memref<1x640xf32, #tpu.memory_space<vmem>>, %arg9: memref<8x128xf32, #tpu.memory_space<vmem>>) attributes {dimension_semantics = [], scalar_prefetch = 0 : i64, scratch_operands = 0 : i64, tpu.core_type = #tpu.core_type<tc>} {
    %c0 = arith.constant 0 : index
    %c0_0 = arith.constant 0 : index
    %0 = vector.load %arg1[%c0, %c0_0] : memref<16x128xf32, #tpu.memory_space<vmem>>, vector<16x128xf32>
    %c0_1 = arith.constant 0 : index
    %c0_2 = arith.constant 0 : index
    %1 = vector.load %arg7[%c0_1, %c0_2] : memref<128x640xf32, #tpu.memory_space<vmem>>, vector<128x128xf32>
    %cst = arith.constant dense<0.000000e+00> : vector<16x128xf32>
    %2 = tpu.matmul %0, %1, %cst {dimension_numbers = #tpu.dot_dimension_numbers<[1], [0], [0], [1], [0, 0, 1, 1], [], []>, precision = #tpu.contract_precision<fp32>} : vector<16x128xf32>, vector<128x128xf32>, vector<16x128xf32> -> vector<16x128xf32>
    %c0_3 = arith.constant 0 : index
    %c0_4 = arith.constant 0 : index
    %3 = vector.load %arg8[%c0_3, %c0_4] : memref<1x640xf32, #tpu.memory_space<vmem>>, vector<1x128xf32>
    %4 = vector.broadcast %3 : vector<1x128xf32> to vector<16x128xf32>
    %5 = arith.addf %2, %4 : vector<16x128xf32>
    %c0_5 = arith.constant 0 : index
    %c0_6 = arith.constant 0 : index
    %6 = vector.load %arg0[%c0_5, %c0_6] : memref<16x128xf32, #tpu.memory_space<vmem>>, vector<16x128xf32>
    %c0_7 = arith.constant 0 : index
    %c128 = arith.constant 128 : index
    %7 = vector.load %arg7[%c0_7, %c128] : memref<128x640xf32, #tpu.memory_space<vmem>>, vector<128x128xf32>
    %cst_8 = arith.constant dense<0.000000e+00> : vector<16x128xf32>
    %8 = tpu.matmul %6, %7, %cst_8 {dimension_numbers = #tpu.dot_dimension_numbers<[1], [0], [0], [1], [0, 0, 1, 1], [], []>, precision = #tpu.contract_precision<fp32>} : vector<16x128xf32>, vector<128x128xf32>, vector<16x128xf32> -> vector<16x128xf32>
    %c0_9 = arith.constant 0 : index
    %c0_10 = arith.constant 0 : index
    %9 = vector.load %arg2[%c0_9, %c0_10] : memref<8x128xf32, #tpu.memory_space<vmem>>, vector<8x128xf32>
    %c0_11 = arith.constant 0 : index
    %c256 = arith.constant 256 : index
    %10 = vector.load %arg7[%c0_11, %c256] : memref<128x640xf32, #tpu.memory_space<vmem>>, vector<128x128xf32>
    %cst_12 = arith.constant dense<0.000000e+00> : vector<8x128xf32>
    %11 = tpu.matmul %9, %10, %cst_12 {dimension_numbers = #tpu.dot_dimension_numbers<[1], [0], [0], [1], [0, 0, 1, 1], [], []>, precision = #tpu.contract_precision<fp32>} : vector<8x128xf32>, vector<128x128xf32>, vector<8x128xf32> -> vector<8x128xf32>
    %c0_13 = arith.constant 0 : index
    %c256_14 = arith.constant 256 : index
    %12 = vector.load %arg8[%c0_13, %c256_14] : memref<1x640xf32, #tpu.memory_space<vmem>>, vector<1x128xf32>
    %13 = vector.broadcast %12 : vector<1x128xf32> to vector<8x128xf32>
    %14 = arith.addf %11, %13 : vector<8x128xf32>
    %c0_15 = arith.constant 0 : index
    %c0_16 = arith.constant 0 : index
    %15 = vector.load %arg3[%c0_15, %c0_16] : memref<1x128xi32, #tpu.memory_space<vmem>>, vector<1x128xi32>
    %c0_17 = arith.constant 0 : index
    %c0_18 = arith.constant 0 : index
    %16 = vector.load %arg4[%c0_17, %c0_18] : memref<1x128xi32, #tpu.memory_space<vmem>>, vector<1x128xi32>
    %17 = tpu.iota {dimensions = array<i32: 0>} : vector<16x128xi32>
    %18 = vector.broadcast %15 : vector<1x128xi32> to vector<16x128xi32>
    %19 = arith.cmpi eq, %17, %18 : vector<16x128xi32>
    %20 = arith.extui %19 : vector<16x128xi1> to vector<16x128xi32>
    %21 = arith.sitofp %20 : vector<16x128xi32> to vector<16x128xf32>
    %22 = tpu.iota {dimensions = array<i32: 0>} : vector<16x128xi32>
    %23 = vector.broadcast %16 : vector<1x128xi32> to vector<16x128xi32>
    %24 = arith.cmpi eq, %22, %23 : vector<16x128xi32>
    %25 = arith.extui %24 : vector<16x128xi1> to vector<16x128xi32>
    %26 = arith.sitofp %25 : vector<16x128xi32> to vector<16x128xf32>
    %cst_19 = arith.constant dense<0.000000e+00> : vector<128x128xf32>
    %27 = tpu.matmul %5, %26, %cst_19 {dimension_numbers = #tpu.dot_dimension_numbers<[0], [0], [1], [1], [0, 1, 1, 1], [], []>, precision = #tpu.contract_precision<fp32>} : vector<16x128xf32>, vector<16x128xf32>, vector<128x128xf32> -> vector<128x128xf32>
    %cst_20 = arith.constant dense<0.000000e+00> : vector<128x128xf32>
    %28 = tpu.matmul %8, %21, %cst_20 {dimension_numbers = #tpu.dot_dimension_numbers<[0], [0], [1], [1], [0, 1, 1, 1], [], []>, precision = #tpu.contract_precision<fp32>} : vector<16x128xf32>, vector<16x128xf32>, vector<128x128xf32> -> vector<128x128xf32>
    %29 = arith.addf %27, %28 : vector<128x128xf32>
    %cst_21 = arith.constant dense<0.000000e+00> : vector<16x128xf32>
    %30 = tpu.matmul %26, %29, %cst_21 {dimension_numbers = #tpu.dot_dimension_numbers<[1], [1], [0], [0], [0, 0, 1, 0], [], []>, precision = #tpu.contract_precision<fp32>} : vector<16x128xf32>, vector<128x128xf32>, vector<16x128xf32> -> vector<16x128xf32>
    %c0_22 = arith.constant 0 : index
    %c384 = arith.constant 384 : index
    %31 = vector.load %arg7[%c0_22, %c384] : memref<128x640xf32, #tpu.memory_space<vmem>>, vector<128x256xf32>
    %cst_23 = arith.constant dense<0.000000e+00> : vector<16x256xf32>
    %32 = tpu.matmul %30, %31, %cst_23 {dimension_numbers = #tpu.dot_dimension_numbers<[1], [0], [0], [1], [0, 0, 1, 1], [], []>, precision = #tpu.contract_precision<fp32>} : vector<16x128xf32>, vector<128x256xf32>, vector<16x256xf32> -> vector<16x256xf32>
    %c0_24 = arith.constant 0 : index
    %c384_25 = arith.constant 384 : index
    %33 = vector.load %arg8[%c0_24, %c384_25] : memref<1x640xf32, #tpu.memory_space<vmem>>, vector<1x256xf32>
    %34 = vector.broadcast %33 : vector<1x256xf32> to vector<16x256xf32>
    %35 = arith.addf %32, %34 : vector<16x256xf32>
    %c0_26 = arith.constant 0 : index
    %c0_27 = arith.constant 0 : index
    %36 = vector.load %arg5[%c0_26, %c0_27] : memref<1x128xi32, #tpu.memory_space<vmem>>, vector<1x128xi32>
    %c0_28 = arith.constant 0 : index
    %c0_29 = arith.constant 0 : index
    %37 = vector.load %arg6[%c0_28, %c0_29] : memref<1x128xi32, #tpu.memory_space<vmem>>, vector<1x128xi32>
    %38 = tpu.iota {dimensions = array<i32: 0>} : vector<16x128xi32>
    %39 = vector.broadcast %36 : vector<1x128xi32> to vector<16x128xi32>
    %40 = arith.cmpi eq, %38, %39 : vector<16x128xi32>
    %41 = arith.extui %40 : vector<16x128xi1> to vector<16x128xi32>
    %42 = arith.sitofp %41 : vector<16x128xi32> to vector<16x128xf32>
    %43 = tpu.iota {dimensions = array<i32: 0>} : vector<8x128xi32>
    %44 = vector.broadcast %37 : vector<1x128xi32> to vector<8x128xi32>
    %45 = arith.cmpi eq, %43, %44 : vector<8x128xi32>
    %46 = arith.extui %45 : vector<8x128xi1> to vector<8x128xi32>
    %47 = arith.sitofp %46 : vector<8x128xi32> to vector<8x128xf32>
    %48 = vector.extract_strided_slice %35 {offsets = [0, 0], sizes = [16, 128], strides = [1, 1]} : vector<16x256xf32> to vector<16x128xf32>
    %cst_30 = arith.constant dense<0.000000e+00> : vector<128x128xf32>
    %49 = tpu.matmul %48, %42, %cst_30 {dimension_numbers = #tpu.dot_dimension_numbers<[0], [0], [1], [1], [0, 1, 1, 1], [], []>, precision = #tpu.contract_precision<fp32>} : vector<16x128xf32>, vector<16x128xf32>, vector<128x128xf32> -> vector<128x128xf32>
    %50 = vector.extract_strided_slice %35 {offsets = [0, 128], sizes = [16, 128], strides = [1, 1]} : vector<16x256xf32> to vector<16x128xf32>
    %cst_31 = arith.constant dense<0.000000e+00> : vector<128x128xf32>
    %51 = tpu.matmul %50, %42, %cst_31 {dimension_numbers = #tpu.dot_dimension_numbers<[0], [0], [1], [1], [0, 1, 1, 1], [], []>, precision = #tpu.contract_precision<fp32>} : vector<16x128xf32>, vector<16x128xf32>, vector<128x128xf32> -> vector<128x128xf32>
    %cst_32 = arith.constant dense<0.000000e+00> : vector<128x128xf32>
    %52 = tpu.matmul %14, %47, %cst_32 {dimension_numbers = #tpu.dot_dimension_numbers<[0], [0], [1], [1], [0, 1, 1, 1], [], []>, precision = #tpu.contract_precision<fp32>} : vector<8x128xf32>, vector<8x128xf32>, vector<128x128xf32> -> vector<128x128xf32>
    %53 = arith.mulf %49, %52 : vector<128x128xf32>
    %cst_33 = arith.constant dense<0.000000e+00> : vector<128xf32>
    %54 = vector.multi_reduction <add>, %53, %cst_33 [0] : vector<128x128xf32> to vector<128xf32>
    %55 = vector.shape_cast %54 : vector<128xf32> to vector<1x128xf32>
    %56 = tpu.iota {dimensions = array<i32: 1>} : vector<1x128xi32>
    %c20_i32 = arith.constant 20 : i32
    %57 = vector.broadcast %c20_i32 : i32 to vector<1x128xi32>
    %58 = arith.cmpi slt, %56, %57 : vector<1x128xi32>
    %cst_34 = arith.constant -1.000000e+30 : f32
    %59 = vector.broadcast %cst_34 : f32 to vector<1x128xf32>
    %60 = arith.select %58, %55, %59 : vector<1x128xi1>, vector<1x128xf32>
    %cst_35 = arith.constant dense<0xFF800000> : vector<1xf32>
    %61 = vector.multi_reduction <maximumf>, %60, %cst_35 [1] : vector<1x128xf32> to vector<1xf32>
    %62 = vector.shape_cast %61 : vector<1xf32> to vector<1x1xf32>
    %63 = vector.broadcast %62 : vector<1x1xf32> to vector<1x128xf32>
    %64 = arith.subf %60, %63 : vector<1x128xf32>
    %65 = math.exp %64 : vector<1x128xf32>
    %cst_36 = arith.constant dense<0.000000e+00> : vector<1xf32>
    %66 = vector.multi_reduction <add>, %65, %cst_36 [1] : vector<1x128xf32> to vector<1xf32>
    %67 = vector.shape_cast %66 : vector<1xf32> to vector<1x1xf32>
    %68 = tpu.reciprocal %67 : vector<1x1xf32> -> vector<1x1xf32>
    %69 = vector.broadcast %68 : vector<1x1xf32> to vector<1x128xf32>
    %70 = arith.mulf %65, %69 : vector<1x128xf32>
    %71 = vector.broadcast %70 : vector<1x128xf32> to vector<128x128xf32>
    %72 = arith.mulf %71, %51 : vector<128x128xf32>
    %cst_37 = arith.constant dense<0.000000e+00> : vector<8x128xf32>
    %73 = tpu.matmul %47, %72, %cst_37 {dimension_numbers = #tpu.dot_dimension_numbers<[1], [1], [0], [0], [0, 0, 1, 0], [], []>, precision = #tpu.contract_precision<fp32>} : vector<8x128xf32>, vector<128x128xf32>, vector<8x128xf32> -> vector<8x128xf32>
    %c0_38 = arith.constant 0 : index
    %c0_39 = arith.constant 0 : index
    %74 = vector.load %arg9[%c0_38, %c0_39] : memref<8x128xf32, #tpu.memory_space<vmem>>, vector<8x128xf32>
    tpu.vector_store %arg9[%c0_38, %c0_39], %73 {strides = array<i32>} : memref<8x128xf32, #tpu.memory_space<vmem>>, vector<8x128xf32>,
    return
  }
}

</mosaic_0001>

<bundles_post_ra>
// kernel: tpu_custom_call.1
= control target key start
LH: loop header
LB: loop body
LE: loop exit
PB: predicated region body
PF: predicated region fallthrough
CT: control target
= control target key end

     0   :  { %14 = vsyncpa [#allocation3], 0  ;;  %s10116_s0 = inlined_call_operand.hbm [shape: f32[16,128], index: 0, kind: input, shape index: {}]   ;;  %s10117_s1 = inlined_call_operand.hbm [shape: f32[16,128], index: 1, kind: input, shape index: {}]   ;;  %s10118_s2 = inlined_call_operand.hbm [shape: f32[8,128], index: 2, kind: input, shape index: {}]   ;;  %s10119_s3 = inlined_call_operand.vmem [shape: s32[1,128], index: 3, kind: input, shape index: {}]   ;;  %s10120_s4 = inlined_call_operand.vmem [shape: s32[1,128], index: 4, kind: input, shape index: {}]   ;;  %s10121_s5 = inlined_call_operand.hbm [shape: s32[1,128], index: 5, kind: input, shape index: {}]   ;;  %s10122_s6 = inlined_call_operand.hbm [shape: s32[1,128], index: 6, kind: input, shape index: {}]   ;;  %s10123_s7 = inlined_call_operand.hbm [shape: f32[128,640], index: 7, kind: input, shape index: {}]   ;;  %s10124_s8 = inlined_call_operand.vmem [shape: f32[1,640], index: 8, kind: input, shape index: {}]   ;;  %s10125_s9 = inlined_call_operand.hbm [shape: f32[8,128], index: 9, kind: output, shape index: {}]  }
   0x1   :  { %15 = vsyncpa [#allocation6], 0 }
   0x2   :  { %16 = vsyncpa [#allocation9], 0 }
   0x3   :  { %17 = vsyncpa [#allocation12], 0 }
   0x4   :  { %18 = vsyncpa [#allocation4], 0  ;;  %s36_s11 = sshll.u32 %s10117_s1, 4  ;;  %s6651_s12 = smov [#allocation5]   ;;  %s37_s11 = int_to_ptr.hbm [resolvable:$true] %s36_s11 }
   0x5   :  { %s38_s13 = sshll.u32 %s6651_s12, 4  ;;  %s65_s16 = sshll.u32 %s10121_s5, 4  ;;  %s39_s13 = int_to_ptr.vmem [resolvable:$true] %s38_s13  ;;  %s66_s16 = int_to_ptr.hbm [resolvable:$true] %s65_s16 }
   0x6   :  { %s6652_s17 = smov 128   ;;  %s6653_s18 = smov 8  }
   0x7   :  { %44 = dma.hbm_to_vmem [thread:$0]  %s37_s11, 256, %s39_s13, [#allocation6], %s6652_s17, %s6652_s17, %s6653_s18  }
   0x8   :  { %s6654_s19 = smov [#allocation8]   ;;  %s23_s23 = sshll.u32 %s10116_s0, 4  ;;  %s24_s23 = int_to_ptr.hbm [resolvable:$true] %s23_s23 }
   0x9   :  { %s67_s20 = sshll.u32 %s6654_s19, 4  ;;  %s50_s25 = sshll.u32 %s10118_s2, 4  ;;  %s68_s20 = int_to_ptr.vmem [resolvable:$true] %s67_s20  ;;  %s51_s25 = int_to_ptr.hbm [resolvable:$true] %s50_s25 }
   0xa   :  { %70 = dma.hbm_to_vmem [thread:$0]  %s66_s16, 16, %s68_s20, [#allocation9]  }
   0xb   :  { %s6655_s26 = smov [#allocation2]   ;;  %s6656_s5 = smov [#allocation7]  }
   0xc   :  { %s25_s27 = sshll.u32 %s6655_s26, 4  ;;  %s52_s28 = sshll.u32 %s6656_s5, 4  ;;  %s26_s27 = int_to_ptr.vmem [resolvable:$true] %s25_s27  ;;  %s53_s28 = int_to_ptr.vmem [resolvable:$true] %s52_s28 }
   0xd   :  { %31 = dma.hbm_to_vmem [thread:$0]  %s24_s23, 256, %s26_s27, [#allocation3], %s6652_s17, %s6652_s17, %s6653_s18  }
   0xe   :  { %s76_s10 = sshll.u32 %s10122_s6, 4  ;;  %s86_s12 = sshll.u32 %s10123_s7, 4  ;;  %s77_s10 = int_to_ptr.hbm [resolvable:$true] %s76_s10  ;;  %s87_s12 = int_to_ptr.hbm [resolvable:$true] %s86_s12 }
   0xf   :  { %55 = dma.hbm_to_vmem [thread:$0]  %s51_s25, 128, %s53_s28, [#allocation6]  }
  0x10   :  { %s6657_s13 = smov [#allocation10]   ;;  %s6658_s14 = smov [#allocation11]  }
  0x11   :  { %s78_s2 = sshll.u32 %s6657_s13, 4  ;;  %s88_s15 = sshll.u32 %s6658_s14, 4  ;;  %s79_s2 = int_to_ptr.vmem [resolvable:$true] %s78_s2  ;;  %s89_s15 = int_to_ptr.vmem [resolvable:$true] %s88_s15 }
  0x12   :  { %81 = dma.hbm_to_vmem [thread:$0]  %s77_s10, 16, %s79_s2, [#allocation9]  }
  0x13   :  { %s6659_s16 = smov 640   ;;  %s6660_s17 = smov 40  }
  0x14   :  { %94 = dma.hbm_to_vmem [thread:$0]  %s87_s12, 10240, %s89_s15, [#allocation12], %s6659_s16, %s6659_s16, %s6660_s17  }
  0x15   :  { %6641 = dma.done.wait [#allocation3], 256  }
  0x16   :  { %6642 = vsyncadd [#allocation3], 4294967040 }
  0x17   :  { %6643 = dma.done.wait [#allocation6], 384  }
  0x18   :  { %6644 = vsyncadd [#allocation6], 4294966912 }
  0x19   :  { %6645 = dma.done.wait [#allocation9], 32  }
  0x1a   :  { %6646 = vsyncadd [#allocation9], 4294967264 }
  0x1b   :  { %6647 = dma.done.wait [#allocation12], 10240  }
  0x1c   :  { %6648 = vsyncadd [#allocation12], 4294957056  ;;  %v138_v0 = vld [vmem:[#allocation11 + $0x258] sm:$0xff]  ;;  %v137_v1 = vld [vmem:[#allocation11 + $0x230] sm:$0xff]  ;;  %vm1318_vm2 = vcmask 130048   ;;  %vm5302_vm8 = vcmask 64512  }
  0x1d   :  { %v136_v2 = vld [vmem:[#allocation11 + $0x208] sm:$0xff]  ;;  %v6732_v3 = vand.u32 4294901760, %v138_v0  ;;  %v6734_v4 = vand.u32 4294901760, %v137_v1  ;;  %v135_v6 = vld [vmem:[#allocation11 + $0x1e0] sm:$0xff]  ;;  %v134_v7 = vld [vmem:[#allocation11 + $0x1b8] sm:$0xff]  ;;  %s6390_s26 = sshll.u32 %s10125_s9, 4  ;;  %s6391_s26 = int_to_ptr.hbm [resolvable:$true] %s6390_s26 }
  0x1e   :  { %v6736_v5 = vand.u32 4294901760, %v136_v2  ;;  %v133_v8 = vld [vmem:[#allocation11 + $0x190] sm:$0xff]  ;;  %v6738_v9 = vand.u32 4294901760, %v135_v6  ;;  %v6740_v10 = vand.u32 4294901760, %v134_v7  ;;  %v132_v12 = vld [vmem:[#allocation11 + $0x168] sm:$0xff]  ;;  %v131_v13 = vld [vmem:[#allocation11 + $0x140] sm:$0xff] }
  0x1f   :  { %v6742_v11 = vand.u32 4294901760, %v133_v8  ;;  %144 = vmatpush.msra.mxu0 %v6732_v3  ;;  %v6746_v14 = vsub.f32 %v138_v0, %v6732_v3  ;;  %v6749_v15 = vsub.f32 %v137_v1, %v6734_v4  ;;  %357 = vmatpush.msra.mxu3 %v6732_v3  ;;  %v6755_v17 = vand.u32 4294901760, %v132_v12  ;;  %v130_v18 = vld [vmem:[#allocation11 + $0x118] sm:$0xff]  ;;  %v129_v26 = vld [vmem:[#allocation11 + $0xf0] sm:$0xff]  ;;  %v128_v34 = vld [vmem:[#allocation11 + $0xc8] sm:$0xff] }
  0x20   :  { %v6753_v16 = vsub.f32 %v136_v2, %v6736_v5  ;;  %v6758_v19 = vsub.f32 %v135_v6, %v6738_v9  ;;  %v6761_v20 = vsub.f32 %v134_v7, %v6740_v10  ;;  %v6771_v25 = vand.u32 4294901760, %v131_v13  ;;  %v127_v42 = vld [vmem:[#allocation11 + $0xa0] sm:$0xff]  ;;  %v126_v48 = vld [vmem:[#allocation11 + $0x78] sm:$0xff]  ;;  %v125_v54 = vld [vmem:[#allocation11 + $0x50] sm:$0xff] }
  0x21   :  { %v6764_v21 = vsub.f32 %v133_v8, %v6742_v11  ;;  %146 = vmatpush.msra.mxu0 %v6734_v4  ;;  %299 = vmatpush.msra.mxu2 %v6746_v14  ;;  %v194_v22 = vand.u32 4294901760, %v6746_v14  ;;  %v10141_v23 = vand.u32 4294901760, %v6749_v15  ;;  %v6775_v28 = vand.u32 4294901760, %v130_v18  ;;  %v532_v59 = vld [vmem:[#allocation11 + $0x260] sm:$0xff]  ;;  %v124_v61 = vld [vmem:[#allocation11 + $0x28] sm:$0xff]  ;;  %v531_v2 = vld [vmem:[#allocation11 + $0x238] sm:$0xff] }
  0x22   :  { %v10139_v24 = vand.u32 4294901760, %v6753_v16  ;;  %359 = vmatpush.msra.mxu3 %v6734_v4  ;;  %v10138_v27 = vand.u32 4294901760, %v6758_v19  ;;  %v6778_v29 = vsub.f32 %v132_v12, %v6755_v17  ;;  %v10135_v33 = vand.u32 4294901760, %v6761_v20  ;;  %v123_v7 = vld [vmem:[#allocation11] sm:$0xff] }
  0x23   :  { %148 = vmatpush.msra.mxu0 %v6736_v5  ;;  %302 = vmatpush.msra.mxu2 %v6749_v15  ;;  %v195_v30 = vsub.f32 %v6746_v14, %v194_v22  ;;  %v201_v31 = vsub.f32 %v6749_v15, %v10141_v23  ;;  %v6793_v35 = vand.u32 4294901760, %v129_v26  ;;  %v10133_v36 = vand.u32 4294901760, %v6764_v21  ;;  %v523_v23 = vld [vmem:[#allocation11 + $0xf8] sm:$0xff] }
  0x24   :  { %v207_v32 = vsub.f32 %v6753_v16, %v10139_v24  ;;  %361 = vmatpush.msra.mxu3 %v6736_v5  ;;  %v213_v39 = vsub.f32 %v6758_v19, %v10138_v27  ;;  %v6802_v40 = vsub.f32 %v131_v13, %v6771_v25  ;;  %v6805_v41 = vand.u32 4294901760, %v128_v34 }
  0x25   :  { %150 = vmatpush.msra.mxu0 %v6738_v9  ;;  %v196_v37 = vand.u32 4294901760, %v195_v30  ;;  %305 = vmatpush.msra.mxu2 %v6753_v16  ;;  %v202_v38 = vand.u32 4294901760, %v201_v31  ;;  %v219_v44 = vsub.f32 %v6761_v20, %v10135_v33  ;;  %v10132_v45 = vand.u32 4294901760, %v6778_v29 }
  0x26   :  { %363 = vmatpush.msra.mxu3 %v6738_v9  ;;  %v208_v43 = vand.u32 4294901760, %v207_v32  ;;  %v6813_v46 = vsub.f32 %v130_v18, %v6775_v28  ;;  %v6818_v47 = vsub.f32 %v129_v26, %v6793_v35  ;;  %v214_v49 = vand.u32 4294901760, %v213_v39  ;;  %v530_v32 = vld [vmem:[#allocation11 + $0x210] sm:$0xff] }
  0x27   :  { %152 = vmatpush.msra.mxu0 %v6740_v10  ;;  %197 = vmatpush.msra.mxu1 %v196_v37  ;;  %v225_v50 = vsub.f32 %v6764_v21, %v10133_v36  ;;  %v6824_v51 = vand.u32 4294901760, %v127_v42  ;;  %v10131_v52 = vand.u32 4294901760, %v6802_v40  ;;  %v6830_v53 = vsub.f32 %v128_v34, %v6805_v41 }
  0x28   :  { %308 = vmatpush.msra.mxu2 %v6758_v19  ;;  %365 = vmatpush.msra.mxu3 %v6740_v10  ;;  %v220_v55 = vand.u32 4294901760, %v219_v44  ;;  %v231_v56 = vsub.f32 %v6778_v29, %v10132_v45  ;;  %v6836_v57 = vand.u32 4294901760, %v126_v48  ;;  %v10129_v58 = vand.u32 4294901760, %v6813_v46  ;;  %v529_v44 = vld [vmem:[#allocation11 + $0x1e8] sm:$0xff] }
  0x29   :  { %154 = vmatpush.msra.mxu0 %v6742_v11  ;;  %203 = vmatpush.msra.mxu1 %v202_v38  ;;  %v10128_v60 = vand.u32 4294901760, %v6818_v47  ;;  %v226_v62 = vand.u32 4294901760, %v225_v50  ;;  %v237_v63 = vsub.f32 %v6802_v40, %v10131_v52  ;;  %v6846_v0 = vand.u32 4294901760, %v125_v54 }
  0x2a   :  { %311 = vmatpush.msra.mxu2 %v6761_v20  ;;  %367 = vmatpush.msra.mxu3 %v6742_v11  ;;  %v6849_v1 = vsub.f32 %v127_v42, %v6824_v51  ;;  %v10127_v6 = vand.u32 4294901760, %v6830_v53  ;;  %v6854_v8 = vand.u32 4294901760, %v532_v59  ;;  %v232_v12 = vand.u32 4294901760, %v231_v56 }
  0x2b   :  { %156 = vmatpush.msra.mxu0 %v6755_v17  ;;  %209 = vmatpush.msra.mxu1 %v208_v43  ;;  %v243_v13 = vsub.f32 %v6813_v46, %v10129_v58  ;;  %v6860_v18 = vand.u32 4294901760, %v124_v61  ;;  %v6863_v26 = vsub.f32 %v126_v48, %v6836_v57  ;;  %v249_v30 = vsub.f32 %v6818_v47, %v10128_v60  ;;  %v526_v60 = vld [vmem:[#allocation11 + $0x170] sm:$0xff] }
  0x2c   :  { %314 = vmatpush.msra.mxu2 %v6764_v21  ;;  %369 = vmatpush.msra.mxu3 %v6755_v17  ;;  %v6870_v31 = vand.u32 4294901760, %v531_v2  ;;  %v238_v34 = vand.u32 4294901760, %v237_v63  ;;  %v6873_v37 = vand.u32 4294901760, %v123_v7  ;;  %v10126_v38 = vand.u32 4294901760, %v6849_v1 }
  0x2d   :  { %158 = vmatpush.msra.mxu0 %v6771_v25  ;;  %215 = vmatpush.msra.mxu1 %v214_v49  ;;  %v6877_v39 = vsub.f32 %v125_v54, %v6846_v0  ;;  %v255_v42 = vsub.f32 %v6830_v53, %v10127_v6  ;;  %v6885_v43 = vsub.f32 %v532_v59, %v6854_v8  ;;  %v244_v48 = vand.u32 4294901760, %v243_v13  ;;  %v528_v59 = vld [vmem:[#allocation11 + $0x1c0] sm:$0xff]  ;;  %v527_v13 = vld [vmem:[#allocation11 + $0x198] sm:$0xff] }
  0x2e   :  { %317 = vmatpush.msra.mxu2 %v6778_v29  ;;  %371 = vmatpush.msra.mxu3 %v6771_v25  ;;  %10210 = vst [vmem:[#allocation19_spill] sm:$0xff] %v6873_v37  ;;  %v10130_v49 = vand.u32 4294901760, %v6863_v26  ;;  %v6890_v50 = vsub.f32 %v124_v61, %v6860_v18  ;;  %v6892_v54 = vand.u32 4294901760, %v530_v32  ;;  %v6897_v56 = vsub.f32 %v531_v2, %v6870_v31 }
  0x2f   :  { %160 = vmatpush.msra.mxu0 %v6775_v28  ;;  %221 = vmatpush.msra.mxu1 %v220_v55  ;;  %v250_v55 = vand.u32 4294901760, %v249_v30  ;;  %v10134_v61 = vand.u32 4294901760, %v6877_v39  ;;  %v6905_v63 = vsub.f32 %v123_v7, %v6873_v37  ;;  %v256_v2 = vand.u32 4294901760, %v255_v42 }
  0x30   :  { %320 = vmatpush.msra.mxu2 %v6802_v40  ;;  %373 = vmatpush.msra.mxu3 %v6775_v28  ;;  %v10136_v30 = vand.u32 4294901760, %v6885_v43  ;;  %v10137_v7 = vand.u32 4294901760, %v6890_v50  ;;  %v6920_v6 = vand.u32 4294901760, %v528_v59  ;;  %v10140_v42 = vand.u32 4294901760, %v6897_v56 }
  0x31   :  { %162 = vmatpush.msra.mxu0 %v6793_v35  ;;  %227 = vmatpush.msra.mxu1 %v226_v62  ;;  %v261_v62 = vsub.f32 %v6849_v1, %v10126_v38  ;;  %v6918_v38 = vsub.f32 %v530_v32, %v6892_v54  ;;  %v6925_v58 = vand.u32 4294901760, %v527_v13  ;;  %v273_v32 = vsub.f32 %v6877_v39, %v10134_v61 }
  0x32   :  { %323 = vmatpush.msra.mxu2 %v6813_v46  ;;  %375 = vmatpush.msra.mxu3 %v6793_v35  ;;  %v585_v45 = vsub.f32 %v6885_v43, %v10136_v30  ;;  %v6940_v36 = vand.u32 4294901760, %v526_v60  ;;  %v6948_v33 = vsub.f32 %v528_v59, %v6920_v6  ;;  %v591_v30 = vsub.f32 %v6897_v56, %v10140_v42 }
  0x33   :  { %164 = vmatpush.msra.mxu0 %v6805_v41  ;;  %233 = vmatpush.msra.mxu1 %v232_v12  ;;  %v6907_v12 = vand.u32 4294901760, %v529_v44  ;;  %v10143_v61 = vand.u32 4294901760, %v6918_v38  ;;  %v10211_v14 = vand.u32 4294901760, %v6749_v15  ;;  %v10213_v15 = vand.u32 4294901760, %v6753_v16 }
  0x34   :  { %326 = vmatpush.msra.mxu2 %v6818_v47  ;;  %377 = vmatpush.msra.mxu3 %v6805_v41  ;;  %v6969_v42 = vsub.f32 %v526_v60, %v6940_v36  ;;  %v522_v60 = vld [vmem:[#allocation11 + $0xd0] sm:$0xff]  ;;  %v10215_v16 = vand.u32 4294901760, %v6758_v19  ;;  %v10217_v19 = vand.u32 4294901760, %v6761_v20  ;;  %v10219_v20 = vand.u32 4294901760, %v6764_v21 }
  0x35   :  { %166 = vmatpush.msra.mxu0 %v6824_v51  ;;  %239 = vmatpush.msra.mxu1 %v238_v34  ;;  %v267_v34 = vsub.f32 %v6863_v26, %v10130_v49  ;;  %v10142_v49 = vand.u32 4294901760, %v6905_v63  ;;  %v6933_v52 = vsub.f32 %v529_v44, %v6907_v12  ;;  %v279_v44 = vsub.f32 %v6890_v50, %v10137_v7 }
  0x36   :  { %329 = vmatpush.msra.mxu2 %v6830_v53  ;;  %379 = vmatpush.msra.mxu3 %v6824_v51  ;;  %v274_v7 = vand.u32 4294901760, %v273_v32  ;;  %v597_v32 = vsub.f32 %v6918_v38, %v10143_v61  ;;  %v10221_v21 = vand.u32 4294901760, %v6778_v29  ;;  %v10223_v29 = vand.u32 4294901760, %v6802_v40  ;;  %v517_v40 = vld [vmem:[#allocation11 + $0x8] sm:$0xff] }
  0x37   :  { %168 = vmatpush.msra.mxu0 %v6836_v57  ;;  %245 = vmatpush.msra.mxu1 %v244_v48  ;;  %v262_v48 = vand.u32 4294901760, %v261_v62  ;;  %v268_v62 = vand.u32 4294901760, %v267_v34  ;;  %v524_v34 = vld [vmem:[#allocation11 + $0x120] sm:$0xff]  ;;  %v285_v59 = vsub.f32 %v6905_v63, %v10142_v49 }
  0x38   :  { %332 = vmatpush.msra.mxu2 %v6849_v1  ;;  %381 = vmatpush.msra.mxu3 %v6836_v57  ;;  %v6976_v27 = vand.u32 4294901760, %v524_v34 }
  0x39   :  { %170 = vmatpush.msra.mxu0 %v6846_v0  ;;  %251 = vmatpush.msra.mxu1 %v250_v55  ;;  %v525_v55 = vld [vmem:[#allocation11 + $0x148] sm:$0xff] }
  0x3a   :  { %335 = vmatpush.msra.mxu2 %v6863_v26  ;;  %383 = vmatpush.msra.mxu3 %v6846_v0  ;;  %v6963_v24 = vand.u32 4294901760, %v525_v55 }
  0x3b   :  { %172 = vmatpush.msra.mxu0 %v6860_v18  ;;  %257 = vmatpush.msra.mxu1 %v256_v2  ;;  %v6956_v2 = vsub.f32 %v527_v13, %v6925_v58  ;;  %v586_v13 = vand.u32 4294901760, %v585_v45  ;;  %v7001_v45 = vand.u32 4294901760, %v522_v60 }
  0x3c   :  { %338 = vmatpush.msra.mxu2 %v6877_v39  ;;  %385 = vmatpush.msra.mxu3 %v6860_v18  ;;  %v6987_v49 = vsub.f32 %v525_v55, %v6963_v24  ;;  %v6999_v55 = vsub.f32 %v524_v34, %v6976_v27 }
  0x3d   :  { %174 = vmatpush.msra.mxu0 %v6873_v37  ;;  %263 = vmatpush.msra.mxu1 %v262_v48  ;;  %v280_v48 = vand.u32 4294901760, %v279_v44  ;;  %v10212_v44 = vand.u32 4294901760, %v6933_v52 }
  0x3e   :  { %341 = vmatpush.msra.mxu2 %v6890_v50  ;;  %387 = vmatpush.msra.mxu3 %v6873_v37  ;;  %v6989_v37 = vand.u32 4294901760, %v523_v23 }
  0x3f   :  { %404 = vmatpush.msrb.mxu0 %v194_v22  ;;  %269 = vmatpush.msra.mxu1 %v268_v62  ;;  %v592_v22 = vand.u32 4294901760, %v591_v30  ;;  %v286_v62 = vand.u32 4294901760, %v285_v59  ;;  %v603_v61 = vsub.f32 %v6933_v52, %v10212_v44  ;;  %v10214_v59 = vand.u32 4294901760, %v6948_v33 }
  0x40   :  { %344 = vmatpush.msra.mxu2 %v6905_v63  ;;  %587 = vmatpush.msrb.mxu3 %v586_v13  ;;  %v10216_v13 = vand.u32 4294901760, %v6956_v2  ;;  %v7011_v34 = vsub.f32 %v523_v23, %v6989_v37 }
  0x41   :  { %408 = vmatpush.msrb.mxu0 %v10211_v14  ;;  %275 = vmatpush.msra.mxu1 %v274_v7  ;;  %v121_v14 = vld [vmem:[#allocation5] sm:$0xff]  ;;  %v598_v7 = vand.u32 4294901760, %v597_v32  ;;  %v609_v44 = vsub.f32 %v6948_v33, %v10214_v59  ;;  %v604_v32 = vand.u32 4294901760, %v603_v61  ;;  %v7026_v59 = vsub.f32 %v522_v60, %v7001_v45 }
  0x42   :  { %534 = vmatpush.msrb.mxu2 %v6854_v8  ;;  %593 = vmatpush.msrb.mxu3 %v592_v22  ;;  %v7013_v30 = vand.u32 4294901760, %v121_v14  ;;  %v10218_v22 = vand.u32 4294901760, %v6969_v42 }
  0x43   :  { %412 = vmatpush.msrb.mxu0 %v10213_v15  ;;  %281 = vmatpush.msra.mxu1 %v280_v48  ;;  %v615_v48 = vsub.f32 %v6956_v2, %v10216_v13  ;;  %v521_v15 = vld [vmem:[#allocation11 + $0xa8] sm:$0xff]  ;;  %v610_v61 = vand.u32 4294901760, %v609_v44 }
  0x44   :  { %536 = vmatpush.msrb.mxu2 %v6870_v31  ;;  %599 = vmatpush.msrb.mxu3 %v598_v7  ;;  %v7023_v23 = vand.u32 4294901760, %v521_v15  ;;  %v10220_v7 = vand.u32 4294901760, %v6987_v49  ;;  %v7037_v13 = vsub.f32 %v121_v14, %v7013_v30 }
  0x45   :  { %416 = vmatpush.msrb.mxu0 %v10215_v16  ;;  %287 = vmatpush.msra.mxu1 %v286_v62  ;;  %v621_v16 = vsub.f32 %v6969_v42, %v10218_v22  ;;  %v520_v62 = vld [vmem:[#allocation11 + $0x80] sm:$0xff]  ;;  %v518_v22 = vld [vmem:[#allocation11 + $0x30] sm:$0xff] }
  0x46   :  { %538 = vmatpush.msrb.mxu2 %v6892_v54  ;;  %605 = vmatpush.msrb.mxu3 %v604_v32  ;;  %v627_v44 = vsub.f32 %v6987_v49, %v10220_v7  ;;  %v7039_v60 = vand.u32 4294901760, %v520_v62  ;;  %v7050_v14 = vsub.f32 %v521_v15, %v7023_v23 }
  0x47   :  { %420 = vmatpush.msrb.mxu0 %v10217_v19  ;;  %475 = vmatpush.msrb.mxu1 %v6732_v3  ;;  %v616_v3 = vand.u32 4294901760, %v615_v48  ;;  %v519_v19 = vld [vmem:[#allocation11 + $0x58] sm:$0xff]  ;;  %v10222_v48 = vand.u32 4294901760, %v6999_v55 }
  0x48   :  { %540 = vmatpush.msrb.mxu2 %v6907_v12  ;;  %611 = vmatpush.msrb.mxu3 %v610_v61  ;;  %v7052_v7 = vand.u32 4294901760, %v519_v19  ;;  %v7063_v15 = vsub.f32 %v520_v62, %v7039_v60  ;;  %v650_v62 = vand.u32 4294901760, %v7050_v14 }
  0x49   :  { %424 = vmatpush.msrb.mxu0 %v10219_v20  ;;  %477 = vmatpush.msrb.mxu1 %v6734_v4  ;;  %v622_v4 = vand.u32 4294901760, %v621_v16  ;;  %v633_v32 = vsub.f32 %v6999_v55, %v10222_v48  ;;  %v10224_v16 = vand.u32 4294901760, %v7011_v34  ;;  %v122_v48 = vld [vmem:[#allocation5 + $0x8] sm:$0xff]  ;;  %v10225_v20 = vand.u32 4294901760, %v6813_v46 }
  0x4a   :  { %542 = vmatpush.msrb.mxu2 %v6920_v6  ;;  %617 = vmatpush.msrb.mxu3 %v616_v3  ;;  %v10227_v46 = vand.u32 4294901760, %v6818_v47 }
  0x4b   :  { %428 = vmatpush.msrb.mxu0 %v10221_v21  ;;  %479 = vmatpush.msrb.mxu1 %v6736_v5  ;;  %v628_v5 = vand.u32 4294901760, %v627_v44  ;;  %v639_v61 = vsub.f32 %v7011_v34, %v10224_v16  ;;  %v177_v21 = vand.u32 4294901760, %v7037_v13  ;;  %v634_v3 = vand.u32 4294901760, %v633_v32 }
  0x4c   :  { %544 = vmatpush.msrb.mxu2 %v6925_v58  ;;  %623 = vmatpush.msrb.mxu3 %v622_v4  ;;  %v10226_v44 = vand.u32 4294901760, %v7026_v59  ;;  %v7076_v16 = vsub.f32 %v519_v19, %v7052_v7  ;;  %v10228_v19 = vand.u32 4294901760, %v6830_v53 }
  0x4d   :  { %432 = vmatpush.msrb.mxu0 %v10223_v29  ;;  %481 = vmatpush.msrb.mxu1 %v6738_v9  ;;  %v7068_v9 = vand.u32 4294901760, %v518_v22  ;;  %v640_v4 = vand.u32 4294901760, %v639_v61  ;;  %v178_v32 = vsub.f32 %v7037_v13, %v177_v21 }
  0x4e   :  { %546 = vmatpush.msrb.mxu2 %v6940_v36  ;;  %v645_v29 = vsub.f32 %v7026_v59, %v10226_v44  ;;  %629 = vmatpush.msrb.mxu3 %v628_v5  ;;  %v7088_v44 = vand.u32 4294901760, %v517_v40  ;;  %v651_v5 = vsub.f32 %v7050_v14, %v650_v62  ;;  %v662_v61 = vand.u32 4294901760, %v7076_v16 }
  0x4f   :  { %436 = vmatpush.msrb.mxu0 %v10225_v20  ;;  %483 = vmatpush.msrb.mxu1 %v6740_v10  ;;  %v7081_v10 = vand.u32 4294901760, %v122_v48  ;;  %v656_v20 = vand.u32 4294901760, %v7063_v15  ;;  %v179_v53 = vand.u32 4294901760, %v178_v32  ;;  %v10232_v32 = vand.u32 4294901760, %v6890_v50 }
  0x50   :  { %548 = vmatpush.msrb.mxu2 %v6963_v24  ;;  %635 = vmatpush.msrb.mxu3 %v634_v3  ;;  %v646_v47 = vand.u32 4294901760, %v645_v29  ;;  %v7112_v3 = vsub.f32 %v517_v40, %v7088_v44  ;;  %v10230_v29 = vand.u32 4294901760, %v6863_v26 }
  0x51   :  { %440 = vmatpush.msrb.mxu0 %v10227_v46  ;;  %485 = vmatpush.msrb.mxu1 %v6742_v11  ;;  %v7094_v11 = vsub.f32 %v518_v22, %v7068_v9  ;;  %v10229_v46 = vand.u32 4294901760, %v6849_v1  ;;  %v657_v22 = vsub.f32 %v7063_v15, %v656_v20  ;;  %v652_v1 = vand.u32 4294901760, %v651_v5 }
  0x52   :  { %550 = vmatpush.msrb.mxu2 %v6976_v27  ;;  %641 = vmatpush.msrb.mxu3 %v640_v4  ;;  %v10231_v4 = vand.u32 4294901760, %v6877_v39  ;;  %v674_v40 = vand.u32 4294901760, %v7112_v3 }
  0x53   :  { %444 = vmatpush.msrb.mxu0 %v10228_v19  ;;  %487 = vmatpush.msrb.mxu1 %v6755_v17  ;;  %v7105_v17 = vsub.f32 %v122_v48, %v7081_v10  ;;  %v663_v48 = vsub.f32 %v7076_v16, %v662_v61  ;;  %v10233_v19 = vand.u32 4294901760, %v6905_v63  ;;  %v515_v63 = vld [vmem:[#allocation2] sm:$0xff] }
  0x54   :  { %552 = vmatpush.msrb.mxu2 %v6989_v37  ;;  %647 = vmatpush.msrb.mxu3 %v646_v47 }
  0x55   :  { %448 = vmatpush.msrb.mxu0 %v10229_v46  ;;  %489 = vmatpush.msrb.mxu1 %v6771_v25  ;;  %v668_v25 = vand.u32 4294901760, %v7094_v11  ;;  %v185_v26 = vand.u32 4294901760, %v7105_v17  ;;  %v10234_v46 = vand.u32 4294901760, %v6885_v43 }
  0x56   :  { %554 = vmatpush.msrb.mxu2 %v7001_v45  ;;  %180 = vmatmul.f32.vlgmr.msra.gmra.mxu0 %v179_v53 }
  0x57   :  { %452 = vmatpush.msrb.mxu0 %v10230_v29  ;;  %491 = vmatpush.msrb.mxu1 %v6775_v28  ;;  %v658_v28 = vand.u32 4294901760, %v657_v22  ;;  %v669_v39 = vsub.f32 %v7094_v11, %v668_v25  ;;  %v186_v47 = vsub.f32 %v7105_v17, %v185_v26 }
  0x58   :  { %556 = vmatpush.msrb.mxu2 %v7023_v23  ;;  %653 = vmatpush.msrb.mxu3 %v652_v1 }
  0x59   :  { %456 = vmatpush.msrb.mxu0 %v10231_v4  ;;  %493 = vmatpush.msrb.mxu1 %v6793_v35  ;;  %v664_v35 = vand.u32 4294901760, %v663_v48  ;;  %v670_v50 = vand.u32 4294901760, %v669_v39  ;;  %v921_v48 = vld [vmem:[#allocation11 + $0x268] sm:$0xff]  ;;  %v920_v4 = vld [vmem:[#allocation11 + $0x240] sm:$0xff]  ;;  %v918_v39 = vld [vmem:[#allocation11 + $0x1f0] sm:$0xff] }
  0x5a   :  { %558 = vmatpush.msrb.mxu2 %v7039_v60  ;;  %289 = vmatmul.f32.vlgmr.msra.gmra.mxu1 %v7013_v30 }
  0x5b   :  { %460 = vmatpush.msrb.mxu0 %v10232_v32  ;;  %495 = vmatpush.msrb.mxu1 %v6805_v41  ;;  %v675_v41 = vsub.f32 %v7112_v3, %v674_v40 }
  0x5c   :  { %560 = vmatpush.msrb.mxu2 %v7052_v7  ;;  %659 = vmatpush.msrb.mxu3 %v658_v28  ;;  %v7264_v28 = vand.u32 4294901760, %v921_v48 }
  0x5d   :  { %464 = vmatpush.msrb.mxu0 %v10233_v19  ;;  %497 = vmatpush.msrb.mxu1 %v6824_v51  ;;  %v187_v51 = vand.u32 4294901760, %v186_v47  ;;  %v676_v5 = vand.u32 4294901760, %v675_v41  ;;  %v916_v19 = vld [vmem:[#allocation11 + $0x1a0] sm:$0xff]  ;;  %v7270_v47 = vand.u32 4294901760, %v918_v39 }
  0x5e   :  { %562 = vmatpush.msrb.mxu2 %v7068_v9  ;;  %665 = vmatpush.msrb.mxu3 %v664_v35  ;;  %v917_v35 = vld [vmem:[#allocation11 + $0x1c8] sm:$0xff] }
  0x5f   :  { %689 = vmatpush.msra.mxu0 %v6885_v43  ;;  %499 = vmatpush.msrb.mxu1 %v6836_v57  ;;  %v7152_v57 = vand.u32 4294901760, %v515_v63  ;;  %v10236_v43 = vld [vmem:[#allocation19_spill] sm:$0xff]  ;;  %v7272_v41 = vand.u32 4294901760, %v917_v35 }
  0x60   :  { %347 = vmatmul.f32.vlgmr.msra.gmra.mxu2 %v7037_v13  ;;  %391 = vmatmul.f32.vlgmr.msra.gmra.mxu3 %v177_v21  ;;  %v10235_v13 = vand.u32 4294901760, %v6897_v56  ;;  %v10237_v21 = vand.u32 4294901760, %v6918_v38 }
  0x61   :  { %692 = vmatpush.msra.mxu0 %v6897_v56  ;;  %501 = vmatpush.msrb.mxu1 %v6846_v0  ;;  %v7163_v0 = vsub.f32 %v515_v63, %v7152_v57  ;;  %v10238_v56 = vand.u32 4294901760, %v6933_v52  ;;  %v915_v63 = vld [vmem:[#allocation11 + $0x178] sm:$0xff] }
  0x62   :  { %564 = vmatpush.msrb.mxu2 %v7088_v44  ;;  %671 = vmatpush.msrb.mxu3 %v670_v50  ;;  %v7274_v50 = vand.u32 4294901760, %v916_v19 }
  0x63   :  { %695 = vmatpush.msra.mxu0 %v6918_v38  ;;  %503 = vmatpush.msrb.mxu1 %v6860_v18  ;;  %v516_v18 = vld [vmem:[#allocation2 + $0x8] sm:$0xff]  ;;  %v567_v53 = vand.u32 4294901760, %v7163_v0 }
  0x64   :  { %794 = vmatpush.msra.mxu2 %v10234_v46  ;;  %188 = vmatmul.f32.gmra.mxu0 %v187_v51  ;;  %v7179_v38 = vand.u32 4294901760, %v516_v18  ;;  %v914_v51 = vld [vmem:[#allocation11 + $0x150] sm:$0xff] }
  0x65   :  { %677 = vmatpush.msrb.mxu3 %v676_v5  ;;  %698 = vmatpush.msra.mxu0 %v6933_v52  ;;  %v568_v52 = vsub.f32 %v7163_v0, %v567_v53 }
  0x66   :  { %798 = vmatpush.msra.mxu2 %v10235_v13  ;;  %293 = vmatmul.f32.gmra.mxu1 %v7081_v10 }
  0x67   :  { %865 = vmatpush.msra.mxu3 %v6854_v8  ;;  %701 = vmatpush.msra.mxu0 %v6948_v33 }
  0x68   :  { %505 = vmatpush.msrb.mxu1 %v10236_v43  ;;  %802 = vmatpush.msra.mxu2 %v10237_v21  ;;  %v7290_v43 = vsub.f32 %v918_v39, %v7270_v47  ;;  %v7293_v21 = vsub.f32 %v917_v35, %v7272_v41 }
  0x69   :  { %867 = vmatpush.msra.mxu3 %v6870_v31  ;;  %704 = vmatpush.msra.mxu0 %v6956_v2 }
  0x6a   :  { %747 = vmatpush.msra.mxu1 %v6854_v8  ;;  %806 = vmatpush.msra.mxu2 %v10238_v56  ;;  %v10239_v8 = vand.u32 4294901760, %v6948_v33  ;;  %v569_v33 = vand.u32 4294901760, %v568_v52  ;;  %v987_v52 = vand.u32 4294901760, %v7290_v43 }
  0x6b   :  { %869 = vmatpush.msra.mxu3 %v6892_v54  ;;  %352 = vmatmul.f32.gmra.mxu2 %v7105_v17  ;;  %v10241_v17 = vand.u32 4294901760, %v6969_v42 }
  0x6c   :  { %749 = vmatpush.msra.mxu1 %v6870_v31  ;;  %397 = vmatmul.f32.gmra.mxu3 %v185_v26  ;;  %v10240_v31 = vand.u32 4294901760, %v6956_v2  ;;  %v10242_v2 = vand.u32 4294901760, %v6987_v49  ;;  %v919_v26 = vld [vmem:[#allocation11 + $0x218] sm:$0xff] }
  0x6d   :  { %707 = vmatpush.msra.mxu0 %v6969_v42  ;;  %810 = vmatpush.msra.mxu2 %v10239_v8  ;;  %v7268_v32 = vand.u32 4294901760, %v919_v26  ;;  %v7302_v8 = vand.u32 4294901760, %v914_v51 }
  0x6e   :  { %751 = vmatpush.msra.mxu1 %v6892_v54  ;;  %871 = vmatpush.msra.mxu3 %v6907_v12  ;;  %v574_v54 = vsub.f32 %v516_v18, %v7179_v38  ;;  %v7296_v18 = vsub.f32 %v916_v19, %v7274_v50 }
  0x6f   :  { %466 = vmatmul.f32.vlgmr.msrb.gmra.mxu0 %v7013_v30  ;;  %814 = vmatpush.msra.mxu2 %v10240_v31  ;;  %v7283_v13 = vsub.f32 %v919_v26, %v7268_v32 }
  0x70   :  { %753 = vmatpush.msra.mxu1 %v6907_v12  ;;  %710 = vmatpush.msra.mxu0 %v6987_v49  ;;  %v575_v12 = vand.u32 4294901760, %v574_v54  ;;  %v10245_v49 = vand.u32 4294901760, %v7026_v59 }
  0x71   :  { %873 = vmatpush.msra.mxu3 %v6920_v6  ;;  %507 = vmatmul.f32.vlgmr.msrb.gmra.mxu1 %v7013_v30 }
  0x72   :  { %713 = vmatpush.msra.mxu0 %v6999_v55  ;;  %755 = vmatpush.msra.mxu1 %v6920_v6  ;;  %v10243_v6 = vand.u32 4294901760, %v6999_v55  ;;  %v576_v42 = vsub.f32 %v574_v54, %v575_v12 }
  0x73   :  { %818 = vmatpush.msra.mxu2 %v10241_v17  ;;  %875 = vmatpush.msra.mxu3 %v6925_v58 }
  0x74   :  { %716 = vmatpush.msra.mxu0 %v7011_v34  ;;  %757 = vmatpush.msra.mxu1 %v6925_v58  ;;  %v10244_v58 = vand.u32 4294901760, %v7011_v34 }
  0x75   :  { %822 = vmatpush.msra.mxu2 %v10242_v2  ;;  %877 = vmatpush.msra.mxu3 %v6940_v36  ;;  %v999_v2 = vand.u32 4294901760, %v7296_v18 }
  0x76   :  { %570 = vmatmul.f32.vlgmr.msrb.gmra.mxu2 %v569_v33  ;;  %679 = vmatmul.f32.vlgmr.msrb.gmra.mxu3 %v7152_v57 }
  0x77   :  { %719 = vmatpush.msra.mxu0 %v7026_v59  ;;  %759 = vmatpush.msra.mxu1 %v6940_v36  ;;  %v577_v36 = vand.u32 4294901760, %v576_v42 }
  0x78   :  { %826 = vmatpush.msra.mxu2 %v10243_v6  ;;  %879 = vmatpush.msra.mxu3 %v6963_v24  ;;  %v913_v6 = vld [vmem:[#allocation11 + $0x128] sm:$0xff] }
  0x79   :  { %470 = vmatmul.f32.gmra.mxu0 %v7081_v10  ;;  %761 = vmatpush.msra.mxu1 %v6963_v24 }
  0x7a   :  { %722 = vmatpush.msra.mxu0 %v7050_v14  ;;  %830 = vmatpush.msra.mxu2 %v10244_v58 }
  0x7b   :  { %881 = vmatpush.msra.mxu3 %v6976_v27  ;;  %511 = vmatmul.f32.gmra.mxu1 %v7081_v10 }
  0x7c   :  { %725 = vmatpush.msra.mxu0 %v7063_v15  ;;  %763 = vmatpush.msra.mxu1 %v6976_v27  ;;  %v6463_v27 = vld [vmem:[%s10124_s8] ss:$0 sm:$0xff] }
  0x7d   :  { %834 = vmatpush.msra.mxu2 %v10245_v49  ;;  %883 = vmatpush.msra.mxu3 %v6989_v37  ;;  %v7329_v49 = vsub.f32 %v914_v51, %v7302_v8 }
  0x7e   :  { %728 = vmatpush.msra.mxu0 %v7076_v16  ;;  %765 = vmatpush.msra.mxu1 %v6989_v37 }
  0x7f   :  { %838 = vmatpush.msra.mxu2 %v650_v62  ;;  %885 = vmatpush.msra.mxu3 %v7001_v45 }
  0x80   :  { %578 = vmatmul.f32.gmra.mxu2 %v577_v36  ;;  %683 = vmatmul.f32.gmra.mxu3 %v7179_v38  ;;  %v988_v36 = vsub.f32 %v7290_v43, %v987_v52 }
  0x81   :  { %731 = vmatpush.msra.mxu0 %v7094_v11  ;;  %767 = vmatpush.msra.mxu1 %v7001_v45 }
  0x82   :  { %842 = vmatpush.msra.mxu2 %v656_v20  ;;  %887 = vmatpush.msra.mxu3 %v7023_v23 }
  0x83   :  { %734 = vmatpush.msra.mxu0 %v7112_v3  ;;  %769 = vmatpush.msra.mxu1 %v7023_v23 }
  0x84   :  { %846 = vmatpush.msra.mxu2 %v662_v61  ;;  %889 = vmatpush.msra.mxu3 %v7039_v60 }
  0x85   :  { %737 = vmatmul.f32.vlgmr.msra.gmra.mxu0 %v7163_v0  ;;  %771 = vmatpush.msra.mxu1 %v7039_v60  ;;  %v7286_v0 = vand.u32 4294901760, %v915_v63 }
  0x86   :  { %850 = vmatpush.msra.mxu2 %v668_v25  ;;  %891 = vmatpush.msra.mxu3 %v7052_v7 }
  0x87   :  { %773 = vmatpush.msra.mxu1 %v7052_v7  ;;  %927 = vmatpush.msrb.mxu0 %v7264_v28  ;;  %v7307_v31 = vsub.f32 %v915_v63, %v7286_v0 }
  0x88   :  { %854 = vmatpush.msra.mxu2 %v674_v40  ;;  %893 = vmatpush.msra.mxu3 %v7068_v9  ;;  %v7266_v40 = vand.u32 4294901760, %v920_v4 }
  0x89   :  { %856 = vmatmul.f32.vlgmr.msra.gmra.mxu2 %v7152_v57  ;;  %775 = vmatpush.msra.mxu1 %v7068_v9 }
  0x8a   :  { %895 = vmatpush.msra.mxu3 %v7088_v44  ;;  %v7280_v46 = vsub.f32 %v920_v4, %v7266_v40  ;;  %929 = vmatpush.msrb.mxu0 %v7266_v40  ;;  %v907_v4 = vld [vmem:[#allocation11 + $0x38] sm:$0xff] }
  0x8b   :  { %897 = vmatmul.f32.vlgmr.msra.gmra.mxu3 %v7152_v57  ;;  %777 = vmatpush.msra.mxu1 %v7088_v44  ;;  %v7277_v57 = vsub.f32 %v921_v48, %v7264_v28 }
  0x8c   :  { %781 = vmatmul.f32.vlgmr.msra.gmra.mxu1 %v567_v53  ;;  %1123 = vmatpush.msrb.mxu3 %v7264_v28  ;;  %v975_v53 = vand.u32 4294901760, %v7280_v46 }
  0x8d   :  { %742 = vmatmul.f32.gmra.mxu0 %v574_v54  ;;  %v969_v56 = vand.u32 4294901760, %v7277_v57  ;;  %1070 = vmatpush.msrb.mxu2 %v7277_v57 }
  0x8e   :  { %1125 = vmatpush.msrb.mxu3 %v7266_v40  ;;  %v976_v33 = vsub.f32 %v7280_v46, %v975_v53  ;;  %931 = vmatpush.msrb.mxu0 %v7268_v32 }
  0x8f   :  { %v970_v54 = vsub.f32 %v7277_v57, %v969_v56  ;;  %1073 = vmatpush.msrb.mxu2 %v7280_v46 }
  0x90   :  { %1127 = vmatpush.msrb.mxu3 %v7268_v32  ;;  %v977_v58 = vand.u32 4294901760, %v976_v33  ;;  %933 = vmatpush.msrb.mxu0 %v7270_v47  ;;  %v906_v33 = vld [vmem:[#allocation11 + $0x10] sm:$0xff] }
  0x91   :  { %860 = vmatmul.f32.gmra.mxu2 %v7179_v38  ;;  %v971_v42 = vand.u32 4294901760, %v970_v54  ;;  %v7383_v54 = vand.u32 4294901760, %v907_v4 }
  0x92   :  { %1076 = vmatpush.msrb.mxu2 %v7283_v13  ;;  %1129 = vmatpush.msrb.mxu3 %v7270_v47 }
  0x93   :  { %901 = vmatmul.f32.gmra.mxu3 %v7179_v38  ;;  %v981_v38 = vand.u32 4294901760, %v7283_v13  ;;  %972 = vmatpush.msrb.mxu1 %v971_v42 }
  0x94   :  { %787 = vmatmul.f32.gmra.mxu1 %v575_v12  ;;  %v993_v12 = vand.u32 4294901760, %v7293_v21  ;;  %935 = vmatpush.msrb.mxu0 %v7272_v41 }
  0x95   :  { %v982_v17 = vsub.f32 %v7283_v13, %v981_v38  ;;  %1079 = vmatpush.msrb.mxu2 %v7290_v43  ;;  %1131 = vmatpush.msrb.mxu3 %v7272_v41 }
  0x96   :  { %978 = vmatpush.msrb.mxu1 %v977_v58  ;;  %937 = vmatpush.msrb.mxu0 %v7274_v50 }
  0x97   :  { %1082 = vmatpush.msrb.mxu2 %v7293_v21  ;;  %1133 = vmatpush.msrb.mxu3 %v7274_v50 }
  0x98   :  { %939 = vmatpush.msrb.mxu0 %v7286_v0 }
  0x99   :  { %1085 = vmatpush.msrb.mxu2 %v7296_v18  ;;  %1135 = vmatpush.msrb.mxu3 %v7286_v0 }
  0x9a   :  { %941 = vmatpush.msrb.mxu0 %v7302_v8 }
  0x9b   :  { %1088 = vmatpush.msrb.mxu2 %v7307_v31  ;;  %1137 = vmatpush.msrb.mxu3 %v7302_v8 }
  0x9d   :  { %1091 = vmatpush.msrb.mxu2 %v7329_v49 }
  0xd3   :  { %v181_v24 = vpop.f32.mrf.mxu0 }
  0xd4   :  { %v182_v45 = vadd.f32 %v6463_v27, %v181_v24  ;;  %v912_v24 = vld [vmem:[#allocation11 + $0x100] sm:$0xff] }
  0xd7   :  { %v290_v37 = vpop.f32.mrf.mxu1 }
  0xd8   :  { %v291_v30 = vadd.f32 %v290_v37, %v182_v45 }
  0xe1   :  { %v189_v55 = vpop.f32.mrf.mxu0 }
  0xe2   :  { %v190_v60 = vadd.f32 %v6463_v27, %v189_v55  ;;  %v911_v27 = vld [vmem:[#allocation11 + $0xd8] sm:$0xff]  ;;  %v910_v55 = vld [vmem:[#allocation11 + $0xb0] sm:$0xff] }
  0xe3   :  { %v348_v59 = vpop.f32.mrf.mxu2  ;;  %v294_v34 = vpop.f32.mrf.mxu1 }
  0xe4   :  { %v349_v23 = vadd.f32 %v348_v59, %v291_v30  ;;  %v392_v14 = vpop.f32.mrf.mxu3  ;;  %v295_v15 = vadd.f32 %v294_v34, %v190_v60  ;;  %v1005_v30 = vand.u32 4294901760, %v7307_v31  ;;  %v983_v59 = vand.u32 4294901760, %v982_v17 }
  0xe5   :  { %v994_v34 = vsub.f32 %v7293_v21, %v993_v12 }
  0xe6   :  { %v393_v7 = vadd.f32 %v392_v14, %v349_v23  ;;  %v7338_v23 = vand.u32 4294901760, %v913_v6  ;;  %v1000_v14 = vsub.f32 %v7296_v18, %v999_v2  ;;  %984 = vmatpush.msrb.mxu1 %v983_v59 }
  0xe8   :  { %v1001_v39 = vand.u32 4294901760, %v1000_v14  ;;  %943 = vmatpush.msrb.mxu0 %v7338_v23  ;;  %1139 = vmatpush.msrb.mxu3 %v7338_v23 }
  0xec   :  { %v467_v9 = vpop.f32.mrf.mxu0 }
  0xed   :  { %v468_v62 = vadd.f32 %v467_v9, %v393_v7  ;;  %v7344_v7 = vand.u32 4294901760, %v912_v24  ;;  %v909_v9 = vld [vmem:[#allocation11 + $0x88] sm:$0xff] }
  0xee   :  { %v508_v16 = vpop.f32.mrf.mxu1  ;;  %v353_v10 = vpop.f32.mrf.mxu2  ;;  %v7369_v48 = vand.u32 4294901760, %v909_v9 }
  0xef   :  { %v509_v20 = vadd.f32 %v508_v16, %v468_v62  ;;  %v354_v44 = vadd.f32 %v353_v10, %v295_v15  ;;  %v398_v11 = vpop.f32.mrf.mxu3  ;;  %v7346_v15 = vand.u32 4294901760, %v911_v27  ;;  %v989_v16 = vand.u32 4294901760, %v988_v36  ;;  %945 = vmatpush.msrb.mxu0 %v7344_v7  ;;  %1141 = vmatpush.msrb.mxu3 %v7344_v7 }
  0xf0   :  { %v1011_v10 = vand.u32 4294901760, %v7329_v49  ;;  %v7392_v36 = vsub.f32 %v909_v9, %v7369_v48 }
  0xf1   :  { %1991 = vxpose.xlu1.b32.start [1/2] (short) %v509_v20, 128  ;;  %v399_v61 = vadd.f32 %v398_v11, %v354_v44  ;;  %v7352_v20 = vsub.f32 %v913_v6, %v7338_v23  ;;  %v7355_v44 = vand.u32 4294901760, %v910_v55  ;;  %v908_v11 = vld [vmem:[#allocation11 + $0x60] sm:$0xff]  ;;  %990 = vmatpush.msrb.mxu1 %v989_v16 }
  0xf2   :  { %v7371_v35 = vand.u32 4294901760, %v908_v11  ;;  %v1012_v63 = vsub.f32 %v7329_v49, %v1011_v10  ;;  %947 = vmatpush.msrb.mxu0 %v7346_v15  ;;  %1143 = vmatpush.msrb.mxu3 %v7346_v15  ;;  %v10148_v49 = vmov 1.0  }
  0xf3   :  { %1094 = vmatpush.msrb.mxu2 %v7352_v20 }
  0xf4   :  { %949 = vmatpush.msrb.mxu0 %v7355_v44  ;;  %1145 = vmatpush.msrb.mxu3 %v7355_v44 }
  0xf6   :  { %v471_v22 = vpop.f32.mrf.mxu0  ;;  %951 = vmatpush.msrb.mxu0 %v7369_v48  ;;  %1147 = vmatpush.msrb.mxu3 %v7369_v48 }
  0xf7   :  { %v472_v3 = vadd.f32 %v471_v22, %v399_v61  ;;  %v1006_v22 = vsub.f32 %v7307_v31, %v1005_v30 }
  0xf8   :  { %v512_v29 = vpop.f32.mrf.mxu1  ;;  %953 = vmatpush.msrb.mxu0 %v7371_v35  ;;  %1149 = vmatpush.msrb.mxu3 %v7371_v35 }
  0xf9   :  { %v7262_v25 = vpop.f32.mrf.mxu2  ;;  %v513_v1 = vadd.f32 %v512_v29, %v472_v3  ;;  %v680_v5 = vpop.f32.mrf.mxu3  ;;  %v7361_v3 = vsub.f32 %v912_v24, %v7344_v7  ;;  %v995_v29 = vand.u32 4294901760, %v994_v34  ;;  %v1007_v6 = vand.u32 4294901760, %v1006_v22 }
  0xfa   :  { %v681_v60 = vadd.f32 %v680_v5, %v7262_v25  ;;  %v1017_v25 = vand.u32 4294901760, %v7352_v20  ;;  %v7381_v5 = vsub.f32 %v910_v55, %v7355_v44  ;;  %v7395_v55 = vsub.f32 %v908_v11, %v7371_v35  ;;  %955 = vmatpush.msrb.mxu0 %v7383_v54  ;;  %1151 = vmatpush.msrb.mxu3 %v7383_v54 }
  0xfb   :  { %1992 = vxpose.xlu1.b32.end [2/2] (short) %v513_v1, 128  ;;  %v7367_v1 = vsub.f32 %v911_v27, %v7346_v15  ;;  %v1023_v51 = vand.u32 4294901760, %v7361_v3  ;;  %996 = vmatpush.msrb.mxu1 %v995_v29  ;;  %v1013_v34 = vand.u32 4294901760, %v1012_v63  ;;  %v1041_v22 = vand.u32 4294901760, %v7392_v36 }
  0xfc   :  { %v1018_v42 = vsub.f32 %v7352_v20, %v1017_v25  ;;  %v1035_v14 = vand.u32 4294901760, %v7381_v5  ;;  %1097 = vmatpush.msrb.mxu2 %v7361_v3 }
  0xfd   :  { %v1029_v58 = vand.u32 4294901760, %v7367_v1  ;;  %1002 = vmatpush.msrb.mxu1 %v1001_v39 }
  0xfe   :  { %v1019_v11 = vand.u32 4294901760, %v1018_v42  ;;  %1100 = vmatpush.msrb.mxu2 %v7367_v1  ;;  %v1042_v42 = vsub.f32 %v7392_v36, %v1041_v22 }
  0xff   :  { %1008 = vmatpush.msrb.mxu1 %v1007_v6 }
 0x100   :  { %1103 = vmatpush.msrb.mxu2 %v7381_v5 }
 0x101   :  { %1014 = vmatpush.msrb.mxu1 %v1013_v34 }
 0x102   :  { %v738_v37 = vpop.f32.mrf.mxu0  ;;  %1106 = vmatpush.msrb.mxu2 %v7392_v36 }
 0x103   :  { %v579_v45 = vpop.f32.mrf.mxu2  ;;  %v684_v62 = vpop.f32.mrf.mxu3  ;;  %v739_v61 = vadd.f32 %v738_v37, %v681_v60  ;;  %v1024_v60 = vsub.f32 %v7361_v3, %v1023_v51  ;;  %1020 = vmatpush.msrb.mxu1 %v1019_v11  ;;  %v905_v11 = vld [vmem:[#allocation7] sm:$0xff] }
 0x104   :  { %v685_v24 = vadd.f32 %v684_v62, %v579_v45  ;;  %v7404_v45 = vand.u32 4294901760, %v906_v33  ;;  %v7407_v62 = vsub.f32 %v907_v4, %v7383_v54  ;;  %v1047_v4 = vand.u32 4294901760, %v7395_v55  ;;  %1109 = vmatpush.msrb.mxu2 %v7395_v55 }
 0x105   :  { %v1025_v39 = vand.u32 4294901760, %v1024_v60 }
 0x106   :  { %v7423_v63 = vsub.f32 %v906_v33, %v7404_v45  ;;  %957 = vmatpush.msrb.mxu0 %v7404_v45  ;;  %1112 = vmatpush.msrb.mxu2 %v7407_v62 }
 0x107   :  { %1026 = vmatpush.msrb.mxu1 %v1025_v39  ;;  %1153 = vmatpush.msrb.mxu3 %v7404_v45 }
 0x108   :  { %v1059_v34 = vand.u32 4294901760, %v7423_v63  ;;  %1164 = vmatpush.msra.mxu0 %v969_v56  ;;  %1115 = vmatpush.msrb.mxu2 %v7423_v63 }
 0x109   :  { %v782_v26 = vpop.f32.mrf.mxu1 }
 0x10a   :  { %v783_v19 = vadd.f32 %v782_v26, %v739_v61  ;;  %v743_v27 = vpop.f32.mrf.mxu0  ;;  %v1030_v61 = vsub.f32 %v7367_v1, %v1029_v58  ;;  %1168 = vmatpush.msra.mxu0 %v975_v53 }
 0x10b   :  { %v744_v16 = vadd.f32 %v743_v27, %v685_v24  ;;  %v1053_v24 = vand.u32 4294901760, %v7407_v62 }
 0x10c   :  { %v857_v17 = vpop.f32.mrf.mxu2  ;;  %v1031_v6 = vand.u32 4294901760, %v1030_v61  ;;  %1172 = vmatpush.msra.mxu0 %v981_v38 }
 0x10d   :  { %v858_v37 = vadd.f32 %v857_v17, %v783_v19  ;;  %v1036_v19 = vsub.f32 %v7381_v5, %v1035_v14 }
 0x10e   :  { %v898_v59 = vpop.f32.mrf.mxu3  ;;  %1032 = vmatpush.msrb.mxu1 %v1031_v6  ;;  %1176 = vmatpush.msra.mxu0 %v987_v52 }
 0x10f   :  { %v899_v9 = vadd.f32 %v898_v59, %v858_v37  ;;  %v1037_v37 = vand.u32 4294901760, %v1036_v19  ;;  %v1048_v59 = vsub.f32 %v7395_v55, %v1047_v4 }
 0x110   :  { %1180 = vmatpush.msra.mxu0 %v993_v12 }
 0x111   :  { %1286 = vxpose.xlu0.b32.start [1/2] (short) %v899_v9, 128  ;;  %v788_v29 = vpop.f32.mrf.mxu1  ;;  %v1043_v9 = vand.u32 4294901760, %v1042_v42  ;;  %1038 = vmatpush.msrb.mxu1 %v1037_v37  ;;  %v1049_v61 = vand.u32 4294901760, %v1048_v59 }
 0x112   :  { %v789_v26 = vadd.f32 %v788_v29, %v744_v16  ;;  %v1054_v16 = vsub.f32 %v7407_v62, %v1053_v24  ;;  %v1060_v29 = vsub.f32 %v7423_v63, %v1059_v34  ;;  %1184 = vmatpush.msra.mxu0 %v999_v2 }
 0x113   :  { %1044 = vmatpush.msrb.mxu1 %v1043_v9 }
 0x114   :  { %v861_v17 = vpop.f32.mrf.mxu2  ;;  %v1055_v39 = vand.u32 4294901760, %v1054_v16  ;;  %v1061_v19 = vand.u32 4294901760, %v1060_v29  ;;  %1188 = vmatpush.msra.mxu0 %v1005_v30 }
 0x115   :  { %v862_v27 = vadd.f32 %v861_v17, %v789_v26  ;;  %v958_v26 = vand.u32 4294901760, %v905_v11  ;;  %1050 = vmatpush.msrb.mxu1 %v1049_v61 }
 0x116   :  { %v902_v33 = vpop.f32.mrf.mxu3  ;;  %1192 = vmatpush.msra.mxu0 %v1011_v10 }
 0x117   :  { %v903_v60 = vadd.f32 %v902_v33, %v862_v27  ;;  %v959_v57 = vsub.f32 %v905_v11, %v958_v26  ;;  %1056 = vmatpush.msrb.mxu1 %v1055_v39 }
 0x118   :  { %1196 = vmatpush.msra.mxu0 %v1017_v25 }
 0x119   :  { %1287 = vxpose.xlu0.b32.end [2/2] (short) %v903_v60, 128  ;;  %1118 = vmatmul.f32.vlgmr.msrb.gmra.mxu2 %v959_v57  ;;  %v960_v46 = vand.u32 4294901760, %v959_v57 }
 0x11a   :  { %1062 = vmatpush.msrb.mxu1 %v1061_v19  ;;  %1200 = vmatpush.msra.mxu0 %v1023_v51 }
 0x11b   :  { %v961_v13 = vsub.f32 %v959_v57, %v960_v46  ;;  %1064 = vmatmul.f32.vlgmr.msrb.gmra.mxu1 %v958_v26  ;;  %1157 = vmatmul.f32.vlgmr.msrb.gmra.mxu3 %v960_v46 }
 0x11c   :  { %1231 = vmatpush.msra.mxu1 %v7264_v28  ;;  %1204 = vmatpush.msra.mxu0 %v1029_v58  ;;  %v10145_v28 = vlaneseq }
 0x11d   :  { %v962_v43 = vand.u32 4294901760, %v961_v13 }
 0x11e   :  { %1233 = vmatpush.msra.mxu1 %v7266_v40  ;;  %1208 = vmatpush.msra.mxu0 %v1035_v14  ;;  %v7506_v40 = vshrl.u32 %v10145_v28, 7 }
 0x11f   :  { %963 = vmatmul.f32.vlgmr.msrb.gmra.mxu0 %v962_v43 }
 0x120   :  { %1235 = vmatpush.msra.mxu1 %v7268_v32  ;;  %1212 = vmatpush.msra.mxu0 %v1041_v22  ;;  %10246 = vst [vmem:[#allocation19_spill] sm:$0xff] %v7506_v40  ;;  %v7509_v32 = vadd.s32 8, %v7506_v40 }
 0x122   :  { %1237 = vmatpush.msra.mxu1 %v7270_v47  ;;  %1216 = vmatpush.msra.mxu0 %v1047_v4  ;;  %10247 = vst [vmem:[#allocation20_spill] sm:$0xff] %v7509_v32  ;;  %v6464_v47 = vld [vmem:[%s10119_s3] ss:$0 sm:$0xff] }
 0x123   :  { %vm7515_vm0 = vcmp.eq.s32.totalorder %v7509_v32, %v6464_v47  ;;  %vm7523_vm1 = vcmp.eq.s32.totalorder %v7506_v40, %v6464_v47 }
 0x124   :  { %1239 = vmatpush.msra.mxu1 %v7272_v41  ;;  %1220 = vmatpush.msra.mxu0 %v1053_v24 }
 0x125   :  { %6446 = vmatpush.msk.msra.mxu2 %vm7515_vm0, %v10148_v49 }
 0x126   :  { %1241 = vmatpush.msra.mxu1 %v7274_v50  ;;  %1224 = vmatpush.msra.mxu0 %v1059_v34  ;;  %v10146_v50 = vmov 0.0  }
 0x127   :  { %1226 = vmatmul.f32.vlgmr.msra.gmra.mxu0 %v958_v26  ;;  %v6403_v56 = vsel %vm7523_vm1, 1.0, %v10146_v50  ;;  %6447 = vmatpush.msk.msra.mxu2 %vm7523_vm1, %v10148_v49 }
 0x128   :  { %1243 = vmatpush.msra.mxu1 %v7286_v0  ;;  %v6404_v0 = vsel %vm7515_vm0, 1.0, %v10146_v50  ;;  %v1535_v38 = vsub.f32 %v6403_v56, %v6403_v56  ;;  %6407 = vmatpush.msk.msrb.mxu0 %vm7515_vm0, %v10148_v49 }
 0x129   :  { %v1529_v21 = vsub.f32 %v6404_v0, %v6404_v0 }
 0x12a   :  { %1245 = vmatpush.msra.mxu1 %v7302_v8  ;;  %v1536_v52 = vand.u32 4294901760, %v1535_v38  ;;  %6408 = vmatpush.msk.msrb.mxu0 %vm7523_vm1, %v10148_v49 }
 0x12b   :  { %v1530_v53 = vand.u32 4294901760, %v1529_v21 }
 0x12c   :  { %1247 = vmatpush.msra.mxu1 %v7338_v23  ;;  %v1537_v12 = vsub.f32 %v1535_v38, %v1536_v52  ;;  %1621 = vmatpush.msra.mxu0 %v1529_v21 }
 0x12d   :  { %v1531_v8 = vsub.f32 %v1529_v21, %v1530_v53  ;;  %1838 = vmatpush.msrb.mxu2 %v1530_v53 }
 0x12e   :  { %1249 = vmatpush.msra.mxu1 %v7344_v7  ;;  %v1538_v2 = vand.u32 4294901760, %v1537_v12  ;;  %1624 = vmatpush.msra.mxu0 %v1535_v38 }
 0x12f   :  { %v1532_v31 = vand.u32 4294901760, %v1531_v8  ;;  %1842 = vmatpush.msrb.mxu2 %v1536_v52 }
 0x130   :  { %1251 = vmatpush.msra.mxu1 %v7346_v15 }
 0x131   :  { %6448 = vmatpush.msra.mxu3 %v1532_v31 }
 0x132   :  { %1253 = vmatpush.msra.mxu1 %v7355_v44 }
 0x133   :  { %6449 = vmatpush.msra.mxu3 %v1538_v2 }
 0x134   :  { %1255 = vmatpush.msra.mxu1 %v7369_v48 }
 0x135   :  { %6411 = vmatpush.msk.msrb.mxu3 %vm7515_vm0, %v10148_v49 }
 0x136   :  { %1257 = vmatpush.msra.mxu1 %v7371_v35 }
 0x137   :  { %6412 = vmatpush.msk.msrb.mxu3 %vm7523_vm1, %v10148_v49 }
 0x138   :  { %1259 = vmatpush.msra.mxu1 %v7383_v54 }
 0x13a   :  { %1261 = vmatpush.msra.mxu1 %v7404_v45 }
 0x13b   :  { %1263 = vmatmul.f32.vlgmr.msra.gmra.mxu1 %v958_v26 }
 0x13c   :  { %1533 = vmatpush.msrb.mxu1 %v1532_v31 }
 0x13e   :  { %1539 = vmatpush.msrb.mxu1 %v1538_v2 }
 0x140   :  { %6409 = vmatpush.msk.msra.mxu1 %vm7515_vm0, %v10148_v49 }
 0x142   :  { %6410 = vmatpush.msk.msra.mxu1 %vm7523_vm1, %v10148_v49 }
 0x1b5   :  { %v1302_v30 = vpop.trf.xlu0 }
 0x1b6   :  { %v1320_v23 = vsel %vm1318_vm2, %v1302_v30, 0 }
 0x1b7   :  { %v7555_v7 = vand.u32 4294901760, %v1320_v23 }
 0x1b9   :  { %v1386_v15 = vsub.f32 %v1320_v23, %v7555_v7  ;;  %1541 = vmatmul.f32.vlgmr.msrb.gmra.mxu1 %v7555_v7 }
 0x1bb   :  { %v1387_v10 = vand.u32 4294901760, %v1386_v15 }
 0x1bd   :  { %v1388_v20 = vsub.f32 %v1386_v15, %v1387_v10  ;;  %v1303_v44 = vpop.trf.xlu0 }
 0x1be   :  { %v1323_v3 = vsel %vm1318_vm2, %v1303_v44, 0 }
 0x1bf   :  { %v1389_v25 = vand.u32 4294901760, %v1388_v20  ;;  %v7560_v1 = vand.u32 4294901760, %v1323_v3 }
 0x1c1   :  { %v1394_v48 = vsub.f32 %v1323_v3, %v7560_v1  ;;  %1390 = vmatmul.f32.vlgmr.msrb.gmra.mxu0 %v1389_v25  ;;  %1545 = vmatmul.f32.gmra.mxu1 %v7560_v1 }
 0x1c3   :  { %v1395_v35 = vand.u32 4294901760, %v1394_v48 }
 0x1c5   :  { %v1304_v51 = vpop.trf.xlu0  ;;  %v1396_v5 = vsub.f32 %v1394_v48, %v1395_v35 }
 0x1c6   :  { %v1326_v54 = vsel %vm1318_vm2, %v1304_v51, 0 }
 0x1c7   :  { %v7565_v58 = vand.u32 4294901760, %v1326_v54  ;;  %v1397_v36 = vand.u32 4294901760, %v1396_v5 }
 0x1c9   :  { %v1402_v55 = vsub.f32 %v1326_v54, %v7565_v58  ;;  %1398 = vmatmul.f32.gmra.mxu0 %v1397_v36  ;;  %1549 = vmatmul.f32.vlgmr.msra.gmra.mxu3 %v7565_v58 }
 0x1ca   :  { %1727 = vmatmul.f32.vlgmr.msra.gmra.mxu1 %v1387_v10 }
 0x1cb   :  { %v1403_v14 = vand.u32 4294901760, %v1402_v55 }
 0x1cd   :  { %v1404_v45 = vsub.f32 %v1402_v55, %v1403_v14  ;;  %v1305_v62 = vpop.trf.xlu0 }
 0x1ce   :  { %v1329_v22 = vsel %vm1318_vm2, %v1305_v62, 0 }
 0x1cf   :  { %v1405_v4 = vand.u32 4294901760, %v1404_v45  ;;  %v7570_v63 = vand.u32 4294901760, %v1329_v22 }
 0x1d1   :  { %v1410_v17 = vsub.f32 %v1329_v22, %v7570_v63  ;;  %1406 = vmatmul.f32.vlgmr.msra.gmra.mxu2 %v1405_v4  ;;  %1553 = vmatmul.f32.gmra.mxu3 %v7570_v63  ;;  %v6466_v4 = vld [vmem:[%s10124_s8 + $0x2] ss:$0 sm:$0xff] }
 0x1d2   :  { %1627 = vmatmul.f32.vlgmr.msra.gmra.mxu0 %v1386_v15  ;;  %1733 = vmatmul.f32.gmra.mxu1 %v1395_v35 }
 0x1d3   :  { %v1411_v6 = vand.u32 4294901760, %v1410_v17 }
 0x1d5   :  { %v1306_v42 = vpop.trf.xlu0  ;;  %v1412_v24 = vsub.f32 %v1410_v17, %v1411_v6 }
 0x1d6   :  { %v1332_v27 = vsel %vm1318_vm2, %v1306_v42, 0  ;;  %v1065_v42 = vpop.f32.mrf.mxu1 }
 0x1d7   :  { %v7575_v33 = vand.u32 4294901760, %v1332_v27  ;;  %v1413_v37 = vand.u32 4294901760, %v1412_v24  ;;  %v964_v24 = vpop.f32.mrf.mxu0 }
 0x1d9   :  { %v1418_v59 = vsub.f32 %v1332_v27, %v7575_v33  ;;  %1414 = vmatmul.f32.gmra.mxu2 %v1413_v37  ;;  %1557 = vmatmul.f32.gmra.mxu3 %v7575_v33  ;;  %v965_v27 = vadd.f32 %v6466_v4, %v964_v24 }
 0x1da   :  { %1632 = vmatmul.f32.gmra.mxu0 %v1394_v48  ;;  %1739 = vmatmul.f32.gmra.mxu1 %v1403_v14 }
 0x1db   :  { %v1419_v34 = vand.u32 4294901760, %v1418_v59 }
 0x1dd   :  { %v1307_v60 = vpop.trf.xlu0  ;;  %v1420_v9 = vsub.f32 %v1418_v59, %v1419_v34 }
 0x1de   :  { %v1335_v16 = vsel %vm1318_vm2, %v1307_v60, 0 }
 0x1df   :  { %v7580_v11 = vand.u32 4294901760, %v1335_v16  ;;  %v1421_v61 = vand.u32 4294901760, %v1420_v9  ;;  %v1158_v9 = vpop.f32.mrf.mxu3 }
 0x1e1   :  { %v1426_v29 = vsub.f32 %v1335_v16, %v7580_v11  ;;  %1422 = vmatmul.f32.gmra.mxu2 %v1421_v61  ;;  %1561 = vmatmul.f32.gmra.mxu3 %v7580_v11 }
 0x1e2   :  { %1637 = vmatmul.f32.gmra.mxu0 %v1402_v55  ;;  %1745 = vmatmul.f32.gmra.mxu1 %v1411_v6 }
 0x1e3   :  { %v1427_v26 = vand.u32 4294901760, %v1426_v29 }
 0x1e5   :  { %v1308_v39 = vpop.trf.xlu0  ;;  %v1428_v19 = vsub.f32 %v1426_v29, %v1427_v26 }
 0x1e6   :  { %v1338_v57 = vsel %vm1318_vm2, %v1308_v39, 0 }
 0x1e7   :  { %v7585_v46 = vand.u32 4294901760, %v1338_v57  ;;  %v1429_v13 = vand.u32 4294901760, %v1428_v19 }
 0x1e9   :  { %v1434_v43 = vsub.f32 %v1338_v57, %v7585_v46  ;;  %1430 = vmatmul.f32.gmra.mxu2 %v1429_v13  ;;  %1565 = vmatmul.f32.gmra.mxu3 %v7585_v46  ;;  %v1227_v13 = vpop.f32.mrf.mxu0 }
 0x1ea   :  { %1642 = vmatmul.f32.gmra.mxu0 %v1410_v17  ;;  %1751 = vmatmul.f32.gmra.mxu1 %v1419_v34  ;;  %v1119_v34 = vpop.f32.mrf.mxu2 }
 0x1eb   :  { %v1435_v47 = vand.u32 4294901760, %v1434_v43 }
 0x1ed   :  { %v1309_v41 = vpop.trf.xlu0  ;;  %v1436_v0 = vsub.f32 %v1434_v43, %v1435_v47 }
 0x1ee   :  { %v1341_v21 = vsel %vm1318_vm2, %v1309_v41, 0  ;;  %v1264_v41 = vpop.f32.mrf.mxu1 }
 0x1ef   :  { %v7590_v18 = vand.u32 4294901760, %v1341_v21  ;;  %v1437_v56 = vand.u32 4294901760, %v1436_v0 }
 0x1f1   :  { %v1442_v53 = vsub.f32 %v1341_v21, %v7590_v18  ;;  %1438 = vmatmul.f32.gmra.mxu2 %v1437_v56  ;;  %1569 = vmatmul.f32.gmra.mxu3 %v7590_v18  ;;  %v6467_v56 = vld [vmem:[%s10120_s4] ss:$0 sm:$0xff] }
 0x1f2   :  { %1647 = vmatmul.f32.gmra.mxu0 %v1418_v59  ;;  %1757 = vmatmul.f32.gmra.mxu1 %v1427_v26  ;;  %v1066_v59 = vadd.f32 %v1065_v42, %v965_v27  ;;  %vm7634_vm3 = vcmp.eq.s32.totalorder %v7509_v32, %v6467_v56  ;;  %vm7651_vm4 = vcmp.eq.s32.totalorder %v7506_v40, %v6467_v56 }
 0x1f3   :  { %v1443_v38 = vand.u32 4294901760, %v1442_v53  ;;  %6413 = vmatpush.msk.msrb.mxu0 %vm7634_vm3, %v10148_v49  ;;  %6415 = vmatpush.msk.msra.mxu3 %vm7634_vm3, %v10148_v49 }
 0x1f4   :  { %v1120_v16 = vadd.f32 %v1119_v34, %v1066_v59 }
 0x1f5   :  { %v1310_v8 = vpop.trf.xlu0  ;;  %v1444_v52 = vsub.f32 %v1442_v53, %v1443_v38  ;;  %6414 = vmatpush.msk.msrb.mxu0 %vm7651_vm4, %v10148_v49  ;;  %6416 = vmatpush.msk.msra.mxu3 %vm7651_vm4, %v10148_v49 }
 0x1f6   :  { %v1344_v31 = vsel %vm1318_vm2, %v1310_v8, 0  ;;  %v1159_v39 = vadd.f32 %v1158_v9, %v1120_v16  ;;  %v10252_v8 = vmov 0 }
 0x1f7   :  { %v7595_v12 = vand.u32 4294901760, %v1344_v31  ;;  %v1445_v2 = vand.u32 4294901760, %v1444_v52  ;;  %v10253_v8 = vsel %vm7634_vm3, 4294967295, %v10252_v8 }
 0x1f8   :  { %10254 = vst [vmem:[#allocation21_spill] sm:$0xff] %v10253_v8 }
 0x1f9   :  { %v1450_v30 = vsub.f32 %v1344_v31, %v7595_v12  ;;  %1446 = vmatmul.f32.gmra.mxu2 %v1445_v2  ;;  %1573 = vmatmul.f32.gmra.mxu3 %v7595_v12  ;;  %v6406_v31 = vsel %vm7634_vm3, 1.0, %v10146_v50 }
 0x1fa   :  { %1652 = vmatmul.f32.gmra.mxu0 %v1426_v29  ;;  %1763 = vmatmul.f32.gmra.mxu1 %v1435_v47 }
 0x1fb   :  { %v1451_v23 = vand.u32 4294901760, %v1450_v30 }
 0x1fd   :  { %v1311_v15 = vpop.trf.xlu0  ;;  %v1452_v10 = vsub.f32 %v1450_v30, %v1451_v23 }
 0x1fe   :  { %v1347_v20 = vsel %vm1318_vm2, %v1311_v15, 0  ;;  %v7655_v15 = vsub.f32 %v6406_v31, %v6406_v31 }
 0x1ff   :  { %v7600_v44 = vand.u32 4294901760, %v1347_v20  ;;  %v1453_v3 = vand.u32 4294901760, %v1452_v10  ;;  %v6405_v10 = vsel %vm7651_vm4, 1.0, %v10146_v50 }
 0x200   :  { %10258 = vst [vmem:[#allocation23_spill] sm:$0xff] %v7655_v15  ;;  %2325 = vmatpush.msra.mxu2 %v7655_v15 }
 0x201   :  { %v1458_v25 = vsub.f32 %v1347_v20, %v7600_v44  ;;  %1454 = vmatmul.f32.gmra.mxu2 %v1453_v3  ;;  %1577 = vmatmul.f32.gmra.mxu3 %v7600_v44  ;;  %v7669_v3 = vand.u32 4294901760, %v7655_v15 }
 0x202   :  { %1657 = vmatmul.f32.gmra.mxu0 %v1434_v43  ;;  %1769 = vmatmul.f32.gmra.mxu1 %v1443_v38  ;;  %v1228_v43 = vadd.f32 %v1227_v13, %v1159_v39 }
 0x203   :  { %v1459_v48 = vand.u32 4294901760, %v1458_v25  ;;  %10259 = vst [vmem:[#allocation24_spill] sm:$0xff] %v7669_v3  ;;  %2542 = vmatpush.msra.mxu0 %v7669_v3 }
 0x204   :  { %v1265_v0 = vadd.f32 %v1264_v41, %v1228_v43 }
 0x205   :  { %v1312_v35 = vpop.trf.xlu0  ;;  %v1460_v51 = vsub.f32 %v1458_v25, %v1459_v48 }
 0x206   :  { %v1350_v5 = vsel %vm1318_vm2, %v1312_v35, 0  ;;  %5270 = vxpose.xlu1.b32.start.end [1/1] (short) %v1265_v0, 128 }
 0x207   :  { %v7605_v54 = vand.u32 4294901760, %v1350_v5  ;;  %v1461_v36 = vand.u32 4294901760, %v1460_v51  ;;  %v2235_v51 = vsub.f32 %v7655_v15, %v7669_v3 }
 0x209   :  { %v1466_v55 = vsub.f32 %v1350_v5, %v7605_v54  ;;  %1462 = vmatmul.f32.gmra.mxu2 %v1461_v36  ;;  %1581 = vmatmul.f32.gmra.mxu3 %v7605_v54 }
 0x20a   :  { %1662 = vmatmul.f32.gmra.mxu0 %v1442_v53  ;;  %1775 = vmatmul.f32.gmra.mxu1 %v1451_v23  ;;  %v10255_v23 = vmov 0 }
 0x20b   :  { %v1467_v14 = vand.u32 4294901760, %v1466_v55  ;;  %v10256_v23 = vsel %vm7651_vm4, 4294967295, %v10255_v23 }
 0x20c   :  { %10257 = vst [vmem:[#allocation22_spill] sm:$0xff] %v10256_v23 }
 0x20d   :  { %v1313_v45 = vpop.trf.xlu0  ;;  %v1468_v62 = vsub.f32 %v1466_v55, %v1467_v14 }
 0x20e   :  { %v1353_v22 = vsel %vm1318_vm2, %v1313_v45, 0  ;;  %v7680_v45 = vand.u32 4294901760, %v2235_v51 }
 0x20f   :  { %v7613_v17 = vand.u32 4294901760, %v1353_v22  ;;  %v1469_v6 = vand.u32 4294901760, %v1468_v62 }
 0x210   :  { %10262 = vst [vmem:[#allocation27_spill] sm:$0xff] %v7680_v45  ;;  %2237 = vmatpush.msrb.mxu1 %v7680_v45 }
 0x211   :  { %v7616_v37 = vsub.f32 %v1353_v22, %v7613_v17  ;;  %1470 = vmatmul.f32.gmra.mxu2 %v1469_v6  ;;  %1585 = vmatmul.f32.gmra.mxu3 %v7613_v17 }
 0x212   :  { %1667 = vmatmul.f32.gmra.mxu0 %v1450_v30  ;;  %1781 = vmatmul.f32.gmra.mxu1 %v1459_v48  ;;  %v2007_v48 = vpop.trf.xlu1 }
 0x213   :  { %v1475_v60 = vand.u32 4294901760, %v7616_v37  ;;  %v2024_v43 = vsel %vm1318_vm2, %v2007_v48, 0 }
 0x215   :  { %v1314_v61 = vpop.trf.xlu0  ;;  %v1476_v29 = vsub.f32 %v7616_v37, %v1475_v60 }
 0x216   :  { %v1356_v26 = vsel %vm1318_vm2, %v1314_v61, 0 }
 0x217   :  { %v7622_v19 = vand.u32 4294901760, %v1356_v26  ;;  %v1477_v57 = vand.u32 4294901760, %v1476_v29 }
 0x219   :  { %v7625_v47 = vsub.f32 %v1356_v26, %v7622_v19  ;;  %1478 = vmatmul.f32.gmra.mxu2 %v1477_v57  ;;  %1589 = vmatmul.f32.gmra.mxu3 %v7622_v19 }
 0x21a   :  { %1672 = vmatmul.f32.gmra.mxu0 %v1458_v25  ;;  %1787 = vmatmul.f32.gmra.mxu1 %v1467_v14  ;;  %v7671_v25 = vsub.f32 %v6405_v10, %v6405_v10  ;;  %v2008_v24 = vpop.trf.xlu1 }
 0x21b   :  { %v1483_v21 = vand.u32 4294901760, %v7625_v47 }
 0x21c   :  { %10260 = vst [vmem:[#allocation25_spill] sm:$0xff] %v7671_v25  ;;  %v7676_v5 = vand.u32 4294901760, %v7671_v25  ;;  %2328 = vmatpush.msra.mxu2 %v7671_v25 }
 0x21d   :  { %v1315_v53 = vpop.trf.xlu0  ;;  %v1484_v38 = vsub.f32 %v7625_v47, %v1483_v21 }
 0x21e   :  { %v1359_v52 = vsel %vm1318_vm2, %v1315_v53, 0  ;;  %10261 = vst [vmem:[#allocation26_spill] sm:$0xff] %v7676_v5  ;;  %2546 = vmatpush.msra.mxu0 %v7676_v5  ;;  %v2027_v53 = vsel %vm1318_vm2, %v2008_v24, 0 }
 0x21f   :  { %v7648_v2 = vand.u32 4294901760, %v1359_v52  ;;  %v1485_v30 = vand.u32 4294901760, %v1484_v38 }
 0x221   :  { %v1490_v20 = vsub.f32 %v1359_v52, %v7648_v2  ;;  %1486 = vmatmul.f32.gmra.mxu2 %v1485_v30  ;;  %1593 = vmatmul.f32.gmra.mxu3 %v7648_v2  ;;  %v7719_v30 = vand.u32 4294901760, %v2027_v53 }
 0x222   :  { %1677 = vmatmul.f32.gmra.mxu0 %v1466_v55  ;;  %1793 = vmatmul.f32.gmra.mxu1 %v1475_v60  ;;  %v2241_v55 = vsub.f32 %v7671_v25, %v7676_v5  ;;  %v2009_v61 = vpop.trf.xlu1 }
 0x223   :  { %v1491_v35 = vand.u32 4294901760, %v1490_v20 }
 0x224   :  { %v7690_v6 = vand.u32 4294901760, %v2241_v55 }
 0x225   :  { %v1316_v36 = vpop.trf.xlu0  ;;  %v1492_v14 = vsub.f32 %v1490_v20, %v1491_v35 }
 0x226   :  { %v1362_v62 = vsel %vm1318_vm2, %v1316_v36, 0  ;;  %10263 = vst [vmem:[#allocation28_spill] sm:$0xff] %v7690_v6  ;;  %2243 = vmatpush.msrb.mxu1 %v7690_v6 }
 0x227   :  { %v7687_v22 = vand.u32 4294901760, %v1362_v62  ;;  %v1493_v4 = vand.u32 4294901760, %v1492_v14 }
 0x228   :  { %6417 = vmatpush.msk.msra.mxu1 %vm7634_vm3, %v10148_v49 }
 0x229   :  { %v1498_v42 = vsub.f32 %v1362_v62, %v7687_v22  ;;  %1494 = vmatmul.f32.gmra.mxu2 %v1493_v4  ;;  %1597 = vmatmul.f32.gmra.mxu3 %v7687_v22 }
 0x22a   :  { %1682 = vmatmul.f32.gmra.mxu0 %v7616_v37  ;;  %1799 = vmatmul.f32.gmra.mxu1 %v1483_v21  ;;  %v2010_v13 = vpop.trf.xlu1  ;;  %v7710_v21 = vand.u32 4294901760, %v2024_v43 }
 0x22b   :  { %v1499_v27 = vand.u32 4294901760, %v1498_v42  ;;  %6418 = vmatpush.msk.msra.mxu1 %vm7651_vm4, %v10148_v49 }
 0x22c   :  { %v7715_v56 = vsub.f32 %v2024_v43, %v7710_v21 }
 0x22d   :  { %v1317_v59 = vpop.trf.xlu0  ;;  %v1500_v34 = vsub.f32 %v1498_v42, %v1499_v27 }
 0x22e   :  { %v1365_v60 = vsel %vm1318_vm2, %v1317_v59, 0  ;;  %v10158_v31 = vand.u32 4294901760, %v7715_v56 }
 0x22f   :  { %v7703_v9 = vand.u32 4294901760, %v1365_v60  ;;  %v1501_v37 = vand.u32 4294901760, %v1500_v34 }
 0x230   :  { %v2092_v10 = vsub.f32 %v7715_v56, %v10158_v31 }
 0x231   :  { %v1506_v16 = vsub.f32 %v1365_v60, %v7703_v9  ;;  %1502 = vmatmul.f32.gmra.mxu2 %v1501_v37  ;;  %1601 = vmatmul.f32.gmra.mxu3 %v7703_v9 }
 0x232   :  { %1687 = vmatmul.f32.gmra.mxu0 %v7625_v47  ;;  %1805 = vmatmul.f32.gmra.mxu1 %v1491_v35  ;;  %v2011_v47 = vpop.trf.xlu1  ;;  %v2030_v35 = vsel %vm1318_vm2, %v2009_v61, 0 }
 0x233   :  { %v1507_v29 = vand.u32 4294901760, %v1506_v16  ;;  %v7732_v4 = vand.u32 4294901760, %v2030_v35 }
 0x235   :  { %v1508_v26 = vsub.f32 %v1506_v16, %v1507_v29 }
 0x236   :  { %v1542_v39 = vpop.f32.mrf.mxu1 }
 0x237   :  { %v1509_v57 = vand.u32 4294901760, %v1508_v26 }
 0x239   :  { %1510 = vmatmul.f32.gmra.mxu2 %v1509_v57  ;;  %1927 = vmatmul.f32.vlgmr.msrb.gmra.mxu3 %v7555_v7 }
 0x23a   :  { %1692 = vmatmul.f32.gmra.mxu0 %v1490_v20  ;;  %1811 = vmatmul.f32.gmra.mxu1 %v1499_v27  ;;  %v7728_v20 = vsub.f32 %v2027_v53, %v7719_v30  ;;  %v7740_v27 = vsub.f32 %v2030_v35, %v7732_v4 }
 0x23c   :  { %v10156_v55 = vand.u32 4294901760, %v7728_v20  ;;  %v10155_v26 = vand.u32 4294901760, %v7740_v27 }
 0x23e   :  { %v1391_v41 = vpop.f32.mrf.mxu0  ;;  %v1546_v0 = vpop.f32.mrf.mxu1  ;;  %v2100_v60 = vsub.f32 %v7728_v20, %v10156_v55 }
 0x23f   :  { %v1543_v51 = vadd.f32 %v1542_v39, %v1391_v41 }
 0x240   :  { %v2101_v57 = vand.u32 4294901760, %v2100_v60 }
 0x241   :  { %1844 = vmatmul.f32.vlgmr.msrb.gmra.mxu2 %v7555_v7  ;;  %1931 = vmatmul.f32.gmra.mxu3 %v7560_v1  ;;  %v2012_v7 = vpop.trf.xlu1 }
 0x242   :  { %1697 = vmatmul.f32.gmra.mxu0 %v1498_v42  ;;  %1817 = vmatmul.f32.gmra.mxu1 %v1507_v29 }
 0x246   :  { %v1399_v38 = vpop.f32.mrf.mxu0 }
 0x247   :  { %v1728_v52 = vpop.f32.mrf.mxu1 }
 0x249   :  { %1848 = vmatmul.f32.gmra.mxu2 %v7560_v1  ;;  %1935 = vmatmul.f32.gmra.mxu3 %v7565_v58  ;;  %v2093_v1 = vand.u32 4294901760, %v2092_v10  ;;  %v2013_v24 = vpop.trf.xlu1  ;;  %v2036_v10 = vsel %vm1318_vm2, %v2011_v47, 0 }
 0x24a   :  { %1702 = vmatmul.f32.gmra.mxu0 %v1506_v16  ;;  %2245 = vmatmul.f32.vlgmr.msrb.gmra.mxu1 %v7710_v21  ;;  %v1547_v16 = vadd.f32 %v1546_v0, %v1399_v38  ;;  %v2108_v38 = vsub.f32 %v7740_v27, %v10155_v26 }
 0x24c   :  { %v1550_v48 = vpop.f32.mrf.mxu3 }
 0x24f   :  { %v1628_v36 = vpop.f32.mrf.mxu0  ;;  %v1734_v14 = vpop.f32.mrf.mxu1 }
 0x250   :  { %v1629_v62 = vadd.f32 %v1628_v36, %v1543_v51 }
 0x251   :  { %1852 = vmatmul.f32.gmra.mxu2 %v7565_v58  ;;  %1939 = vmatmul.f32.gmra.mxu3 %v7570_v63  ;;  %v2033_v58 = vsel %vm1318_vm2, %v2010_v13, 0 }
 0x252   :  { %2094 = vmatmul.f32.vlgmr.msrb.gmra.mxu0 %v2093_v1  ;;  %2249 = vmatmul.f32.gmra.mxu1 %v7719_v30  ;;  %v7737_v42 = vadd.f32 %v1728_v52, %v1629_v62  ;;  %v7747_v43 = vand.u32 4294901760, %v2033_v58  ;;  %v7762_v1 = vand.u32 4294901760, %v2036_v10 }
 0x254   :  { %v1407_v59 = vpop.f32.mrf.mxu2  ;;  %v1554_v34 = vpop.f32.mrf.mxu3  ;;  %v7755_v13 = vsub.f32 %v2033_v58, %v7747_v43  ;;  %v7770_v47 = vsub.f32 %v2036_v10, %v7762_v1  ;;  %v2039_v58 = vsel %vm1318_vm2, %v2012_v7, 0 }
 0x255   :  { %v1551_v37 = vadd.f32 %v1550_v48, %v1407_v59 }
 0x256   :  { %v10153_v51 = vand.u32 4294901760, %v7755_v13 }
 0x257   :  { %v1633_v61 = vpop.f32.mrf.mxu0  ;;  %v1740_v29 = vpop.f32.mrf.mxu1 }
 0x258   :  { %v1634_v39 = vadd.f32 %v1633_v61, %v1547_v16  ;;  %v2116_v60 = vsub.f32 %v7755_v13, %v10153_v51  ;;  %v10152_v61 = vand.u32 4294901760, %v7770_v47 }
 0x259   :  { %1856 = vmatmul.f32.gmra.mxu2 %v7570_v63  ;;  %1943 = vmatmul.f32.gmra.mxu3 %v7575_v33  ;;  %v2014_v63 = vpop.trf.xlu1 }
 0x25a   :  { %2102 = vmatmul.f32.gmra.mxu0 %v2101_v57  ;;  %2253 = vmatmul.f32.gmra.mxu1 %v7732_v4  ;;  %v7752_v41 = vadd.f32 %v1734_v14, %v1634_v39  ;;  %v2109_v14 = vand.u32 4294901760, %v2108_v38  ;;  %v2117_v57 = vand.u32 4294901760, %v2116_v60 }
 0x25c   :  { %v1415_v0 = vpop.f32.mrf.mxu2  ;;  %v1558_v53 = vpop.f32.mrf.mxu3 }
 0x25d   :  { %v1555_v52 = vadd.f32 %v1554_v34, %v1415_v0 }
 0x25f   :  { %v1638_v48 = vpop.f32.mrf.mxu0  ;;  %v1746_v35 = vpop.f32.mrf.mxu1 }
 0x260   :  { %v1639_v36 = vadd.f32 %v1638_v48, %v1551_v37 }
 0x261   :  { %1860 = vmatmul.f32.gmra.mxu2 %v7575_v33  ;;  %1947 = vmatmul.f32.gmra.mxu3 %v7580_v11  ;;  %v2015_v0 = vpop.trf.xlu1 }
 0x262   :  { %2110 = vmatmul.f32.gmra.mxu0 %v2109_v14  ;;  %2257 = vmatmul.f32.gmra.mxu1 %v7747_v43  ;;  %v7767_v62 = vadd.f32 %v1740_v29, %v1639_v36  ;;  %v7777_v29 = vand.u32 4294901760, %v2039_v58 }
 0x264   :  { %v1423_v59 = vpop.f32.mrf.mxu2  ;;  %v1562_v34 = vpop.f32.mrf.mxu3  ;;  %v7785_v7 = vsub.f32 %v2039_v58, %v7777_v29 }
 0x265   :  { %v1559_v37 = vadd.f32 %v1558_v53, %v1423_v59 }
 0x266   :  { %v10150_v59 = vand.u32 4294901760, %v7785_v7 }
 0x267   :  { %v1643_v33 = vpop.f32.mrf.mxu0  ;;  %v1752_v16 = vpop.f32.mrf.mxu1 }
 0x268   :  { %v1644_v39 = vadd.f32 %v1643_v33, %v1555_v52  ;;  %v2124_v52 = vsub.f32 %v7770_v47, %v10152_v61 }
 0x269   :  { %1864 = vmatmul.f32.gmra.mxu2 %v7580_v11  ;;  %1951 = vmatmul.f32.gmra.mxu3 %v7585_v46  ;;  %v2042_v11 = vsel %vm1318_vm2, %v2013_v24, 0 }
 0x26a   :  { %2118 = vmatmul.f32.gmra.mxu0 %v2117_v57  ;;  %2261 = vmatmul.f32.gmra.mxu1 %v7762_v1  ;;  %v7782_v38 = vadd.f32 %v1746_v35, %v1644_v39  ;;  %v2125_v33 = vand.u32 4294901760, %v2124_v52  ;;  %v7792_v35 = vand.u32 4294901760, %v2042_v11 }
 0x26c   :  { %v1431_v53 = vpop.f32.mrf.mxu2  ;;  %v1566_v10 = vpop.f32.mrf.mxu3  ;;  %v7800_v24 = vsub.f32 %v2042_v11, %v7792_v35 }
 0x26d   :  { %v1563_v48 = vadd.f32 %v1562_v34, %v1431_v53  ;;  %v2016_v34 = vpop.trf.xlu1 }
 0x26f   :  { %v1648_v36 = vpop.f32.mrf.mxu0  ;;  %v1758_v14 = vpop.f32.mrf.mxu1 }
 0x270   :  { %v1649_v60 = vadd.f32 %v1648_v36, %v1559_v37  ;;  %v2132_v37 = vsub.f32 %v7785_v7, %v10150_v59 }
 0x271   :  { %1868 = vmatmul.f32.gmra.mxu2 %v7585_v46  ;;  %1955 = vmatmul.f32.gmra.mxu3 %v7590_v18  ;;  %v2045_v46 = vsel %vm1318_vm2, %v2014_v63, 0 }
 0x272   :  { %2126 = vmatmul.f32.gmra.mxu0 %v2125_v33  ;;  %2265 = vmatmul.f32.gmra.mxu1 %v7777_v29  ;;  %v7797_v58 = vadd.f32 %v1752_v16, %v1649_v60  ;;  %v10151_v33 = vand.u32 4294901760, %v7800_v24  ;;  %v2133_v16 = vand.u32 4294901760, %v2132_v37  ;;  %v7807_v60 = vand.u32 4294901760, %v2045_v46 }
 0x274   :  { %v1439_v39 = vpop.f32.mrf.mxu2  ;;  %v1570_v57 = vpop.f32.mrf.mxu3 }
 0x275   :  { %v1567_v53 = vadd.f32 %v1566_v10, %v1439_v39  ;;  %v7815_v10 = vsub.f32 %v2045_v46, %v7807_v60 }
 0x277   :  { %v1653_v52 = vpop.f32.mrf.mxu0  ;;  %v1764_v36 = vpop.f32.mrf.mxu1 }
 0x278   :  { %v1654_v28 = vadd.f32 %v1653_v52, %v1563_v48  ;;  %v2140_v48 = vsub.f32 %v7800_v24, %v10151_v33  ;;  %v2048_v52 = vsel %vm1318_vm2, %v2015_v0, 0 }
 0x279   :  { %1872 = vmatmul.f32.gmra.mxu2 %v7590_v18  ;;  %1959 = vmatmul.f32.gmra.mxu3 %v7595_v12  ;;  %v2017_v18 = vpop.trf.xlu1 }
 0x27a   :  { %2134 = vmatmul.f32.gmra.mxu0 %v2133_v16  ;;  %2269 = vmatmul.f32.gmra.mxu1 %v7792_v35  ;;  %v7812_v11 = vadd.f32 %v1758_v14, %v1654_v28  ;;  %v10154_v16 = vand.u32 4294901760, %v7815_v10  ;;  %v2141_v28 = vand.u32 4294901760, %v2140_v48  ;;  %v7822_v14 = vand.u32 4294901760, %v2048_v52 }
 0x27b   :  { %v2051_v48 = vsel %vm1318_vm2, %v2016_v34, 0 }
 0x27c   :  { %v1447_v63 = vpop.f32.mrf.mxu2  ;;  %v1574_v39 = vpop.f32.mrf.mxu3  ;;  %v7830_v0 = vsub.f32 %v2048_v52, %v7822_v14 }
 0x27d   :  { %v1571_v37 = vadd.f32 %v1570_v57, %v1447_v63 }
 0x27f   :  { %v1658_v50 = vpop.f32.mrf.mxu0  ;;  %v1770_v49 = vpop.f32.mrf.mxu1 }
 0x280   :  { %v1659_v59 = vadd.f32 %v1658_v50, %v1567_v53  ;;  %v2148_v50 = vsub.f32 %v7815_v10, %v10154_v16 }
 0x281   :  { %1876 = vmatmul.f32.gmra.mxu2 %v7595_v12  ;;  %1963 = vmatmul.f32.gmra.mxu3 %v7600_v44 }
 0x282   :  { %2142 = vmatmul.f32.gmra.mxu0 %v2141_v28  ;;  %2273 = vmatmul.f32.gmra.mxu1 %v7807_v60  ;;  %v7827_v46 = vadd.f32 %v1764_v36, %v1659_v59  ;;  %v10157_v28 = vand.u32 4294901760, %v7830_v0  ;;  %v2149_v51 = vand.u32 4294901760, %v2148_v50  ;;  %v7837_v59 = vand.u32 4294901760, %v2051_v48  ;;  %v2018_v36 = vpop.trf.xlu1 }
 0x284   :  { %v1455_v57 = vpop.f32.mrf.mxu2  ;;  %v1578_v63 = vpop.f32.mrf.mxu3  ;;  %v7845_v34 = vsub.f32 %v2051_v48, %v7837_v59 }
 0x285   :  { %v1575_v53 = vadd.f32 %v1574_v39, %v1455_v57 }
 0x287   :  { %v1663_v12 = vpop.f32.mrf.mxu0  ;;  %v1776_v33 = vpop.f32.mrf.mxu1 }
 0x288   :  { %v1664_v61 = vadd.f32 %v1663_v12, %v1571_v37  ;;  %v2156_v37 = vsub.f32 %v7830_v0, %v10157_v28 }
 0x289   :  { %1880 = vmatmul.f32.gmra.mxu2 %v7600_v44  ;;  %1967 = vmatmul.f32.gmra.mxu3 %v7605_v54  ;;  %v2054_v44 = vsel %vm1318_vm2, %v2017_v18, 0 }
 0x28a   :  { %2150 = vmatmul.f32.gmra.mxu0 %v2149_v51  ;;  %2277 = vmatmul.f32.gmra.mxu1 %v7822_v14  ;;  %v7842_v52 = vadd.f32 %v1770_v49, %v1664_v61  ;;  %v10159_v51 = vand.u32 4294901760, %v7845_v34  ;;  %v2157_v55 = vand.u32 4294901760, %v2156_v37  ;;  %v7852_v49 = vand.u32 4294901760, %v2054_v44 }
 0x28c   :  { %v1463_v39 = vpop.f32.mrf.mxu2  ;;  %v1582_v57 = vpop.f32.mrf.mxu3  ;;  %v7860_v18 = vsub.f32 %v2054_v44, %v7852_v49 }
 0x28d   :  { %v1579_v50 = vadd.f32 %v1578_v63, %v1463_v39  ;;  %v2019_v63 = vpop.trf.xlu1 }
 0x28f   :  { %v1668_v12 = vpop.f32.mrf.mxu0  ;;  %v1782_v16 = vpop.f32.mrf.mxu1 }
 0x290   :  { %v1669_v26 = vadd.f32 %v1668_v12, %v1575_v53  ;;  %v2164_v53 = vsub.f32 %v7845_v34, %v10159_v51 }
 0x291   :  { %1884 = vmatmul.f32.gmra.mxu2 %v7605_v54  ;;  %1971 = vmatmul.f32.gmra.mxu3 %v7613_v17  ;;  %v2057_v54 = vsel %vm1318_vm2, %v2018_v36, 0 }
 0x292   :  { %2158 = vmatmul.f32.gmra.mxu0 %v2157_v55  ;;  %2281 = vmatmul.f32.gmra.mxu1 %v7837_v59  ;;  %v7857_v61 = vadd.f32 %v1776_v33, %v1669_v26  ;;  %v10163_v55 = vand.u32 4294901760, %v7860_v18  ;;  %v2165_v26 = vand.u32 4294901760, %v2164_v53  ;;  %v7867_v33 = vand.u32 4294901760, %v2057_v54 }
 0x294   :  { %v1471_v48 = vpop.f32.mrf.mxu2  ;;  %v1586_v39 = vpop.f32.mrf.mxu3 }
 0x295   :  { %v1583_v37 = vadd.f32 %v1582_v57, %v1471_v48  ;;  %v7875_v57 = vsub.f32 %v2057_v54, %v7867_v33 }
 0x297   :  { %v1673_v12 = vpop.f32.mrf.mxu0  ;;  %v1788_v28 = vpop.f32.mrf.mxu1 }
 0x298   :  { %v1674_v31 = vadd.f32 %v1673_v12, %v1579_v50  ;;  %v2172_v50 = vsub.f32 %v7860_v18, %v10163_v55  ;;  %v2060_v12 = vsel %vm1318_vm2, %v2019_v63, 0 }
 0x299   :  { %1888 = vmatmul.f32.gmra.mxu2 %v7613_v17  ;;  %1975 = vmatmul.f32.gmra.mxu3 %v7622_v19  ;;  %v2020_v17 = vpop.trf.xlu1 }
 0x29a   :  { %2166 = vmatmul.f32.gmra.mxu0 %v2165_v26  ;;  %2285 = vmatmul.f32.gmra.mxu1 %v7852_v49  ;;  %v7872_v44 = vadd.f32 %v1782_v16, %v1674_v31  ;;  %v10167_v26 = vand.u32 4294901760, %v7875_v57  ;;  %v2173_v31 = vand.u32 4294901760, %v2172_v50  ;;  %v7882_v16 = vand.u32 4294901760, %v2060_v12 }
 0x29b   :  { %v2063_v50 = vsel %vm1318_vm2, %v2020_v17, 0 }
 0x29c   :  { %v1479_v36 = vpop.f32.mrf.mxu2  ;;  %v1590_v48 = vpop.f32.mrf.mxu3  ;;  %v7890_v63 = vsub.f32 %v2060_v12, %v7882_v16 }
 0x29d   :  { %v1587_v53 = vadd.f32 %v1586_v39, %v1479_v36 }
 0x29f   :  { %v1678_v51 = vpop.f32.mrf.mxu0  ;;  %v1794_v40 = vpop.f32.mrf.mxu1 }
 0x2a0   :  { %v1679_v32 = vadd.f32 %v1678_v51, %v1583_v37  ;;  %v2180_v51 = vsub.f32 %v7875_v57, %v10167_v26 }
 0x2a1   :  { %1892 = vmatmul.f32.gmra.mxu2 %v7622_v19  ;;  %1979 = vmatmul.f32.gmra.mxu3 %v7648_v2 }
 0x2a2   :  { %2174 = vmatmul.f32.gmra.mxu0 %v2173_v31  ;;  %2289 = vmatmul.f32.gmra.mxu1 %v7867_v33  ;;  %v7887_v54 = vadd.f32 %v1788_v28, %v1679_v32  ;;  %v10170_v31 = vand.u32 4294901760, %v7890_v63  ;;  %v2181_v15 = vand.u32 4294901760, %v2180_v51  ;;  %v7897_v32 = vand.u32 4294901760, %v2063_v50  ;;  %v2021_v28 = vpop.trf.xlu1 }
 0x2a4   :  { %v1487_v39 = vpop.f32.mrf.mxu2  ;;  %v1594_v36 = vpop.f32.mrf.mxu3 }
 0x2a5   :  { %v1591_v37 = vadd.f32 %v1590_v48, %v1487_v39  ;;  %v7905_v48 = vsub.f32 %v2063_v50, %v7897_v32 }
 0x2a7   :  { %v1683_v19 = vpop.f32.mrf.mxu0  ;;  %v1800_v55 = vpop.f32.mrf.mxu1 }
 0x2a8   :  { %v1684_v8 = vadd.f32 %v1683_v19, %v1587_v53  ;;  %v2188_v53 = vsub.f32 %v7890_v63, %v10170_v31  ;;  %v2066_v19 = vsel %vm1318_vm2, %v2021_v28, 0 }
 0x2a9   :  { %1896 = vmatmul.f32.gmra.mxu2 %v7648_v2  ;;  %1983 = vmatmul.f32.gmra.mxu3 %v7687_v22 }
 0x2aa   :  { %2182 = vmatmul.f32.gmra.mxu0 %v2181_v15  ;;  %2293 = vmatmul.f32.gmra.mxu1 %v7882_v16  ;;  %v7902_v12 = vadd.f32 %v1794_v40, %v1684_v8  ;;  %v10174_v15 = vand.u32 4294901760, %v7905_v48  ;;  %v2189_v45 = vand.u32 4294901760, %v2188_v53  ;;  %v7912_v40 = vand.u32 4294901760, %v2066_v19  ;;  %v2022_v8 = vpop.trf.xlu1 }
 0x2ac   :  { %v1495_v17 = vpop.f32.mrf.mxu2  ;;  %v1598_v39 = vpop.f32.mrf.mxu3 }
 0x2ad   :  { %v1595_v51 = vadd.f32 %v1594_v36, %v1495_v17  ;;  %v7920_v36 = vsub.f32 %v2066_v19, %v7912_v40 }
 0x2af   :  { %v1688_v2 = vpop.f32.mrf.mxu0  ;;  %v1806_v26 = vpop.f32.mrf.mxu1 }
 0x2b0   :  { %v1689_v3 = vadd.f32 %v1688_v2, %v1591_v37  ;;  %v2196_v37 = vsub.f32 %v7905_v48, %v10174_v15 }
 0x2b1   :  { %1900 = vmatmul.f32.gmra.mxu2 %v7687_v22  ;;  %1987 = vmatmul.f32.gmra.mxu3 %v7703_v9  ;;  %v2069_v22 = vsel %vm1318_vm2, %v2022_v8, 0 }
 0x2b2   :  { %2190 = vmatmul.f32.gmra.mxu0 %v2189_v45  ;;  %2297 = vmatmul.f32.gmra.mxu1 %v7897_v32  ;;  %v7917_v50 = vadd.f32 %v1800_v55, %v1689_v3  ;;  %v10176_v45 = vand.u32 4294901760, %v7920_v36  ;;  %v2197_v25 = vand.u32 4294901760, %v2196_v37  ;;  %v7927_v3 = vand.u32 4294901760, %v2069_v22 }
 0x2b3   :  { %v10264_v55 = vand.u32 4294901760, %v7715_v56 }
 0x2b4   :  { %v1503_v28 = vpop.f32.mrf.mxu2  ;;  %v1602_v17 = vpop.f32.mrf.mxu3 }
 0x2b5   :  { %v1599_v53 = vadd.f32 %v1598_v39, %v1503_v28  ;;  %v7936_v39 = vsub.f32 %v2069_v22, %v7927_v3 }
 0x2b7   :  { %v1693_v2 = vpop.f32.mrf.mxu0  ;;  %v1812_v31 = vpop.f32.mrf.mxu1  ;;  %v10177_v15 = vand.u32 4294901760, %v7936_v39 }
 0x2b8   :  { %v1694_v23 = vadd.f32 %v1693_v2, %v1595_v51  ;;  %v2204_v51 = vsub.f32 %v7920_v36, %v10176_v45 }
 0x2b9   :  { %1904 = vmatmul.f32.gmra.mxu2 %v7703_v9  ;;  %2431 = vmatmul.f32.vlgmr.msra.gmra.mxu3 %v10264_v55 }
 0x2ba   :  { %2198 = vmatmul.f32.gmra.mxu0 %v2197_v25  ;;  %2301 = vmatmul.f32.gmra.mxu1 %v7912_v40  ;;  %v7933_v19 = vadd.f32 %v1806_v26, %v1694_v23  ;;  %v2205_v25 = vand.u32 4294901760, %v2204_v51  ;;  %v10265_v23 = vand.u32 4294901760, %v7728_v20 }
 0x2bc   :  { %v1511_v8 = vpop.f32.mrf.mxu2  ;;  %v1928_v28 = vpop.f32.mrf.mxu3 }
 0x2bd   :  { %v1603_v37 = vadd.f32 %v1602_v17, %v1511_v8  ;;  %v2212_v17 = vsub.f32 %v7936_v39, %v10177_v15 }
 0x2bf   :  { %v1698_v2 = vpop.f32.mrf.mxu0  ;;  %v1818_v9 = vpop.f32.mrf.mxu1  ;;  %v2213_v45 = vand.u32 4294901760, %v2212_v17 }
 0x2c0   :  { %v1699_v55 = vadd.f32 %v1698_v2, %v1599_v53 }
 0x2c1   :  { %2331 = vmatmul.f32.vlgmr.msra.gmra.mxu2 %v7715_v56  ;;  %2437 = vmatmul.f32.gmra.mxu3 %v10265_v23 }
 0x2c2   :  { %2206 = vmatmul.f32.gmra.mxu0 %v2205_v25  ;;  %2305 = vmatmul.f32.gmra.mxu1 %v7927_v3  ;;  %v7946_v26 = vadd.f32 %v1812_v31, %v1699_v55  ;;  %v10266_v25 = vand.u32 4294901760, %v7740_v27 }
 0x2c4   :  { %v1845_v22 = vpop.f32.mrf.mxu2  ;;  %v1932_v5 = vpop.f32.mrf.mxu3 }
 0x2c5   :  { %v1846_v8 = vadd.f32 %v1845_v22, %v7737_v42 }
 0x2c7   :  { %v1703_v53 = vpop.f32.mrf.mxu0  ;;  %v2246_v51 = vpop.f32.mrf.mxu1  ;;  %v1929_v2 = vadd.f32 %v1928_v28, %v1846_v8 }
 0x2c8   :  { %v1704_v56 = vadd.f32 %v1703_v53, %v1603_v37 }
 0x2c9   :  { %2336 = vmatmul.f32.gmra.mxu2 %v7728_v20  ;;  %2443 = vmatmul.f32.gmra.mxu3 %v10266_v25  ;;  %v10267_v20 = vand.u32 4294901760, %v7755_v13 }
 0x2ca   :  { %2214 = vmatmul.f32.gmra.mxu0 %v2213_v45  ;;  %2631 = vmatmul.f32.vlgmr.msra.gmra.mxu1 %v7710_v21  ;;  %v7956_v31 = vadd.f32 %v1818_v9, %v1704_v56 }
 0x2cc   :  { %v1849_v55 = vpop.f32.mrf.mxu2  ;;  %v1936_v23 = vpop.f32.mrf.mxu3 }
 0x2cd   :  { %v1850_v15 = vadd.f32 %v1849_v55, %v7752_v41 }
 0x2cf   :  { %v2095_v42 = vpop.f32.mrf.mxu0  ;;  %v2250_v22 = vpop.f32.mrf.mxu1  ;;  %v1933_v6 = vadd.f32 %v1932_v5, %v1850_v15 }
 0x2d0   :  { %v2096_v28 = vadd.f32 %v2095_v42, %v1929_v2 }
 0x2d1   :  { %2341 = vmatmul.f32.gmra.mxu2 %v7740_v27  ;;  %2449 = vmatmul.f32.gmra.mxu3 %v10267_v20  ;;  %v10269_v27 = vand.u32 4294901760, %v7770_v47 }
 0x2d2   :  { %2548 = vmatmul.f32.vlgmr.msra.gmra.mxu0 %v7710_v21  ;;  %2635 = vmatmul.f32.gmra.mxu1 %v7719_v30  ;;  %v7964_v45 = vadd.f32 %v2246_v51, %v2096_v28 }
 0x2d4   :  { %10268 = vst [vmem:[#allocation29_spill] sm:$0xff] %v7964_v45  ;;  %v1853_v37 = vpop.f32.mrf.mxu2  ;;  %v1940_v9 = vpop.f32.mrf.mxu3 }
 0x2d5   :  { %v1854_v17 = vadd.f32 %v1853_v37, %v7767_v62 }
 0x2d7   :  { %v2103_v41 = vpop.f32.mrf.mxu0  ;;  %v2254_v8 = vpop.f32.mrf.mxu1  ;;  %v1937_v53 = vadd.f32 %v1936_v23, %v1854_v17 }
 0x2d8   :  { %v2104_v5 = vadd.f32 %v2103_v41, %v1933_v6  ;;  %v10271_v6 = vand.u32 4294901760, %v7785_v7 }
 0x2d9   :  { %2346 = vmatmul.f32.gmra.mxu2 %v7755_v13  ;;  %2455 = vmatmul.f32.gmra.mxu3 %v10269_v27 }
 0x2da   :  { %2552 = vmatmul.f32.gmra.mxu0 %v7719_v30  ;;  %2639 = vmatmul.f32.gmra.mxu1 %v7732_v4  ;;  %v7972_v21 = vadd.f32 %v2250_v22, %v2104_v5 }
 0x2dc   :  { %10270 = vst [vmem:[#allocation30_spill] sm:$0xff] %v7972_v21  ;;  %v1857_v15 = vpop.f32.mrf.mxu2  ;;  %v1944_v51 = vpop.f32.mrf.mxu3 }
 0x2dd   :  { %v1858_v2 = vadd.f32 %v1857_v15, %v7782_v38 }
 0x2df   :  { %v2111_v62 = vpop.f32.mrf.mxu0  ;;  %v2258_v56 = vpop.f32.mrf.mxu1  ;;  %v1941_v25 = vadd.f32 %v1940_v9, %v1858_v2 }
 0x2e0   :  { %v2112_v55 = vadd.f32 %v2111_v62, %v1937_v53 }
 0x2e1   :  { %2351 = vmatmul.f32.gmra.mxu2 %v7770_v47  ;;  %2461 = vmatmul.f32.gmra.mxu3 %v10271_v6  ;;  %v10273_v47 = vand.u32 4294901760, %v7800_v24 }
 0x2e2   :  { %2556 = vmatmul.f32.gmra.mxu0 %v7732_v4  ;;  %2643 = vmatmul.f32.gmra.mxu1 %v7747_v43  ;;  %v7980_v30 = vadd.f32 %v2254_v8, %v2112_v55 }
 0x2e4   :  { %10272 = vst [vmem:[#allocation31_spill] sm:$0xff] %v7980_v30  ;;  %v1861_v13 = vpop.f32.mrf.mxu2  ;;  %v1948_v23 = vpop.f32.mrf.mxu3 }
 0x2e5   :  { %v1862_v42 = vadd.f32 %v1861_v13, %v7797_v58 }
 0x2e7   :  { %v2119_v38 = vpop.f32.mrf.mxu0  ;;  %v2262_v22 = vpop.f32.mrf.mxu1  ;;  %v1945_v28 = vadd.f32 %v1944_v51, %v1862_v42 }
 0x2e8   :  { %v2120_v20 = vadd.f32 %v2119_v38, %v1941_v25 }
 0x2e9   :  { %2356 = vmatmul.f32.gmra.mxu2 %v7785_v7  ;;  %2467 = vmatmul.f32.gmra.mxu3 %v10273_v47  ;;  %v10275_v7 = vand.u32 4294901760, %v7815_v10 }
 0x2ea   :  { %2560 = vmatmul.f32.gmra.mxu0 %v7747_v43  ;;  %2647 = vmatmul.f32.gmra.mxu1 %v7762_v1  ;;  %v7988_v4 = vadd.f32 %v2258_v56, %v2120_v20 }
 0x2ec   :  { %10274 = vst [vmem:[#allocation32_spill] sm:$0xff] %v7988_v4  ;;  %v1865_v37 = vpop.f32.mrf.mxu2  ;;  %v1952_v9 = vpop.f32.mrf.mxu3 }
 0x2ed   :  { %v1866_v17 = vadd.f32 %v1865_v37, %v7812_v11 }
 0x2ef   :  { %v2127_v58 = vpop.f32.mrf.mxu0  ;;  %v2266_v41 = vpop.f32.mrf.mxu1  ;;  %v1949_v8 = vadd.f32 %v1948_v23, %v1866_v17 }
 0x2f0   :  { %v2128_v53 = vadd.f32 %v2127_v58, %v1945_v28 }
 0x2f1   :  { %2361 = vmatmul.f32.gmra.mxu2 %v7800_v24  ;;  %2473 = vmatmul.f32.gmra.mxu3 %v10275_v7  ;;  %v10277_v24 = vand.u32 4294901760, %v7830_v0 }
 0x2f2   :  { %2564 = vmatmul.f32.gmra.mxu0 %v7762_v1  ;;  %2651 = vmatmul.f32.gmra.mxu1 %v7777_v29  ;;  %v7996_v43 = vadd.f32 %v2262_v22, %v2128_v53 }
 0x2f4   :  { %10276 = vst [vmem:[#allocation33_spill] sm:$0xff] %v7996_v43  ;;  %v1869_v5 = vpop.f32.mrf.mxu2  ;;  %v1956_v27 = vpop.f32.mrf.mxu3 }
 0x2f5   :  { %v1870_v15 = vadd.f32 %v1869_v5, %v7827_v46  ;;  %v10285_v5 = vand.u32 4294901760, %v7905_v48 }
 0x2f7   :  { %v2135_v11 = vpop.f32.mrf.mxu0  ;;  %v2270_v51 = vpop.f32.mrf.mxu1  ;;  %v1953_v2 = vadd.f32 %v1952_v9, %v1870_v15 }
 0x2f8   :  { %v2136_v62 = vadd.f32 %v2135_v11, %v1949_v8  ;;  %v10284_v8 = vand.u32 4294901760, %v7890_v63  ;;  %v10286_v11 = vand.u32 4294901760, %v7920_v36 }
 0x2f9   :  { %2366 = vmatmul.f32.gmra.mxu2 %v7815_v10  ;;  %2479 = vmatmul.f32.gmra.mxu3 %v10277_v24  ;;  %v10279_v10 = vand.u32 4294901760, %v7845_v34 }
 0x2fa   :  { %2568 = vmatmul.f32.gmra.mxu0 %v7777_v29  ;;  %2655 = vmatmul.f32.gmra.mxu1 %v7792_v35  ;;  %v8004_v1 = vadd.f32 %v2266_v41, %v2136_v62  ;;  %v10287_v62 = vand.u32 4294901760, %v7936_v39 }
 0x2fc   :  { %10278 = vst [vmem:[#allocation34_spill] sm:$0xff] %v8004_v1  ;;  %v1873_v56 = vpop.f32.mrf.mxu2  ;;  %v8006_v25 = vpop.f32.mrf.mxu3 }
 0x2fd   :  { %v1874_v46 = vadd.f32 %v1873_v56, %v7842_v52 }
 0x2ff   :  { %v2143_v55 = vpop.f32.mrf.mxu0  ;;  %v2274_v6 = vpop.f32.mrf.mxu1  ;;  %v1957_v13 = vadd.f32 %v1956_v27, %v1874_v46 }
 0x300   :  { %v2144_v23 = vadd.f32 %v2143_v55, %v1953_v2 }
 0x301   :  { %2371 = vmatmul.f32.gmra.mxu2 %v7830_v0  ;;  %2485 = vmatmul.f32.gmra.mxu3 %v10279_v10  ;;  %v10281_v0 = vand.u32 4294901760, %v7860_v18 }
 0x302   :  { %2572 = vmatmul.f32.gmra.mxu0 %v7792_v35  ;;  %2659 = vmatmul.f32.gmra.mxu1 %v7807_v60  ;;  %v8014_v29 = vadd.f32 %v2270_v51, %v2144_v23 }
 0x304   :  { %10280 = vst [vmem:[#allocation35_spill] sm:$0xff] %v8014_v29  ;;  %v8016_v42 = vpop.f32.mrf.mxu2  ;;  %v8018_v38 = vpop.f32.mrf.mxu3 }
 0x307   :  { %v2151_v52 = vpop.f32.mrf.mxu0  ;;  %v8020_v22 = vpop.f32.mrf.mxu1 }
 0x308   :  { %v2152_v28 = vadd.f32 %v2151_v52, %v1957_v13 }
 0x309   :  { %2376 = vmatmul.f32.gmra.mxu2 %v7845_v34  ;;  %2491 = vmatmul.f32.gmra.mxu3 %v10281_v0  ;;  %v10283_v34 = vand.u32 4294901760, %v7875_v57 }
 0x30a   :  { %2576 = vmatmul.f32.gmra.mxu0 %v7807_v60  ;;  %2663 = vmatmul.f32.gmra.mxu1 %v7822_v14  ;;  %v8027_v35 = vadd.f32 %v2274_v6, %v2152_v28 }
 0x30c   :  { %10282 = vst [vmem:[#allocation36_spill] sm:$0xff] %v8027_v35  ;;  %v8029_v20 = vpop.f32.mrf.mxu2  ;;  %v8031_v47 = vpop.f32.mrf.mxu3 }
 0x30f   :  { %v8033_v37 = vpop.f32.mrf.mxu0  ;;  %v8035_v9 = vpop.f32.mrf.mxu1 }
 0x311   :  { %2381 = vmatmul.f32.gmra.mxu2 %v7860_v18  ;;  %2497 = vmatmul.f32.gmra.mxu3 %v10283_v34 }
 0x312   :  { %2580 = vmatmul.f32.gmra.mxu0 %v7822_v14  ;;  %2667 = vmatmul.f32.gmra.mxu1 %v7837_v59 }
 0x314   :  { %v8042_v60 = vpop.f32.mrf.mxu2  ;;  %v8044_v17 = vpop.f32.mrf.mxu3 }
 0x317   :  { %v8046_v58 = vpop.f32.mrf.mxu0  ;;  %v8048_v41 = vpop.f32.mrf.mxu1 }
 0x319   :  { %2386 = vmatmul.f32.gmra.mxu2 %v7875_v57  ;;  %2503 = vmatmul.f32.gmra.mxu3 %v10284_v8 }
 0x31a   :  { %2584 = vmatmul.f32.gmra.mxu0 %v7837_v59  ;;  %2671 = vmatmul.f32.gmra.mxu1 %v7852_v49 }
 0x31c   :  { %v8055_v14 = vpop.f32.mrf.mxu2  ;;  %v8057_v18 = vpop.f32.mrf.mxu3 }
 0x31f   :  { %v8059_v53 = vpop.f32.mrf.mxu0  ;;  %v8061_v7 = vpop.f32.mrf.mxu1 }
 0x321   :  { %2391 = vmatmul.f32.gmra.mxu2 %v7890_v63  ;;  %2509 = vmatmul.f32.gmra.mxu3 %v10285_v5 }
 0x322   :  { %2588 = vmatmul.f32.gmra.mxu0 %v7852_v49  ;;  %2675 = vmatmul.f32.gmra.mxu1 %v7867_v33 }
 0x324   :  { %v8068_v59 = vpop.f32.mrf.mxu2  ;;  %v8070_v57 = vpop.f32.mrf.mxu3 }
 0x327   :  { %v8072_v27 = vpop.f32.mrf.mxu0  ;;  %v8074_v15 = vpop.f32.mrf.mxu1 }
 0x329   :  { %2396 = vmatmul.f32.gmra.mxu2 %v7905_v48  ;;  %2515 = vmatmul.f32.gmra.mxu3 %v10286_v11 }
 0x32a   :  { %2592 = vmatmul.f32.gmra.mxu0 %v7867_v33  ;;  %2679 = vmatmul.f32.gmra.mxu1 %v7882_v16 }
 0x32c   :  { %v8081_v49 = vpop.f32.mrf.mxu2  ;;  %v8083_v63 = vpop.f32.mrf.mxu3 }
 0x32f   :  { %v8085_v51 = vpop.f32.mrf.mxu0  ;;  %v8087_v2 = vpop.f32.mrf.mxu1 }
 0x331   :  { %2401 = vmatmul.f32.gmra.mxu2 %v7920_v36  ;;  %2521 = vmatmul.f32.gmra.mxu3 %v10287_v62 }
 0x332   :  { %2596 = vmatmul.f32.gmra.mxu0 %v7882_v16  ;;  %2683 = vmatmul.f32.gmra.mxu1 %v7897_v32 }
 0x334   :  { %v8094_v33 = vpop.f32.mrf.mxu2  ;;  %v8096_v48 = vpop.f32.mrf.mxu3 }
 0x337   :  { %v8098_v24 = vpop.f32.mrf.mxu0  ;;  %v8100_v56 = vpop.f32.mrf.mxu1 }
 0x339   :  { %2406 = vmatmul.f32.gmra.mxu2 %v7936_v39 }
 0x33a   :  { %2600 = vmatmul.f32.gmra.mxu0 %v7897_v32  ;;  %2687 = vmatmul.f32.gmra.mxu1 %v7912_v40 }
 0x33c   :  { %v8105_v36 = vpop.f32.mrf.mxu2  ;;  %v8107_v46 = vpop.f32.mrf.mxu3 }
 0x33d   :  { %10288 = vst [vmem:[#allocation37_spill] sm:$0xff] %v8107_v46 }
 0x33f   :  { %v2207_v16 = vpop.f32.mrf.mxu0  ;;  %v8109_v55 = vpop.f32.mrf.mxu1 }
 0x342   :  { %2604 = vmatmul.f32.gmra.mxu0 %v7912_v40  ;;  %2691 = vmatmul.f32.gmra.mxu1 %v7927_v3 }
 0x344   :  { %v8113_v6 = vpop.f32.mrf.mxu2  ;;  %v8115_v13 = vpop.f32.mrf.mxu3 }
 0x345   :  { %10289 = vst [vmem:[#allocation38_spill] sm:$0xff] %v8113_v6 }
 0x346   :  { %10290 = vst [vmem:[#allocation39_spill] sm:$0xff] %v8115_v13 }
 0x347   :  { %v8117_v39 = vpop.f32.mrf.mxu0  ;;  %v8119_v32 = vpop.f32.mrf.mxu1 }
 0x348   :  { %10291 = vst [vmem:[#allocation40_spill] sm:$0xff] %v8119_v32 }
 0x34a   :  { %2608 = vmatmul.f32.gmra.mxu0 %v7927_v3 }
 0x34c   :  { %v8122_v23 = vpop.f32.mrf.mxu2  ;;  %v8124_v10 = vpop.f32.mrf.mxu3 }
 0x34d   :  { %10292 = vst [vmem:[#allocation41_spill] sm:$0xff] %v8122_v23 }
 0x34e   :  { %10293 = vst [vmem:[#allocation42_spill] sm:$0xff] %v8124_v10 }
 0x34f   :  { %v8126_v52 = vpop.f32.mrf.mxu0  ;;  %v8128_v28 = vpop.f32.mrf.mxu1 }
 0x350   :  { %10294 = vst [vmem:[#allocation43_spill] sm:$0xff] %v8126_v52 }
 0x351   :  { %10295 = vst [vmem:[#allocation44_spill] sm:$0xff] %v8128_v28 }
 0x354   :  { %v8130_v40 = vpop.f32.mrf.mxu2  ;;  %v8132_v0 = vpop.f32.mrf.mxu3 }
 0x355   :  { %10296 = vst [vmem:[#allocation45_spill] sm:$0xff] %v8130_v40 }
 0x356   :  { %10297 = vst [vmem:[#allocation46_spill] sm:$0xff] %v8132_v0 }
 0x357   :  { %v8134_v34 = vpop.f32.mrf.mxu0  ;;  %v8136_v8 = vpop.f32.mrf.mxu1 }
 0x358   :  { %10298 = vst [vmem:[#allocation47_spill] sm:$0xff] %v8134_v34 }
 0x359   :  { %10299 = vst [vmem:[#allocation48_spill] sm:$0xff] %v8136_v8 }
 0x35c   :  { %v8138_v5 = vpop.f32.mrf.mxu2  ;;  %v8140_v11 = vpop.f32.mrf.mxu3 }
 0x35d   :  { %10300 = vst [vmem:[#allocation49_spill] sm:$0xff] %v8138_v5 }
 0x35e   :  { %10301 = vst [vmem:[#allocation50_spill] sm:$0xff] %v8140_v11 }
 0x35f   :  { %v8142_v3 = vpop.f32.mrf.mxu0  ;;  %v8144_v62 = vpop.f32.mrf.mxu1 }
 0x360   :  { %10302 = vst [vmem:[#allocation51_spill] sm:$0xff] %v8142_v3 }
 0x361   :  { %10303 = vst [vmem:[#allocation52_spill] sm:$0xff] %v8144_v62 }
 0x364   :  { %v8146_v32 = vpop.f32.mrf.mxu2  ;;  %v8148_v52 = vpop.f32.mrf.mxu3 }
 0x365   :  { %10304 = vst [vmem:[#allocation53_spill] sm:$0xff] %v8146_v32 }
 0x366   :  { %10305 = vst [vmem:[#allocation54_spill] sm:$0xff] %v8148_v52 }
 0x367   :  { %v8150_v28 = vpop.f32.mrf.mxu0  ;;  %v8152_v46 = vpop.f32.mrf.mxu1 }
 0x368   :  { %10306 = vst [vmem:[#allocation55_spill] sm:$0xff] %v8150_v28 }
 0x369   :  { %10307 = vst [vmem:[#allocation56_spill] sm:$0xff] %v8152_v46 }
 0x36c   :  { %v8154_v13 = vpop.f32.mrf.mxu2  ;;  %v8156_v34 = vpop.f32.mrf.mxu3 }
 0x36d   :  { %10308 = vst [vmem:[#allocation57_spill] sm:$0xff] %v8154_v13 }
 0x36e   :  { %10309 = vst [vmem:[#allocation58_spill] sm:$0xff] %v8156_v34 }
 0x36f   :  { %v8158_v8 = vpop.f32.mrf.mxu0  ;;  %v8160_v6 = vpop.f32.mrf.mxu1 }
 0x370   :  { %10310 = vst [vmem:[#allocation59_spill] sm:$0xff] %v8158_v8 }
 0x371   :  { %10311 = vst [vmem:[#allocation60_spill] sm:$0xff] %v8160_v6 }
 0x374   :  { %v8162_v45 = vpop.f32.mrf.mxu2  ;;  %v8164_v3 = vpop.f32.mrf.mxu3 }
 0x375   :  { %10312 = vst [vmem:[#allocation61_spill] sm:$0xff] %v8162_v45 }
 0x376   :  { %10313 = vst [vmem:[#allocation62_spill] sm:$0xff] %v8164_v3  ;;  %v1902_v3 = vadd.f32 %v8094_v33, %v7946_v26 }
 0x377   :  { %v8166_v62 = vpop.f32.mrf.mxu0  ;;  %v8168_v10 = vpop.f32.mrf.mxu1 }
 0x378   :  { %10314 = vst [vmem:[#allocation63_spill] sm:$0xff] %v8166_v62 }
 0x379   :  { %10315 = vst [vmem:[#allocation64_spill] sm:$0xff] %v8168_v10 }
 0x37c   :  { %v8170_v23 = vpop.f32.mrf.mxu2  ;;  %v8172_v21 = vpop.f32.mrf.mxu3 }
 0x37d   :  { %10316 = vst [vmem:[#allocation65_spill] sm:$0xff] %v8170_v23 }
 0x37e   :  { %10317 = vst [vmem:[#allocation66_spill] sm:$0xff] %v8172_v21 }
 0x37f   :  { %v8174_v46 = vpop.f32.mrf.mxu0  ;;  %v8176_v28 = vpop.f32.mrf.mxu1 }
 0x380   :  { %10318 = vst [vmem:[#allocation67_spill] sm:$0xff] %v8174_v46 }
 0x381   :  { %10319 = vst [vmem:[#allocation68_spill] sm:$0xff] %v8176_v28 }
 0x384   :  { %v8178_v0 = vpop.f32.mrf.mxu2  ;;  %v8184_v6 = vpop.f32.mrf.mxu3 }
 0x385   :  { %10320 = vst [vmem:[#allocation69_spill] sm:$0xff] %v8178_v0 }
 0x386   :  { %10323 = vst [vmem:[#allocation72_spill] sm:$0xff] %v8184_v6  ;;  %v1906_v6 = vadd.f32 %v8105_v36, %v7956_v31 }
 0x387   :  { %v8180_v40 = vpop.f32.mrf.mxu0  ;;  %v8182_v30 = vpop.f32.mrf.mxu1 }
 0x388   :  { %10321 = vst [vmem:[#allocation70_spill] sm:$0xff] %v8180_v40 }
 0x389   :  { %10322 = vst [vmem:[#allocation71_spill] sm:$0xff] %v8182_v30 }
 0x38c   :  { %v8186_v8 = vpop.f32.mrf.mxu2  ;;  %v8192_v4 = vpop.f32.mrf.mxu3 }
 0x38f   :  { %v8188_v11 = vpop.f32.mrf.mxu0  ;;  %v8190_v5 = vpop.f32.mrf.mxu1 }
 0x390   :  { %10324 = vst [vmem:[#allocation73_spill] sm:$0xff] %v8188_v11  ;;  %v1985_v11 = vadd.f32 %v8083_v63, %v1902_v3  ;;  %v1989_v63 = vadd.f32 %v8096_v48, %v1906_v6 }
 0x391   :  { %10325 = vst [vmem:[#allocation74_spill] sm:$0xff] %v8190_v5  ;;  %v1898_v5 = vadd.f32 %v8081_v49, %v7933_v19  ;;  %v1890_v19 = vadd.f32 %v8055_v14, %v7902_v12 }
 0x392   :  { %v2208_v21 = vadd.f32 %v2207_v16, %v1985_v11 }
 0x394   :  { %v8194_v10 = vpop.f32.mrf.mxu2  ;;  %v8200_v43 = vpop.f32.mrf.mxu3  ;;  %v2303_v33 = vadd.f32 %v8100_v56, %v2208_v21  ;;  %v1973_v21 = vadd.f32 %v8044_v17, %v1890_v19 }
 0x396   :  { %v2184_v14 = vadd.f32 %v8072_v27, %v1973_v21 }
 0x397   :  { %v8196_v62 = vpop.f32.mrf.mxu0  ;;  %v8198_v52 = vpop.f32.mrf.mxu1 }
 0x398   :  { %10326 = vst [vmem:[#allocation75_spill] sm:$0xff] %v8196_v62  ;;  %v1981_v62 = vadd.f32 %v8070_v57, %v1898_v5  ;;  %v1886_v57 = vadd.f32 %v8042_v60, %v7887_v54 }
 0x399   :  { %10327 = vst [vmem:[#allocation76_spill] sm:$0xff] %v8198_v52  ;;  %v1894_v52 = vadd.f32 %v8068_v59, %v7917_v50  ;;  %v2216_v59 = vadd.f32 %v8117_v39, %v1989_v63  ;;  %v10328_v63 = vld [vmem:[#allocation69_spill] sm:$0xff] }
 0x39a   :  { %v2200_v26 = vadd.f32 %v8098_v24, %v1981_v62  ;;  %v1969_v6 = vadd.f32 %v8031_v47, %v1886_v57 }
 0x39b   :  { %v1977_v49 = vadd.f32 %v8057_v18, %v1894_v52  ;;  %v2291_v52 = vadd.f32 %v8061_v7, %v2184_v14  ;;  %v10332_v14 = vld [vmem:[#allocation36_spill] sm:$0xff] }
 0x39c   :  { %v2387_v32 = vpop.f32.mrf.mxu2  ;;  %v2504_v13 = vpop.f32.mrf.mxu3  ;;  %v2299_v31 = vadd.f32 %v8087_v2, %v2200_v26  ;;  %v1882_v2 = vadd.f32 %v8029_v20, %v7872_v44  ;;  %v2176_v39 = vadd.f32 %v8059_v53, %v1969_v6  ;;  %v10336_v6 = vld [vmem:[#allocation74_spill] sm:$0xff] }
 0x39d   :  { %v2192_v50 = vadd.f32 %v8085_v51, %v1977_v49  ;;  %v2307_v51 = vadd.f32 %v8109_v55, %v2216_v59  ;;  %v2388_v5 = vadd.f32 %v2387_v32, %v2291_v52 }
 0x39e   :  { %v1965_v55 = vadd.f32 %v8018_v38, %v1882_v2 }
 0x39f   :  { %v8202_v28 = vpop.f32.mrf.mxu0  ;;  %v8204_v46 = vpop.f32.mrf.mxu1 }
 0x3a0   :  { %v2168_v20 = vadd.f32 %v8046_v58, %v1965_v55  ;;  %v10331_v59 = vld [vmem:[#allocation76_spill] sm:$0xff] }
 0x3a2   :  { %v2283_v58 = vadd.f32 %v8035_v9, %v2168_v20  ;;  %v10341_v20 = vld [vmem:[#allocation71_spill] sm:$0xff] }
 0x3a4   :  { %v2392_v34 = vpop.f32.mrf.mxu2  ;;  %v2510_v29 = vpop.f32.mrf.mxu3 }
 0x3a7   :  { %v8206_v1 = vpop.f32.mrf.mxu0  ;;  %v8208_v30 = vpop.f32.mrf.mxu1 }
 0x3ac   :  { %v2397_v40 = vpop.f32.mrf.mxu2  ;;  %v2516_v11 = vpop.f32.mrf.mxu3 }
 0x3ad   :  { %v2398_v24 = vadd.f32 %v2397_v40, %v2299_v31 }
 0x3af   :  { %v2597_v45 = vpop.f32.mrf.mxu0  ;;  %v2684_v23 = vpop.f32.mrf.mxu1  ;;  %v2511_v60 = vadd.f32 %v2510_v29, %v2398_v24  ;;  %v2287_v29 = vadd.f32 %v8048_v41, %v2176_v39 }
 0x3b4   :  { %v2402_v35 = vpop.f32.mrf.mxu2  ;;  %v2522_v3 = vpop.f32.mrf.mxu3 }
 0x3b5   :  { %v2403_v16 = vadd.f32 %v2402_v35, %v2303_v33  ;;  %v2295_v35 = vadd.f32 %v8074_v15, %v2192_v50  ;;  %v1878_v15 = vadd.f32 %v8016_v42, %v7857_v61  ;;  %v2383_v61 = vadd.f32 %v8194_v10, %v2287_v29 }
 0x3b6   :  { %v2499_v42 = vadd.f32 %v8200_v43, %v2388_v5  ;;  %v2378_v10 = vadd.f32 %v8186_v8, %v2283_v58  ;;  %v10339_v5 = vld [vmem:[#allocation62_spill] sm:$0xff]  ;;  %v10345_v58 = vld [vmem:[#allocation67_spill] sm:$0xff] }
 0x3b7   :  { %v2601_v0 = vpop.f32.mrf.mxu0  ;;  %v2688_v56 = vpop.f32.mrf.mxu1  ;;  %v2517_v12 = vadd.f32 %v2516_v11, %v2403_v16  ;;  %v2393_v54 = vadd.f32 %v2392_v34, %v2295_v35  ;;  %v2493_v43 = vadd.f32 %v8192_v4, %v2383_v61  ;;  %v10329_v11 = vld [vmem:[#allocation72_spill] sm:$0xff]  ;;  %v10334_v35 = vld [vmem:[#allocation66_spill] sm:$0xff] }
 0x3b8   :  { %v2602_v27 = vadd.f32 %v2601_v0, %v2511_v60  ;;  %v1961_v0 = vadd.f32 %v8006_v25, %v1878_v15  ;;  %v2594_v41 = vadd.f32 %v8206_v1, %v2499_v42  ;;  %v2487_v50 = vadd.f32 %v10329_v11, %v2378_v10  ;;  %v10338_v15 = vld [vmem:[#allocation61_spill] sm:$0xff]  ;;  %v10342_v61 = vld [vmem:[#allocation34_spill] sm:$0xff] }
 0x3b9   :  { %v2505_v62 = vadd.f32 %v2504_v13, %v2393_v54  ;;  %v2590_v1 = vadd.f32 %v8202_v28, %v2493_v43  ;;  %v10343_v42 = vld [vmem:[#allocation57_spill] sm:$0xff] }
 0x3ba   :  { %v2685_v53 = vadd.f32 %v2684_v23, %v2602_v27  ;;  %v2160_v13 = vadd.f32 %v8033_v37, %v1961_v0  ;;  %v2677_v37 = vadd.f32 %v8204_v46, %v2594_v41  ;;  %v10330_v46 = vld [vmem:[#allocation75_spill] sm:$0xff]  ;;  %v10348_v11 = vld [vmem:[#allocation53_spill] sm:$0xff] }
 0x3bb   :  { %v2598_v34 = vadd.f32 %v2597_v45, %v2505_v62  ;;  %v2586_v28 = vadd.f32 %v10330_v46, %v2487_v50  ;;  %v2673_v31 = vadd.f32 %v10331_v59, %v2590_v1  ;;  %v10340_v62 = vld [vmem:[#allocation70_spill] sm:$0xff] }
 0x3bc   :  { %v2407_v18 = vpop.f32.mrf.mxu2  ;;  %v8254_v23 = vand.u32 4294901760, %v2685_v53  ;;  %v8288_v57 = vand.u32 4294901760, %v2677_v37 }
 0x3bd   :  { %v2408_v17 = vadd.f32 %v2407_v18, %v2307_v51  ;;  %v2681_v45 = vadd.f32 %v8208_v30, %v2598_v34  ;;  %v2279_v30 = vadd.f32 %v8020_v22, %v2160_v13  ;;  %v10333_v18 = vld [vmem:[#allocation65_spill] sm:$0xff]  ;;  %v2669_v54 = vadd.f32 %v10336_v6, %v2586_v28  ;;  %v10350_v28 = vld [vmem:[#allocation63_spill] sm:$0xff]  ;;  %v10354_v6 = vld [vmem:[#allocation50_spill] sm:$0xff] }
 0x3be   :  { %v8276_v4 = vsub.f32 %v2685_v53, %v8254_v23  ;;  %v8304_v60 = vand.u32 4294901760, %v2673_v31  ;;  %v8312_v52 = vsub.f32 %v2677_v37, %v8288_v57 }
 0x3bf   :  { %v2605_v48 = vpop.f32.mrf.mxu0  ;;  %v2523_v44 = vadd.f32 %v2522_v3, %v2408_v17  ;;  %v2692_v38 = vpop.f32.mrf.mxu1  ;;  %v8271_v9 = vand.u32 4294901760, %v2681_v45  ;;  %v2373_v16 = vadd.f32 %v10328_v63, %v2279_v30 }
 0x3c0   :  { %v2606_v36 = vadd.f32 %v2605_v48, %v2517_v12  ;;  %v2758_v12 = vand.u32 4294901760, %v8276_v4  ;;  %v2368_v48 = vadd.f32 %v10333_v18, %v10332_v14  ;;  %v2770_v0 = vand.u32 4294901760, %v8312_v52 }
 0x3c1   :  { %v2481_v51 = vadd.f32 %v10334_v35, %v2373_v16  ;;  %v10347_v16 = vld [vmem:[#allocation33_spill] sm:$0xff] }
 0x3c2   :  { %v2689_v40 = vadd.f32 %v2688_v56, %v2606_v36  ;;  %v8295_v56 = vsub.f32 %v2681_v45, %v8271_v9  ;;  %v10335_v36 = vld [vmem:[#allocation73_spill] sm:$0xff]  ;;  %v2759_v39 = vsub.f32 %v8276_v4, %v2758_v12  ;;  %v2475_v3 = vadd.f32 %v10339_v5, %v2368_v48  ;;  %v10346_v45 = vld [vmem:[#allocation68_spill] sm:$0xff] }
 0x3c3   :  { %v2582_v2 = vadd.f32 %v10335_v36, %v2481_v51  ;;  %v2771_v1 = vsub.f32 %v8312_v52, %v2770_v0  ;;  %v2353_v50 = vadd.f32 %v10348_v11, %v10347_v16  ;;  %v10352_v51 = vld [vmem:[#allocation32_spill] sm:$0xff]  ;;  %v10353_v36 = vld [vmem:[#allocation49_spill] sm:$0xff] }
 0x3c4   :  { %v8245_v26 = vand.u32 4294901760, %v2689_v40  ;;  %v2764_v27 = vand.u32 4294901760, %v8295_v56  ;;  %v2760_v34 = vand.u32 4294901760, %v2759_v39  ;;  %v10363_v16 = vld [vmem:[#allocation41_spill] sm:$0xff] }
 0x3c5   :  { %v2665_v29 = vadd.f32 %v10341_v20, %v2582_v2  ;;  %v2772_v14 = vand.u32 4294901760, %v2771_v1  ;;  %v2348_v2 = vadd.f32 %v10353_v36, %v10352_v51  ;;  %v10357_v20 = vld [vmem:[#allocation31_spill] sm:$0xff]  ;;  %v10362_v1 = vld [vmem:[#allocation30_spill] sm:$0xff] }
 0x3c6   :  { %v8259_v25 = vsub.f32 %v2689_v40, %v8245_v26  ;;  %v10337_v40 = vld [vmem:[#allocation35_spill] sm:$0xff]  ;;  %v2765_v53 = vsub.f32 %v8295_v56, %v2764_v27  ;;  %v2338_v11 = vadd.f32 %v10363_v16, %v10362_v1 }
 0x3c7   :  { %v2609_v47 = vpop.f32.mrf.mxu0  ;;  %v2363_v55 = vadd.f32 %v10338_v15, %v10337_v40  ;;  %v8338_v43 = vand.u32 4294901760, %v2665_v29  ;;  %v10356_v40 = vld [vmem:[#allocation60_spill] sm:$0xff] }
 0x3c8   :  { %v2610_v7 = vadd.f32 %v2609_v47, %v2523_v44  ;;  %v2752_v49 = vand.u32 4294901760, %v8259_v25  ;;  %v2578_v44 = vadd.f32 %v10340_v62, %v2475_v3  ;;  %v8321_v47 = vand.u32 4294901760, %v2669_v54 }
 0x3c9   :  { %v2766_v30 = vand.u32 4294901760, %v2765_v53  ;;  %v8363_v48 = vsub.f32 %v2665_v29, %v8338_v43  ;;  %v10358_v29 = vld [vmem:[#allocation45_spill] sm:$0xff]  ;;  %v10359_v53 = vld [vmem:[#allocation46_spill] sm:$0xff] }
 0x3ca   :  { %v2693_v32 = vadd.f32 %v2692_v38, %v2610_v7  ;;  %v2753_v24 = vsub.f32 %v8259_v25, %v2752_v49  ;;  %v8329_v7 = vsub.f32 %v2673_v31, %v8304_v60  ;;  %v2358_v38 = vadd.f32 %v10343_v42, %v10342_v61  ;;  %v10351_v31 = vld [vmem:[#allocation64_spill] sm:$0xff]  ;;  %v10360_v42 = vld [vmem:[#allocation55_spill] sm:$0xff] }
 0x3cb   :  { %v2661_v10 = vadd.f32 %v10346_v45, %v2578_v44  ;;  %v8346_v37 = vsub.f32 %v2669_v54, %v8321_v47  ;;  %v2457_v54 = vadd.f32 %v10354_v6, %v2353_v50  ;;  %v2788_v44 = vand.u32 4294901760, %v8363_v48  ;;  %v10364_v50 = vld [vmem:[#allocation42_spill] sm:$0xff] }
 0x3cc   :  { %v8256_v33 = vand.u32 4294901760, %v2693_v32  ;;  %v2754_v17 = vand.u32 4294901760, %v2753_v24  ;;  %v2776_v63 = vand.u32 4294901760, %v8329_v7  ;;  %v2451_v61 = vadd.f32 %v10359_v53, %v2348_v2  ;;  %v10367_v2 = vld [vmem:[#allocation29_spill] sm:$0xff]  ;;  %v10368_v6 = vld [vmem:[#allocation38_spill] sm:$0xff] }
 0x3cd   :  { %v8355_v24 = vand.u32 4294901760, %v2661_v10  ;;  %v2782_v35 = vand.u32 4294901760, %v8346_v37  ;;  %v2789_v45 = vsub.f32 %v8363_v48, %v2788_v44 }
 0x3ce   :  { %v8264_v19 = vsub.f32 %v2693_v32, %v8256_v33  ;;  %2696 = vmatpush.xpose.msrb.mxu2 %v8256_v33  ;;  %2909 = vmatpush.xpose.msrb.mxu1 %v8256_v33  ;;  %v10344_v32 = vld [vmem:[#allocation58_spill] sm:$0xff]  ;;  %v2777_v18 = vsub.f32 %v8329_v7, %v2776_v63 }
 0x3cf   :  { %v2469_v13 = vadd.f32 %v10344_v32, %v2363_v55  ;;  %v2783_v3 = vsub.f32 %v8346_v37, %v2782_v35  ;;  %v8380_v62 = vsub.f32 %v2661_v10, %v8355_v24  ;;  %v10361_v32 = vld [vmem:[#allocation56_spill] sm:$0xff] }
 0x3d0   :  { %2851 = vmatpush.xpose.msrb.mxu0 %v8264_v19  ;;  %v2746_v8 = vand.u32 4294901760, %v8264_v19  ;;  %v2778_v5 = vand.u32 4294901760, %v2777_v18 }
 0x3d1   :  { %v2574_v41 = vadd.f32 %v10345_v58, %v2469_v13 }
 0x3d2   :  { %2698 = vmatpush.xpose.msrb.mxu2 %v8245_v26  ;;  %2911 = vmatpush.xpose.msrb.mxu1 %v8245_v26  ;;  %v2747_v22 = vsub.f32 %v8264_v19, %v2746_v8  ;;  %v10379_v19 = vmov 1.0  }
 0x3d4   :  { %2854 = vmatpush.xpose.msrb.mxu0 %v8259_v25  ;;  %v2748_v21 = vand.u32 4294901760, %v2747_v22  ;;  %v10349_v22 = vld [vmem:[#allocation54_spill] sm:$0xff]  ;;  %v10383_v25 = vld [vmem:[#allocation23_spill] sm:$0xff] }
 0x3d5   :  { %v2463_v46 = vadd.f32 %v10349_v22, %v2358_v38  ;;  %v2562_v38 = vadd.f32 %v10360_v42, %v2451_v61  ;;  %v10372_v42 = vld [vmem:[#allocation37_spill] sm:$0xff] }
 0x3d6   :  { %2700 = vmatpush.xpose.msrb.mxu2 %v8254_v23  ;;  %2749 = vmatpush.xpose.msrb.mxu3 %v2748_v21  ;;  %v2657_v21 = vadd.f32 %v10351_v31, %v2574_v41  ;;  %v2784_v41 = vand.u32 4294901760, %v2783_v3  ;;  %v10371_v3 = vld [vmem:[#allocation48_spill] sm:$0xff] }
 0x3d7   :  { %2913 = vmatpush.xpose.msrb.mxu1 %v8254_v23  ;;  %v2570_v59 = vadd.f32 %v10350_v28, %v2463_v46  ;;  %v10365_v46 = vld [vmem:[#allocation51_spill] sm:$0xff] }
 0x3d8   :  { %2857 = vmatpush.xpose.msrb.mxu0 %v8276_v4  ;;  %v8372_v55 = vand.u32 4294901760, %v2657_v21 }
 0x3d9   :  { %v2653_v15 = vadd.f32 %v10356_v40, %v2570_v59  ;;  %v10366_v59 = vld [vmem:[#allocation52_spill] sm:$0xff]  ;;  %v10370_v40 = vld [vmem:[#allocation47_spill] sm:$0xff] }
 0x3da   :  { %2702 = vmatpush.xpose.msrb.mxu2 %v8271_v9  ;;  %2755 = vmatpush.xpose.msrb.mxu3 %v2754_v17  ;;  %v10355_v17 = vld [vmem:[#allocation59_spill] sm:$0xff]  ;;  %v8397_v10 = vsub.f32 %v2657_v21, %v8372_v55  ;;  %v2645_v31 = vadd.f32 %v10366_v59, %v2562_v38  ;;  %v2790_v21 = vand.u32 4294901760, %v2789_v45  ;;  %v10374_v45 = vld [vmem:[#allocation44_spill] sm:$0xff] }
 0x3db   :  { %2915 = vmatpush.xpose.msrb.mxu1 %v8271_v9  ;;  %v2566_v39 = vadd.f32 %v10355_v17, %v2457_v54  ;;  %v8389_v58 = vand.u32 4294901760, %v2653_v15  ;;  %v2333_v54 = vadd.f32 %v10368_v6, %v10367_v2  ;;  %v10369_v17 = vld [vmem:[#allocation39_spill] sm:$0xff] }
 0x3dc   :  { %2860 = vmatpush.xpose.msrb.mxu0 %v8295_v56  ;;  %v2800_v36 = vand.u32 4294901760, %v8397_v10  ;;  %v3091_v56 = vld [vmem:[#allocation11 + $0x1f8] sm:$0xff] }
 0x3dd   :  { %v2649_v13 = vadd.f32 %v10361_v32, %v2566_v39  ;;  %v8414_v51 = vsub.f32 %v2653_v15, %v8389_v58  ;;  %v2439_v39 = vadd.f32 %v10369_v17, %v2338_v11  ;;  %v2433_v38 = vadd.f32 %v10372_v42, %v2333_v54  ;;  %v10373_v32 = vld [vmem:[#allocation43_spill] sm:$0xff] }
 0x3de   :  { %2704 = vmatpush.xpose.msrb.mxu2 %v8288_v57  ;;  %2761 = vmatpush.xpose.msrb.mxu3 %v2760_v34  ;;  %v2343_v34 = vadd.f32 %v10358_v29, %v10357_v20  ;;  %v8423_v29 = vand.u32 4294901760, %v2645_v31 }
 0x3df   :  { %2917 = vmatpush.xpose.msrb.mxu1 %v8288_v57  ;;  %v2806_v61 = vand.u32 4294901760, %v8414_v51 }
 0x3e0   :  { %2863 = vmatpush.xpose.msrb.mxu0 %v8312_v52  ;;  %v2445_v22 = vadd.f32 %v10364_v50, %v2343_v34  ;;  %v2801_v34 = vsub.f32 %v8397_v10, %v2800_v36  ;;  %v8446_v50 = vsub.f32 %v2645_v31, %v8423_v29  ;;  %v8552_v52 = vand.u32 4294901760, %v3091_v56 }
 0x3e2   :  { %2706 = vmatpush.xpose.msrb.mxu2 %v8304_v60  ;;  %2767 = vmatpush.xpose.msrb.mxu3 %v2766_v30  ;;  %v2794_v30 = vand.u32 4294901760, %v8380_v62  ;;  %v2558_v28 = vadd.f32 %v10365_v46, %v2445_v22  ;;  %v2802_v11 = vand.u32 4294901760, %v2801_v34  ;;  %v10375_v46 = vld [vmem:[#allocation40_spill] sm:$0xff]  ;;  %v2818_v2 = vand.u32 4294901760, %v8446_v50 }
 0x3e3   :  { %2919 = vmatpush.xpose.msrb.mxu1 %v8304_v60 }
 0x3e4   :  { %2866 = vmatpush.xpose.msrb.mxu0 %v8329_v7  ;;  %v2795_v18 = vsub.f32 %v8380_v62, %v2794_v30  ;;  %v2641_v20 = vadd.f32 %v10371_v3, %v2558_v28  ;;  %v2819_v17 = vsub.f32 %v8446_v50, %v2818_v2  ;;  %v3085_v7 = vld [vmem:[#allocation11 + $0x180] sm:$0xff] }
 0x3e6   :  { %2708 = vmatpush.xpose.msrb.mxu2 %v8321_v47  ;;  %2773 = vmatpush.xpose.msrb.mxu3 %v2772_v14  ;;  %v8406_v14 = vand.u32 4294901760, %v2649_v13  ;;  %v2796_v15 = vand.u32 4294901760, %v2795_v18  ;;  %v8438_v16 = vand.u32 4294901760, %v2641_v20 }
 0x3e7   :  { %2921 = vmatpush.xpose.msrb.mxu1 %v8321_v47 }
 0x3e8   :  { %2869 = vmatpush.xpose.msrb.mxu0 %v8346_v37  ;;  %v8431_v53 = vsub.f32 %v2649_v13, %v8406_v14  ;;  %v2807_v13 = vsub.f32 %v8414_v51, %v2806_v61  ;;  %v8459_v31 = vsub.f32 %v2641_v20, %v8438_v16 }
 0x3ea   :  { %2710 = vmatpush.xpose.msrb.mxu2 %v8338_v43  ;;  %2779 = vmatpush.xpose.msrb.mxu3 %v2778_v5  ;;  %v2554_v5 = vadd.f32 %v10370_v40, %v2439_v39  ;;  %v2812_v22 = vand.u32 4294901760, %v8431_v53  ;;  %v2824_v40 = vand.u32 4294901760, %v8459_v31 }
 0x3eb   :  { %2923 = vmatpush.xpose.msrb.mxu1 %v8338_v43 }
 0x3ec   :  { %2872 = vmatpush.xpose.msrb.mxu0 %v8363_v48  ;;  %v2637_v1 = vadd.f32 %v10374_v45, %v2554_v5  ;;  %v2813_v18 = vsub.f32 %v8431_v53, %v2812_v22  ;;  %v2820_v5 = vand.u32 4294901760, %v2819_v17  ;;  %v2825_v3 = vsub.f32 %v8459_v31, %v2824_v40  ;;  %v10376_v45 = vld [vmem:[#allocation28_spill] sm:$0xff]  ;;  %v3077_v17 = vld [vmem:[#allocation11 + $0xe0] sm:$0xff] }
 0x3ee   :  { %2712 = vmatpush.xpose.msrb.mxu2 %v8355_v24  ;;  %2785 = vmatpush.xpose.msrb.mxu3 %v2784_v41  ;;  %v2550_v41 = vadd.f32 %v10373_v32, %v2433_v38  ;;  %v8451_v59 = vand.u32 4294901760, %v2637_v1  ;;  %v2814_v54 = vand.u32 4294901760, %v2813_v18  ;;  %v2826_v34 = vand.u32 4294901760, %v2825_v3 }
 0x3ef   :  { %2925 = vmatpush.xpose.msrb.mxu1 %v8355_v24 }
 0x3f0   :  { %2875 = vmatpush.xpose.msrb.mxu0 %v8380_v62  ;;  %v2633_v28 = vadd.f32 %v10375_v46, %v2550_v41  ;;  %v8471_v39 = vsub.f32 %v2637_v1, %v8451_v59  ;;  %v10377_v1 = vld [vmem:[#allocation26_spill] sm:$0xff]  ;;  %v10381_v46 = vld [vmem:[#allocation27_spill] sm:$0xff] }
 0x3f2   :  { %2714 = vmatpush.xpose.msrb.mxu2 %v8372_v55  ;;  %2791 = vmatpush.xpose.msrb.mxu3 %v2790_v21  ;;  %v2808_v21 = vand.u32 4294901760, %v2807_v13  ;;  %v8463_v6 = vand.u32 4294901760, %v2633_v28 }
 0x3f3   :  { %2927 = vmatpush.xpose.msrb.mxu1 %v8372_v55 }
 0x3f4   :  { %2878 = vmatpush.xpose.msrb.mxu0 %v8397_v10  ;;  %v8481_v20 = vsub.f32 %v2633_v28, %v8463_v6  ;;  %v10382_v28 = vld [vmem:[#allocation24_spill] sm:$0xff] }
 0x3f6   :  { %2716 = vmatpush.xpose.msrb.mxu2 %v8389_v58  ;;  %2797 = vmatpush.xpose.msrb.mxu3 %v2796_v15  ;;  %v2830_v15 = vand.u32 4294901760, %v8471_v39  ;;  %v2836_v38 = vand.u32 4294901760, %v8481_v20 }
 0x3f7   :  { %2929 = vmatpush.xpose.msrb.mxu1 %v8389_v58 }
 0x3f8   :  { %2881 = vmatpush.xpose.msrb.mxu0 %v8414_v51  ;;  %v2831_v42 = vsub.f32 %v8471_v39, %v2830_v15  ;;  %v2837_v41 = vsub.f32 %v8481_v20, %v2836_v38 }
 0x3fa   :  { %2718 = vmatpush.xpose.msrb.mxu2 %v8406_v14  ;;  %2803 = vmatpush.xpose.msrb.mxu3 %v2802_v11  ;;  %v2832_v32 = vand.u32 4294901760, %v2831_v42  ;;  %v10378_v11 = vld [vmem:[#allocation25_spill] sm:$0xff]  ;;  %v2838_v13 = vand.u32 4294901760, %v2837_v41  ;;  %v8623_v42 = vand.u32 4294901760, %v3077_v17 }
 0x3fb   :  { %2931 = vmatpush.xpose.msrb.mxu1 %v8406_v14 }
 0x3fc   :  { %2884 = vmatpush.xpose.msrb.mxu0 %v8431_v53 }
 0x3fe   :  { %2720 = vmatpush.xpose.msrb.mxu2 %v8423_v29  ;;  %2809 = vmatpush.xpose.msrb.mxu3 %v2808_v21 }
 0x3ff   :  { %2933 = vmatpush.xpose.msrb.mxu1 %v8423_v29 }
 0x400   :  { %2887 = vmatpush.xpose.msrb.mxu0 %v8446_v50  ;;  %v3081_v50 = vld [vmem:[#allocation11 + $0x130] sm:$0xff] }
 0x402   :  { %2722 = vmatpush.xpose.msrb.mxu2 %v8438_v16  ;;  %2815 = vmatpush.xpose.msrb.mxu3 %v2814_v54 }
 0x403   :  { %2935 = vmatpush.xpose.msrb.mxu1 %v8438_v16 }
 0x404   :  { %2890 = vmatpush.xpose.msrb.mxu0 %v8459_v31 }
 0x406   :  { %2724 = vmatpush.xpose.msrb.mxu2 %v8451_v59  ;;  %2821 = vmatpush.xpose.msrb.mxu3 %v2820_v5 }
 0x407   :  { %2937 = vmatpush.xpose.msrb.mxu1 %v8451_v59 }
 0x408   :  { %2893 = vmatpush.xpose.msrb.mxu0 %v8471_v39 }
 0x40a   :  { %2726 = vmatpush.xpose.msrb.mxu2 %v8463_v6  ;;  %2827 = vmatpush.xpose.msrb.mxu3 %v2826_v34 }
 0x40b   :  { %2939 = vmatpush.xpose.msrb.mxu1 %v8463_v6 }
 0x40c   :  { %2896 = vmatpush.xpose.msrb.mxu0 %v8481_v20 }
 0x40d   :  { %2732 = vmatmul.f32.vlgmr.msrb.gmra.mxu2 %v10376_v45 }
 0x40e   :  { %2956 = vmatpush.xpose.msra.mxu2 %v2746_v8  ;;  %2833 = vmatpush.xpose.msrb.mxu3 %v2832_v32 }
 0x40f   :  { %2943 = vmatmul.f32.vlgmr.msrb.gmra.mxu1 %v10377_v1  ;;  %2899 = vmatmul.f32.vlgmr.msrb.gmra.mxu0 %v10378_v11  ;;  %v3073_v1 = vld [vmem:[#allocation11 + $0x90] sm:$0xff] }
 0x412   :  { %2960 = vmatpush.xpose.msra.mxu2 %v2752_v49  ;;  %2839 = vmatpush.xpose.msrb.mxu3 %v2838_v13  ;;  %v3071_v13 = vld [vmem:[#allocation11 + $0x68] sm:$0xff] }
 0x415   :  { %6419 = vmatmul.msk.f32.vlgmr.msrb.gmra.mxu3 %vm7651_vm4, %v10379_v19  ;;  %2740 = vmatmul.f32.gmra.mxu2 %v10381_v46 }
 0x416   :  { %2964 = vmatpush.xpose.msra.mxu2 %v2758_v12  ;;  %3027 = vmatpush.xpose.msra.mxu3 %v8256_v33  ;;  %v3089_v12 = vld [vmem:[#allocation11 + $0x1d0] sm:$0xff] }
 0x417   :  { %2949 = vmatmul.f32.gmra.mxu1 %v10382_v28  ;;  %2904 = vmatmul.f32.gmra.mxu0 %v10383_v25  ;;  %v8644_v28 = vsub.f32 %v3077_v17, %v8623_v42  ;;  %v8646_v25 = vand.u32 4294901760, %v3073_v1 }
 0x41a   :  { %2968 = vmatpush.xpose.msra.mxu2 %v2764_v27  ;;  %3029 = vmatpush.xpose.msra.mxu3 %v8245_v26  ;;  %v3097_v26 = vld [vmem:[#allocation11 + $0x270] sm:$0xff]  ;;  %v8554_v27 = vand.u32 4294901760, %v3089_v12 }
 0x41b   :  { %v8546_v4 = vand.u32 4294901760, %v3097_v26 }
 0x41c   :  { %v8572_v48 = vsub.f32 %v3089_v12, %v8554_v27  ;;  %v8656_v12 = vand.u32 4294901760, %v3071_v13 }
 0x41d   :  { %6420 = vmatmul.msk.f32.gmra.mxu3 %vm7634_vm3, %v10379_v19  ;;  %3106 = vmatpush.msra.mxu0 %v8546_v4 }
 0x41e   :  { %2972 = vmatpush.xpose.msra.mxu2 %v2770_v0  ;;  %3031 = vmatpush.xpose.msra.mxu3 %v8254_v23  ;;  %v3095_v23 = vld [vmem:[#allocation11 + $0x248] sm:$0xff]  ;;  %v8559_v0 = vsub.f32 %v3097_v26, %v8546_v4  ;;  %v3180_v53 = vand.u32 4294901760, %v8572_v48 }
 0x41f   :  { %v8548_v49 = vand.u32 4294901760, %v3095_v23 }
 0x420   :  { %v3181_v5 = vsub.f32 %v8572_v48, %v3180_v53 }
 0x421   :  { %3108 = vmatpush.msra.mxu0 %v8548_v49 }
 0x422   :  { %2976 = vmatpush.xpose.msra.mxu2 %v2776_v63  ;;  %3033 = vmatpush.xpose.msra.mxu3 %v8271_v9  ;;  %v3093_v9 = vld [vmem:[#allocation11 + $0x220] sm:$0xff]  ;;  %v3083_v63 = vld [vmem:[#allocation11 + $0x158] sm:$0xff] }
 0x426   :  { %2980 = vmatpush.xpose.msra.mxu2 %v2782_v35  ;;  %3035 = vmatpush.xpose.msra.mxu3 %v8288_v57  ;;  %v8550_v57 = vand.u32 4294901760, %v3093_v9  ;;  %v8574_v35 = vand.u32 4294901760, %v3085_v7 }
 0x428   :  { %v8565_v37 = vsub.f32 %v3093_v9, %v8550_v57  ;;  %3110 = vmatpush.msra.mxu0 %v8550_v57  ;;  %v3069_v9 = vld [vmem:[#allocation11 + $0x40] sm:$0xff] }
 0x42a   :  { %2984 = vmatpush.xpose.msra.mxu2 %v2788_v44  ;;  %3037 = vmatpush.xpose.msra.mxu3 %v8304_v60  ;;  %v3087_v60 = vld [vmem:[#allocation11 + $0x1a8] sm:$0xff]  ;;  %v3168_v44 = vand.u32 4294901760, %v8565_v37 }
 0x42b   :  { %3112 = vmatpush.msra.mxu0 %v8552_v52 }
 0x42d   :  { %3114 = vmatpush.msra.mxu0 %v8554_v27 }
 0x42e   :  { %2988 = vmatpush.xpose.msra.mxu2 %v2794_v30  ;;  %3039 = vmatpush.xpose.msra.mxu3 %v8321_v47  ;;  %v8556_v47 = vand.u32 4294901760, %v3087_v60  ;;  %v8587_v30 = vand.u32 4294901760, %v3083_v63 }
 0x430   :  { %v8585_v10 = vsub.f32 %v3087_v60, %v8556_v47  ;;  %v8606_v54 = vsub.f32 %v3083_v63, %v8587_v30  ;;  %3116 = vmatpush.msra.mxu0 %v8556_v47 }
 0x432   :  { %2992 = vmatpush.xpose.msra.mxu2 %v2800_v36  ;;  %3041 = vmatpush.xpose.msra.mxu3 %v8338_v43  ;;  %v8562_v43 = vsub.f32 %v3095_v23, %v8548_v49  ;;  %v3198_v45 = vand.u32 4294901760, %v8606_v54 }
 0x433   :  { %3118 = vmatpush.msra.mxu0 %v8574_v35 }
 0x434   :  { %v3162_v62 = vand.u32 4294901760, %v8562_v43  ;;  %v3199_v23 = vsub.f32 %v8606_v54, %v3198_v45 }
 0x435   :  { %3120 = vmatpush.msra.mxu0 %v8587_v30 }
 0x436   :  { %2996 = vmatpush.xpose.msra.mxu2 %v2806_v61  ;;  %3043 = vmatpush.xpose.msra.mxu3 %v8355_v24  ;;  %v8569_v24 = vsub.f32 %v3091_v56, %v8552_v52  ;;  %v3163_v36 = vsub.f32 %v8562_v43, %v3162_v62  ;;  %v8595_v61 = vsub.f32 %v3085_v7, %v8574_v35  ;;  %v3067_v7 = vld [vmem:[#allocation11 + $0x18] sm:$0xff] }
 0x438   :  { %v3164_v18 = vand.u32 4294901760, %v3163_v36  ;;  %v3192_v3 = vand.u32 4294901760, %v8595_v61 }
 0x43a   :  { %3000 = vmatpush.xpose.msra.mxu2 %v2812_v22  ;;  %3045 = vmatpush.xpose.msra.mxu3 %v8372_v55  ;;  %v3156_v55 = vand.u32 4294901760, %v8559_v0  ;;  %v3079_v22 = vld [vmem:[#allocation11 + $0x108] sm:$0xff]  ;;  %v3193_v11 = vsub.f32 %v8595_v61, %v3192_v3 }
 0x43b   :  { %v8610_v39 = vand.u32 4294901760, %v3079_v22 }
 0x43c   :  { %v3157_v51 = vsub.f32 %v8559_v0, %v3156_v55  ;;  %v3194_v60 = vand.u32 4294901760, %v3193_v11 }
 0x43d   :  { %v8631_v20 = vsub.f32 %v3079_v22, %v8610_v39 }
 0x43e   :  { %3004 = vmatpush.xpose.msra.mxu2 %v2818_v2  ;;  %3047 = vmatpush.xpose.msra.mxu3 %v8389_v58  ;;  %v3174_v58 = vand.u32 4294901760, %v8569_v24  ;;  %v3158_v21 = vand.u32 4294901760, %v3157_v51  ;;  %v3186_v2 = vand.u32 4294901760, %v8585_v10  ;;  %v3200_v51 = vand.u32 4294901760, %v3199_v23 }
 0x43f   :  { %v3210_v56 = vand.u32 4294901760, %v8631_v20 }
 0x440   :  { %v3175_v31 = vsub.f32 %v8569_v24, %v3174_v58  ;;  %3159 = vmatpush.msra.mxu1 %v3158_v21  ;;  %v3187_v41 = vsub.f32 %v8585_v10, %v3186_v2 }
 0x442   :  { %3008 = vmatpush.xpose.msra.mxu2 %v2824_v40  ;;  %3049 = vmatpush.xpose.msra.mxu3 %v8406_v14  ;;  %v3169_v14 = vsub.f32 %v8565_v37, %v3168_v44  ;;  %v8608_v40 = vand.u32 4294901760, %v3081_v50  ;;  %v3176_v32 = vand.u32 4294901760, %v3175_v31  ;;  %v3188_v26 = vand.u32 4294901760, %v3187_v41 }
 0x443   :  { %3165 = vmatpush.msra.mxu1 %v3164_v18 }
 0x444   :  { %v8621_v34 = vsub.f32 %v3081_v50, %v8608_v40  ;;  %3122 = vmatpush.msra.mxu0 %v8608_v40 }
 0x446   :  { %3012 = vmatpush.xpose.msra.mxu2 %v2830_v15  ;;  %3051 = vmatpush.xpose.msra.mxu3 %v8423_v29  ;;  %v3170_v29 = vand.u32 4294901760, %v3169_v14  ;;  %v3075_v15 = vld [vmem:[#allocation11 + $0xb8] sm:$0xff]  ;;  %v3204_v46 = vand.u32 4294901760, %v8621_v34  ;;  %v8682_v14 = vand.u32 4294901760, %v3067_v7 }
 0x447   :  { %3124 = vmatpush.msra.mxu0 %v8610_v39 }
 0x448   :  { %3171 = vmatpush.msra.mxu1 %v3170_v29  ;;  %v3205_v63 = vsub.f32 %v8621_v34, %v3204_v46  ;;  %v8703_v17 = vsub.f32 %v3067_v7, %v8682_v14  ;;  %v3076_v7 = vld [vmem:[#allocation11 + $0xc0] sm:$0xff] }
 0x449   :  { %3126 = vmatpush.msra.mxu0 %v8623_v42 }
 0x44a   :  { %3016 = vmatpush.xpose.msra.mxu2 %v2836_v38  ;;  %3053 = vmatpush.xpose.msra.mxu3 %v8438_v16  ;;  %v8633_v16 = vand.u32 4294901760, %v3075_v15  ;;  %v3182_v38 = vand.u32 4294901760, %v3181_v5  ;;  %v3206_v50 = vand.u32 4294901760, %v3205_v63 }
 0x44b   :  { %3177 = vmatpush.msra.mxu1 %v3176_v32 }
 0x44c   :  { %3128 = vmatpush.msra.mxu0 %v8633_v16 }
 0x44d   :  { %6421 = vmatmul.msk.f32.vlgmr.msra.gmra.mxu2 %vm7651_vm4, %v10379_v19  ;;  %3183 = vmatpush.msra.mxu1 %v3182_v38 }
 0x44e   :  { %3366 = vmatpush.msrb.mxu2 %v3156_v55  ;;  %3055 = vmatpush.xpose.msra.mxu3 %v8451_v59  ;;  %v8654_v59 = vsub.f32 %v3075_v15, %v8633_v16  ;;  %v3216_v55 = vand.u32 4294901760, %v8644_v28 }
 0x44f   :  { %3189 = vmatpush.msra.mxu1 %v3188_v26  ;;  %3130 = vmatpush.msra.mxu0 %v8646_v25  ;;  %v3080_v26 = vld [vmem:[#allocation11 + $0x110] sm:$0xff] }
 0x450   :  { %3370 = vmatpush.msrb.mxu2 %v3162_v62  ;;  %v8667_v62 = vsub.f32 %v3073_v1, %v8646_v25  ;;  %v3222_v36 = vand.u32 4294901760, %v8654_v59  ;;  %v3217_v22 = vsub.f32 %v8644_v28, %v3216_v55 }
 0x451   :  { %3195 = vmatpush.msra.mxu1 %v3194_v60  ;;  %3132 = vmatpush.msra.mxu0 %v8656_v12 }
 0x452   :  { %3374 = vmatpush.msrb.mxu2 %v3168_v44  ;;  %3057 = vmatpush.xpose.msra.mxu3 %v8463_v6  ;;  %v8669_v44 = vand.u32 4294901760, %v3069_v9  ;;  %v3211_v6 = vsub.f32 %v8631_v20, %v3210_v56  ;;  %v3223_v8 = vsub.f32 %v8654_v59, %v3222_v36  ;;  %v3218_v29 = vand.u32 4294901760, %v3217_v22 }
 0x453   :  { %3201 = vmatpush.msra.mxu1 %v3200_v51 }
 0x454   :  { %3378 = vmatpush.msrb.mxu2 %v3174_v58  ;;  %v8680_v58 = vsub.f32 %v3071_v13, %v8656_v12  ;;  %v8694_v21 = vsub.f32 %v3069_v9, %v8669_v44  ;;  %v3212_v18 = vand.u32 4294901760, %v3211_v6  ;;  %v3224_v15 = vand.u32 4294901760, %v3223_v8  ;;  %3134 = vmatpush.msra.mxu0 %v8669_v44  ;;  %v3072_v6 = vld [vmem:[#allocation11 + $0x70] sm:$0xff] }
 0x455   :  { %6422 = vmatmul.msk.f32.gmra.mxu2 %vm7634_vm3, %v10379_v19  ;;  %6423 = vmatmul.msk.f32.vlgmr.msra.gmra.mxu3 %vm7651_vm4, %v10379_v19  ;;  %v8835_v9 = vand.u32 4294901760, %v3080_v26 }
 0x456   :  { %3437 = vmatpush.msrb.mxu3 %v8546_v4  ;;  %3382 = vmatpush.msrb.mxu2 %v3180_v53  ;;  %v3228_v53 = vand.u32 4294901760, %v8667_v62  ;;  %v3234_v31 = vand.u32 4294901760, %v8680_v58  ;;  %v3240_v5 = vand.u32 4294901760, %v8694_v21 }
 0x457   :  { %3207 = vmatpush.msra.mxu1 %v3206_v50  ;;  %3136 = vmatpush.msra.mxu0 %v8682_v14  ;;  %v3070_v50 = vld [vmem:[#allocation11 + $0x48] sm:$0xff] }
 0x458   :  { %3439 = vmatpush.msrb.mxu3 %v8548_v49  ;;  %3386 = vmatpush.msrb.mxu2 %v3186_v2  ;;  %v3229_v2 = vsub.f32 %v8667_v62, %v3228_v53  ;;  %v3235_v32 = vsub.f32 %v8680_v58, %v3234_v31 }
 0x459   :  { %3213 = vmatpush.msra.mxu1 %v3212_v18  ;;  %3261 = vmatpush.msrb.mxu0 %v8559_v0  ;;  %v3068_v18 = vld [vmem:[#allocation11 + $0x20] sm:$0xff] }
 0x45a   :  { %3441 = vmatpush.msrb.mxu3 %v8550_v57  ;;  %3390 = vmatpush.msrb.mxu2 %v3192_v3  ;;  %v3246_v3 = vand.u32 4294901760, %v8703_v17  ;;  %v3230_v41 = vand.u32 4294901760, %v3229_v2  ;;  %v3236_v1 = vand.u32 4294901760, %v3235_v32 }
 0x45b   :  { %3219 = vmatpush.msra.mxu1 %v3218_v29  ;;  %3264 = vmatpush.msrb.mxu0 %v8562_v43 }
 0x45c   :  { %3443 = vmatpush.msrb.mxu3 %v8552_v52  ;;  %3394 = vmatpush.msrb.mxu2 %v3198_v45  ;;  %v3241_v45 = vsub.f32 %v8694_v21, %v3240_v5  ;;  %v3247_v33 = vsub.f32 %v8703_v17, %v3246_v3 }
 0x45d   :  { %6424 = vmatmul.msk.f32.gmra.mxu3 %vm7634_vm3, %v10379_v19  ;;  %3225 = vmatpush.msra.mxu1 %v3224_v15 }
 0x45e   :  { %3445 = vmatpush.msrb.mxu3 %v8554_v27  ;;  %3398 = vmatpush.msrb.mxu2 %v3204_v46  ;;  %v3242_v38 = vand.u32 4294901760, %v3241_v45  ;;  %v3248_v11 = vand.u32 4294901760, %v3247_v33  ;;  %v3082_v46 = vld [vmem:[#allocation11 + $0x138] sm:$0xff] }
 0x45f   :  { %3231 = vmatpush.msra.mxu1 %v3230_v41  ;;  %3267 = vmatpush.msrb.mxu0 %v8565_v37  ;;  %v3092_v37 = vld [vmem:[#allocation11 + $0x200] sm:$0xff] }
 0x460   :  { %3447 = vmatpush.msrb.mxu3 %v8556_v47  ;;  %3402 = vmatpush.msrb.mxu2 %v3210_v56 }
 0x461   :  { %3237 = vmatpush.msra.mxu1 %v3236_v1  ;;  %3270 = vmatpush.msrb.mxu0 %v8569_v24 }
 0x462   :  { %3449 = vmatpush.msrb.mxu3 %v8574_v35  ;;  %3406 = vmatpush.msrb.mxu2 %v3216_v55  ;;  %v8849_v55 = vand.u32 4294901760, %v3076_v7 }
 0x463   :  { %3243 = vmatpush.msra.mxu1 %v3242_v38  ;;  %3273 = vmatpush.msrb.mxu0 %v8572_v48  ;;  %v8793_v48 = vand.u32 4294901760, %v3092_v37 }
 0x464   :  { %3451 = vmatpush.msrb.mxu3 %v8587_v30  ;;  %3410 = vmatpush.msrb.mxu2 %v3222_v36 }
 0x465   :  { %3249 = vmatpush.msra.mxu1 %v3248_v11  ;;  %3276 = vmatpush.msrb.mxu0 %v8585_v10 }
 0x466   :  { %3453 = vmatpush.msrb.mxu3 %v8608_v40  ;;  %3414 = vmatpush.msrb.mxu2 %v3228_v53 }
 0x467   :  { %3319 = vmatpush.msrb.mxu1 %v8546_v4  ;;  %3279 = vmatpush.msrb.mxu0 %v8595_v61  ;;  %v3098_v4 = vld [vmem:[#allocation11 + $0x278] sm:$0xff] }
 0x468   :  { %3455 = vmatpush.msrb.mxu3 %v8610_v39  ;;  %3418 = vmatpush.msrb.mxu2 %v3234_v31  ;;  %v8877_v31 = vand.u32 4294901760, %v3068_v18 }
 0x469   :  { %3321 = vmatpush.msrb.mxu1 %v8548_v49  ;;  %3282 = vmatpush.msrb.mxu0 %v8606_v54  ;;  %v8771_v49 = vand.u32 4294901760, %v3098_v4  ;;  %v3088_v54 = vld [vmem:[#allocation11 + $0x1b0] sm:$0xff] }
 0x46a   :  { %3457 = vmatpush.msrb.mxu3 %v8623_v42  ;;  %3422 = vmatpush.msrb.mxu2 %v3240_v5  ;;  %v8881_v29 = vsub.f32 %v3068_v18, %v8877_v31 }
 0x46b   :  { %3323 = vmatpush.msrb.mxu1 %v8550_v57  ;;  %3285 = vmatpush.msrb.mxu0 %v8621_v34  ;;  %v8775_v57 = vsub.f32 %v3098_v4, %v8771_v49 }
 0x46c   :  { %3459 = vmatpush.msrb.mxu3 %v8633_v16  ;;  %3426 = vmatpush.msrb.mxu2 %v3246_v3 }
 0x46d   :  { %3325 = vmatpush.msrb.mxu1 %v8552_v52  ;;  %3288 = vmatpush.msrb.mxu0 %v8631_v20  ;;  %v3096_v52 = vld [vmem:[#allocation11 + $0x250] sm:$0xff]  ;;  %v3084_v20 = vld [vmem:[#allocation11 + $0x160] sm:$0xff]  ;;  %v3528_v41 = vand.u32 4294901760, %v8775_v57 }
 0x46e   :  { %3461 = vmatpush.msrb.mxu3 %v8646_v25  ;;  %3633 = vmatpush.msra.mxu2 %v8775_v57  ;;  %v8821_v13 = vand.u32 4294901760, %v3084_v20 }
 0x46f   :  { %3327 = vmatpush.msrb.mxu1 %v8554_v27  ;;  %3291 = vmatpush.msrb.mxu0 %v8644_v28  ;;  %v8780_v27 = vand.u32 4294901760, %v3096_v52  ;;  %v3529_v11 = vsub.f32 %v8775_v57, %v3528_v41 }
 0x470   :  { %3463 = vmatpush.msrb.mxu3 %v8656_v12  ;;  %v8825_v28 = vsub.f32 %v3084_v20, %v8821_v13  ;;  %v8895_v20 = vld [vmem:[#allocation8] ss:$0 sm:$0xff] }
 0x471   :  { %3329 = vmatpush.msrb.mxu1 %v8556_v47  ;;  %3294 = vmatpush.msrb.mxu0 %v8654_v59  ;;  %v3094_v47 = vld [vmem:[#allocation11 + $0x228] sm:$0xff]  ;;  %v8783_v0 = vsub.f32 %v3096_v52, %v8780_v27 }
 0x472   :  { %3465 = vmatpush.msrb.mxu3 %v8669_v44  ;;  %v8786_v43 = vand.u32 4294901760, %v3094_v47  ;;  %v3078_v59 = vld [vmem:[#allocation11 + $0xe8] sm:$0xff] }
 0x473   :  { %3331 = vmatpush.msrb.mxu1 %v8574_v35  ;;  %3297 = vmatpush.msrb.mxu0 %v8667_v62  ;;  %v3090_v35 = vld [vmem:[#allocation11 + $0x1d8] sm:$0xff]  ;;  %v8842_v60 = vand.u32 4294901760, %v3078_v59  ;;  %v8853_v62 = vsub.f32 %v3076_v7, %v8849_v55  ;;  %v3534_v45 = vand.u32 4294901760, %v8783_v0 }
 0x474   :  { %3467 = vmatpush.msrb.mxu3 %v8682_v14  ;;  %3636 = vmatpush.msra.mxu2 %v8783_v0  ;;  %v8790_v24 = vsub.f32 %v3094_v47, %v8786_v43  ;;  %v8795_v10 = vand.u32 4294901760, %v3090_v35 }
 0x475   :  { %3333 = vmatpush.msrb.mxu1 %v8587_v30  ;;  %3300 = vmatpush.msrb.mxu0 %v8680_v58  ;;  %v8799_v30 = vsub.f32 %v3092_v37, %v8793_v48  ;;  %v8846_v63 = vsub.f32 %v3078_v59, %v8842_v60  ;;  %v3535_v37 = vsub.f32 %v8783_v0, %v3534_v45 }
 0x476   :  { %3691 = vmatpush.msra.mxu3 %v8771_v49  ;;  %3639 = vmatpush.msra.mxu2 %v8790_v24  ;;  %v8803_v61 = vsub.f32 %v3090_v35, %v8795_v10  ;;  %v3540_v4 = vand.u32 4294901760, %v8790_v24 }
 0x477   :  { %3335 = vmatpush.msrb.mxu1 %v8608_v40  ;;  %3303 = vmatpush.msrb.mxu0 %v8694_v21  ;;  %v8807_v40 = vand.u32 4294901760, %v3088_v54  ;;  %v8870_v21 = vand.u32 4294901760, %v3070_v50  ;;  %v3546_v35 = vand.u32 4294901760, %v8799_v30 }
 0x478   :  { %3693 = vmatpush.msra.mxu3 %v8780_v27  ;;  %3642 = vmatpush.msra.mxu2 %v8799_v30  ;;  %v3552_v59 = vand.u32 4294901760, %v8803_v61 }
 0x479   :  { %3337 = vmatpush.msrb.mxu1 %v8610_v39  ;;  %3306 = vmatpush.msrb.mxu0 %v8703_v17  ;;  %v3086_v39 = vld [vmem:[#allocation11 + $0x188] sm:$0xff]  ;;  %v8811_v34 = vsub.f32 %v3088_v54, %v8807_v40  ;;  %v8874_v8 = vsub.f32 %v3070_v50, %v8870_v21 }
 0x47a   :  { %3695 = vmatpush.msra.mxu3 %v8786_v43  ;;  %3645 = vmatpush.msra.mxu2 %v8803_v61 }
 0x47b   :  { %3339 = vmatpush.msrb.mxu1 %v8623_v42  ;;  %v8814_v42 = vand.u32 4294901760, %v3086_v39  ;;  %v3558_v18 = vand.u32 4294901760, %v8811_v34 }
 0x47c   :  { %3697 = vmatpush.msra.mxu3 %v8793_v48  ;;  %3648 = vmatpush.msra.mxu2 %v8811_v34 }
 0x47d   :  { %3341 = vmatpush.msrb.mxu1 %v8633_v16  ;;  %v8818_v16 = vsub.f32 %v3086_v39, %v8814_v42 }
 0x47e   :  { %3699 = vmatpush.msra.mxu3 %v8795_v10 }
 0x47f   :  { %3343 = vmatpush.msrb.mxu1 %v8646_v25  ;;  %3651 = vmatpush.msra.mxu2 %v8818_v16  ;;  %v8828_v25 = vand.u32 4294901760, %v3082_v46 }
 0x480   :  { %3701 = vmatpush.msra.mxu3 %v8807_v40 }
 0x481   :  { %3345 = vmatpush.msrb.mxu1 %v8656_v12  ;;  %3654 = vmatpush.msra.mxu2 %v8825_v28  ;;  %v8832_v23 = vsub.f32 %v3082_v46, %v8828_v25  ;;  %v8839_v12 = vsub.f32 %v3080_v26, %v8835_v9  ;;  %v3530_v26 = vand.u32 4294901760, %v3529_v11 }
 0x482   :  { %3703 = vmatpush.msra.mxu3 %v8814_v42 }
 0x483   :  { %3347 = vmatpush.msrb.mxu1 %v8669_v44  ;;  %3657 = vmatpush.msra.mxu2 %v8832_v23  ;;  %v3074_v44 = vld [vmem:[#allocation11 + $0x98] sm:$0xff]  ;;  %v10389_v57 = vand.u32 4294901760, %v8839_v12 }
 0x484   :  { %3705 = vmatpush.msra.mxu3 %v8821_v13  ;;  %v8856_v51 = vand.u32 4294901760, %v3074_v44 }
 0x485   :  { %3349 = vmatpush.msrb.mxu1 %v8682_v14  ;;  %3660 = vmatpush.msra.mxu2 %v8839_v12  ;;  %v8863_v14 = vand.u32 4294901760, %v3072_v6 }
 0x486   :  { %3707 = vmatpush.msra.mxu3 %v8828_v25  ;;  %v8860_v58 = vsub.f32 %v3074_v44, %v8856_v51 }
 0x487   :  { %3663 = vmatpush.msra.mxu2 %v8846_v63  ;;  %v8867_v53 = vsub.f32 %v3072_v6, %v8863_v14  ;;  %v3536_v6 = vand.u32 4294901760, %v3535_v37  ;;  %v3570_v37 = vand.u32 4294901760, %v8825_v28 }
 0x488   :  { %3709 = vmatpush.msra.mxu3 %v8835_v9 }
 0x489   :  { %3666 = vmatpush.msra.mxu2 %v8853_v62 }
 0x48a   :  { %3711 = vmatpush.msra.mxu3 %v8842_v60 }
 0x48b   :  { %3669 = vmatpush.msra.mxu2 %v8860_v58 }
 0x48c   :  { %3713 = vmatpush.msra.mxu3 %v8849_v55  ;;  %v2900_v17 = vpop.f32.mrf.mxu0  ;;  %v2944_v5 = vpop.f32.mrf.mxu1 }
 0x48d   :  { %3672 = vmatpush.msra.mxu2 %v8867_v53 }
 0x48e   :  { %3715 = vmatpush.msra.mxu3 %v8856_v51 }
 0x48f   :  { %3675 = vmatpush.msra.mxu2 %v8874_v8 }
 0x490   :  { %v2733_v56 = vpop.f32.mrf.mxu2  ;;  %3717 = vmatpush.msra.mxu3 %v8863_v14 }
 0x491   :  { %3678 = vmatpush.msra.mxu2 %v8881_v29 }
 0x492   :  { %3719 = vmatpush.msra.mxu3 %v8870_v21 }
 0x494   :  { %3721 = vmatpush.msra.mxu3 %v8877_v31  ;;  %v2905_v38 = vpop.f32.mrf.mxu0  ;;  %v2950_v46 = vpop.f32.mrf.mxu1 }
 0x498   :  { %v2842_v36 = vpop.f32.mrf.mxu3  ;;  %v2741_v22 = vpop.f32.mrf.mxu2 }
 0x499   :  { %v2843_v2 = vadd.f32 %v2842_v36, %v2733_v56  ;;  %v3541_v56 = vsub.f32 %v8790_v24, %v3540_v4  ;;  %v3547_v36 = vsub.f32 %v8799_v30, %v3546_v35  ;;  %v3099_v24 = vld [vmem:[%s10124_s8 + $0x3] sm:$0x3]  ;;  %s6663_s8 = smov [#allocation13]  }
 0x49a   :  { %s6388_s1 = sshll.u32 %s6663_s8, 4  ;;  %s6389_s1 = int_to_ptr.vmem [resolvable:$true] %s6388_s1 }
 0x49b   :  { %v2901_v32 = vadd.f32 %v2900_v17, %v2843_v2  ;;  %v10385_v17 = vld [vmem:[#allocation20_spill] sm:$0xff] }
 0x49c   :  { %vm8914_vm5 = vcmp.eq.s32.totalorder %v10385_v17, %v8895_v20 }
 0x49d   :  { %v2945_v1 = vadd.f32 %v2944_v5, %v2901_v32  ;;  %v3542_v5 = vand.u32 4294901760, %v3541_v56  ;;  %v10180_v56 = vand.u32 4294901760, %v8832_v23 }
 0x4a0   :  { %v2846_v15 = vpop.f32.mrf.mxu3 }
 0x4a1   :  { %v2847_v33 = vadd.f32 %v2846_v15, %v2741_v22  ;;  %v3553_v15 = vsub.f32 %v8803_v61, %v3552_v59 }
 0x4a3   :  { %v2906_v54 = vadd.f32 %v2905_v38, %v2847_v33  ;;  %v3548_v38 = vand.u32 4294901760, %v3547_v36  ;;  %v3571_v36 = vsub.f32 %v8825_v28, %v3570_v37 }
 0x4a5   :  { %v2951_v50 = vadd.f32 %v2950_v46, %v2906_v54  ;;  %v3554_v54 = vand.u32 4294901760, %v3553_v15  ;;  %v3577_v15 = vsub.f32 %v8832_v23, %v10180_v56  ;;  %v3606_v56 = vand.u32 4294901760, %v8867_v53 }
 0x4d0   :  { %v3019_v3 = vpop.f32.mrf.mxu2 }
 0x4d1   :  { %v3020_v52 = vadd.f32 %v3019_v3, %v2945_v1  ;;  %v3564_v1 = vand.u32 4294901760, %v8818_v16 }
 0x4d8   :  { %v3060_v47 = vpop.f32.mrf.mxu3  ;;  %v3023_v44 = vpop.f32.mrf.mxu2 }
 0x4d9   :  { %v3061_v39 = vadd.f32 %v3060_v47, %v3020_v52  ;;  %v3024_v32 = vadd.f32 %v3023_v44, %v2951_v50  ;;  %v3559_v47 = vsub.f32 %v8811_v34, %v3558_v18  ;;  %v10179_v50 = vand.u32 4294901760, %v8839_v12 }
 0x4db   :  { %v8901_v7 = vand.u32 4294901760, %v3061_v39 }
 0x4dd   :  { %v8907_v22 = vsub.f32 %v3061_v39, %v8901_v7  ;;  %3251 = vmatmul.f32.vlgmr.msra.gmra.mxu1 %v8901_v7  ;;  %3428 = vmatmul.f32.vlgmr.msrb.gmra.mxu2 %v8901_v7 }
 0x4de   :  { %3469 = vmatmul.f32.vlgmr.msrb.gmra.mxu3 %v8901_v7  ;;  %3531 = vmatpush.msra.mxu1 %v3530_v26  ;;  %v3565_v26 = vsub.f32 %v8818_v16, %v3564_v1 }
 0x4df   :  { %v3139_v3 = vand.u32 4294901760, %v8907_v22  ;;  %6428 = vmatpush.msk.msrb.mxu2 %vm8914_vm5, %v10379_v19 }
 0x4e0   :  { %3537 = vmatpush.msra.mxu1 %v3536_v6  ;;  %v3064_v33 = vpop.f32.mrf.mxu3  ;;  %v3560_v6 = vand.u32 4294901760, %v3559_v47  ;;  %v3566_v17 = vand.u32 4294901760, %v3565_v26 }
 0x4e1   :  { %v3140_v11 = vsub.f32 %v8907_v22, %v3139_v3  ;;  %v3065_v52 = vadd.f32 %v3064_v33, %v3024_v32  ;;  %v3588_v32 = vand.u32 4294901760, %v8846_v63  ;;  %v3572_v33 = vand.u32 4294901760, %v3571_v36 }
 0x4e2   :  { %3543 = vmatpush.msra.mxu1 %v3542_v5 }
 0x4e3   :  { %v8932_v39 = vand.u32 4294901760, %v3065_v52  ;;  %v8934_v46 = vand.u32 4294901760, %v3140_v11  ;;  %v3583_v11 = vsub.f32 %v8839_v12, %v10179_v50  ;;  %v3589_v26 = vsub.f32 %v8846_v63, %v3588_v32 }
 0x4e4   :  { %3549 = vmatpush.msra.mxu1 %v3548_v38 }
 0x4e5   :  { %v8941_v44 = vsub.f32 %v3065_v52, %v8932_v39  ;;  %3142 = vmatmul.f32.vlgmr.msra.gmra.mxu0 %v8934_v46  ;;  %3255 = vmatmul.f32.gmra.mxu1 %v8932_v39  ;;  %v3594_v52 = vand.u32 4294901760, %v8853_v62  ;;  %v3584_v36 = vand.u32 4294901760, %v3583_v11  ;;  %v3607_v11 = vsub.f32 %v8867_v53, %v3606_v56 }
 0x4e6   :  { %3432 = vmatmul.f32.gmra.mxu2 %v8932_v39  ;;  %3473 = vmatmul.f32.gmra.mxu3 %v8932_v39 }
 0x4e7   :  { %3478 = vmatpush.msra.mxu0 %v8771_v49  ;;  %3555 = vmatpush.msra.mxu1 %v3554_v54  ;;  %v3147_v5 = vand.u32 4294901760, %v8941_v44  ;;  %v3578_v54 = vand.u32 4294901760, %v3577_v15  ;;  %v3595_v50 = vsub.f32 %v8853_v62, %v3594_v52 }
 0x4e9   :  { %3480 = vmatpush.msra.mxu0 %v8780_v27  ;;  %3561 = vmatpush.msra.mxu1 %v3560_v6  ;;  %v3148_v38 = vsub.f32 %v8941_v44, %v3147_v5  ;;  %v10181_v6 = vand.u32 4294901760, %v8860_v58 }
 0x4eb   :  { %3482 = vmatpush.msra.mxu0 %v8786_v43  ;;  %3567 = vmatpush.msra.mxu1 %v3566_v17  ;;  %v8964_v47 = vand.u32 4294901760, %v3148_v38  ;;  %v3590_v17 = vand.u32 4294901760, %v3589_v26  ;;  %v3601_v15 = vsub.f32 %v8860_v58, %v10181_v6  ;;  %v3596_v38 = vand.u32 4294901760, %v3595_v50 }
 0x4ed   :  { %3484 = vmatpush.msra.mxu0 %v8793_v48  ;;  %3573 = vmatpush.msra.mxu1 %v3572_v33  ;;  %v3612_v33 = vand.u32 4294901760, %v8874_v8  ;;  %v3602_v26 = vand.u32 4294901760, %v3601_v15 }
 0x4ee   :  { %3150 = vmatmul.f32.gmra.mxu0 %v8964_v47  ;;  %3353 = vmatmul.f32.vlgmr.msrb.gmra.mxu1 %v3139_v3 }
 0x4ef   :  { %3486 = vmatpush.msra.mxu0 %v8795_v10  ;;  %3579 = vmatpush.msra.mxu1 %v3578_v54  ;;  %v3618_v54 = vand.u32 4294901760, %v8881_v29  ;;  %v3613_v6 = vsub.f32 %v8874_v8, %v3612_v33 }
 0x4f0   :  { %3681 = vmatmul.f32.vlgmr.msra.gmra.mxu2 %v8907_v22  ;;  %3725 = vmatmul.f32.vlgmr.msra.gmra.mxu3 %v3139_v3  ;;  %v3608_v3 = vand.u32 4294901760, %v3607_v11  ;;  %v10391_v11 = vmov 0.0  }
 0x4f1   :  { %3488 = vmatpush.msra.mxu0 %v8807_v40  ;;  %3585 = vmatpush.msra.mxu1 %v3584_v36  ;;  %v3619_v50 = vsub.f32 %v8881_v29, %v3618_v54  ;;  %v3614_v36 = vand.u32 4294901760, %v3613_v6  ;;  %v3102_v29 = vperm.slane %v3099_v24, 1 }
 0x4f3   :  { %3490 = vmatpush.msra.mxu0 %v8814_v42  ;;  %3591 = vmatpush.msra.mxu1 %v3590_v17  ;;  %v3620_v17 = vand.u32 4294901760, %v3619_v50 }
 0x4f5   :  { %3492 = vmatpush.msra.mxu0 %v8821_v13  ;;  %3597 = vmatpush.msra.mxu1 %v3596_v38 }
 0x4f6   :  { %3309 = vmatmul.f32.vlgmr.msrb.gmra.mxu0 %v8907_v22  ;;  %3359 = vmatmul.f32.gmra.mxu1 %v3147_v5 }
 0x4f7   :  { %3494 = vmatpush.msra.mxu0 %v8828_v25  ;;  %3603 = vmatpush.msra.mxu1 %v3602_v26 }
 0x4f8   :  { %3686 = vmatmul.f32.gmra.mxu2 %v8941_v44  ;;  %3731 = vmatmul.f32.gmra.mxu3 %v3147_v5 }
 0x4f9   :  { %3496 = vmatpush.msra.mxu0 %v8835_v9  ;;  %3609 = vmatpush.msra.mxu1 %v3608_v3  ;;  %v10392_v3 = vld [vmem:[#allocation19_spill] sm:$0xff] }
 0x4fa   :  { %vm9073_vm6 = vcmp.eq.s32.totalorder %v10392_v3, %v8895_v20 }
 0x4fb   :  { %3498 = vmatpush.msra.mxu0 %v8842_v60  ;;  %3615 = vmatpush.msra.mxu1 %v3614_v36  ;;  %v6425_v36 = vsel %vm9073_vm6, 1.0, %v10391_v11 }
 0x4fc   :  { %6429 = vmatpush.msk.msrb.mxu2 %vm9073_vm6, %v10379_v19 }
 0x4fd   :  { %3500 = vmatpush.msra.mxu0 %v8849_v55  ;;  %3621 = vmatpush.msra.mxu1 %v3620_v17 }
 0x4fe   :  { %3314 = vmatmul.f32.gmra.mxu0 %v8941_v44  ;;  %3623 = vmatmul.f32.vlgmr.msra.gmra.mxu1 %v8901_v7 }
 0x4ff   :  { %3809 = vmatpush.msrb.mxu1 %v8771_v49  ;;  %3502 = vmatpush.msra.mxu0 %v8856_v51  ;;  %v10388_v49 = vand.u32 4294901760, %v8832_v23 }
 0x501   :  { %3811 = vmatpush.msrb.mxu1 %v8780_v27  ;;  %3504 = vmatpush.msra.mxu0 %v8863_v14  ;;  %v10390_v27 = vand.u32 4294901760, %v8860_v58 }
 0x503   :  { %3813 = vmatpush.msrb.mxu1 %v8786_v43  ;;  %3506 = vmatpush.msra.mxu0 %v8870_v21 }
 0x505   :  { %3815 = vmatpush.msrb.mxu1 %v8793_v48  ;;  %3508 = vmatpush.msra.mxu0 %v8877_v31 }
 0x506   :  { %3514 = vmatmul.f32.vlgmr.msra.gmra.mxu0 %v8934_v46  ;;  %3627 = vmatmul.f32.gmra.mxu1 %v8932_v39 }
 0x507   :  { %3738 = vmatpush.msrb.mxu0 %v3528_v41  ;;  %3817 = vmatpush.msrb.mxu1 %v8795_v10  ;;  %v3101_v10 = vperm.slane %v3099_v24, 0 }
 0x509   :  { %3742 = vmatpush.msrb.mxu0 %v3534_v45  ;;  %3819 = vmatpush.msrb.mxu1 %v8807_v40 }
 0x50b   :  { %3746 = vmatpush.msrb.mxu0 %v3540_v4  ;;  %3821 = vmatpush.msrb.mxu1 %v8814_v42 }
 0x50d   :  { %3750 = vmatpush.msrb.mxu0 %v3546_v35  ;;  %3823 = vmatpush.msrb.mxu1 %v8821_v13 }
 0x50e   :  { %3522 = vmatmul.f32.gmra.mxu0 %v8964_v47 }
 0x50f   :  { %3754 = vmatpush.msrb.mxu0 %v3552_v59  ;;  %3825 = vmatpush.msrb.mxu1 %v8828_v25 }
 0x511   :  { %3758 = vmatpush.msrb.mxu0 %v3558_v18  ;;  %3827 = vmatpush.msrb.mxu1 %v8835_v9 }
 0x513   :  { %3762 = vmatpush.msrb.mxu0 %v3564_v1  ;;  %3829 = vmatpush.msrb.mxu1 %v8842_v60 }
 0x515   :  { %3766 = vmatpush.msrb.mxu0 %v3570_v37  ;;  %3831 = vmatpush.msrb.mxu1 %v8849_v55 }
 0x517   :  { %3770 = vmatpush.msrb.mxu0 %v10388_v49  ;;  %3833 = vmatpush.msrb.mxu1 %v8856_v51  ;;  %v4110_v49 = vsub.f32 %v6425_v36, %v6425_v36 }
 0x519   :  { %3774 = vmatpush.msrb.mxu0 %v10389_v57  ;;  %3835 = vmatpush.msrb.mxu1 %v8863_v14  ;;  %v4111_v20 = vand.u32 4294901760, %v4110_v49 }
 0x51b   :  { %3778 = vmatpush.msrb.mxu0 %v3588_v32  ;;  %3837 = vmatpush.msrb.mxu1 %v8870_v21 }
 0x51d   :  { %3782 = vmatpush.msrb.mxu0 %v3594_v52  ;;  %3839 = vmatpush.msrb.mxu1 %v8877_v31 }
 0x51e   :  { %3841 = vmatmul.f32.vlgmr.msrb.gmra.mxu1 %v8901_v7 }
 0x51f   :  { %3786 = vmatpush.msrb.mxu0 %v10390_v27  ;;  %6430 = vmatpush.msk.msra.mxu1 %vm8914_vm5, %v10379_v19 }
 0x521   :  { %3790 = vmatpush.msrb.mxu0 %v3606_v56  ;;  %6431 = vmatpush.msk.msra.mxu1 %vm9073_vm6, %v10379_v19 }
 0x523   :  { %3794 = vmatpush.msrb.mxu0 %v3612_v33 }
 0x525   :  { %3798 = vmatpush.msrb.mxu0 %v3618_v54  ;;  %v6426_v54 = vsel %vm8914_vm5, 1.0, %v10391_v11 }
 0x526   :  { %3800 = vmatmul.f32.vlgmr.msrb.gmra.mxu0 %v8901_v7  ;;  %3845 = vmatmul.f32.gmra.mxu1 %v8932_v39  ;;  %v4104_v26 = vsub.f32 %v6426_v54, %v6426_v54 }
 0x528   :  { %v4105_v17 = vand.u32 4294901760, %v4104_v26  ;;  %4196 = vmatpush.msra.mxu0 %v4104_v26 }
 0x52a   :  { %v4106_v57 = vsub.f32 %v4104_v26, %v4105_v17  ;;  %4199 = vmatpush.msra.mxu0 %v4110_v49  ;;  %4413 = vmatpush.msra.mxu2 %v4105_v17 }
 0x52c   :  { %6434 = vmatpush.msk.msrb.mxu0 %vm8914_vm5, %v10379_v19  ;;  %v4107_v27 = vand.u32 4294901760, %v4106_v57  ;;  %4417 = vmatpush.msra.mxu2 %v4111_v20 }
 0x52e   :  { %3804 = vmatmul.f32.gmra.mxu0 %v8932_v39  ;;  %4108 = vmatpush.msrb.mxu3 %v4107_v27 }
 0x52f   :  { %6435 = vmatpush.msk.msrb.mxu0 %vm9073_vm6, %v10379_v19  ;;  %4812 = vmatpush.msrb.mxu1 %v4107_v27 }
 0x55a   :  { %v3252_v0 = vpop.f32.mrf.mxu1 }
 0x560   :  { %v3429_v13 = vpop.f32.mrf.mxu2 }
 0x561   :  { %v3470_v23 = vpop.f32.mrf.mxu3 }
 0x562   :  { %v3143_v43 = vpop.f32.mrf.mxu0  ;;  %v3256_v48 = vpop.f32.mrf.mxu1 }
 0x563   :  { %v3144_v61 = vadd.f32 %v3143_v43, %v3101_v10 }
 0x565   :  { %v3253_v40 = vadd.f32 %v3252_v0, %v3144_v61  ;;  %v4112_v0 = vsub.f32 %v4110_v49, %v4111_v20 }
 0x567   :  { %v4113_v43 = vand.u32 4294901760, %v4112_v0 }
 0x569   :  { %v3433_v58 = vpop.f32.mrf.mxu2  ;;  %v3474_v53 = vpop.f32.mrf.mxu3  ;;  %4114 = vmatpush.msrb.mxu3 %v4113_v43  ;;  %4818 = vmatpush.msrb.mxu1 %v4113_v43 }
 0x56b   :  { %v3151_v30 = vpop.f32.mrf.mxu0  ;;  %v3354_v34 = vpop.f32.mrf.mxu1  ;;  %6432 = vmatpush.msk.msra.mxu3 %vm8914_vm5, %v10379_v19 }
 0x56c   :  { %v3152_v28 = vadd.f32 %v3151_v30, %v3101_v10 }
 0x56d   :  { %6433 = vmatpush.msk.msra.mxu3 %vm9073_vm6, %v10379_v19 }
 0x56e   :  { %v3257_v12 = vadd.f32 %v3256_v48, %v3152_v28 }
 0x573   :  { %v3310_v42 = vpop.f32.mrf.mxu0  ;;  %v3360_v62 = vpop.f32.mrf.mxu1 }
 0x574   :  { %v3311_v16 = vadd.f32 %v3310_v42, %v3253_v40  ;;  %v3682_v45 = vpop.f32.mrf.mxu2  ;;  %v3726_v18 = vpop.f32.mrf.mxu3 }
 0x576   :  { %v3355_v25 = vadd.f32 %v3354_v34, %v3311_v16 }
 0x578   :  { %v3430_v9 = vadd.f32 %v3429_v13, %v3355_v25 }
 0x57a   :  { %v3471_v60 = vadd.f32 %v3470_v23, %v3430_v9 }
 0x57b   :  { %v3315_v63 = vpop.f32.mrf.mxu0  ;;  %v3624_v8 = vpop.f32.mrf.mxu1 }
 0x57c   :  { %v3316_v55 = vadd.f32 %v3315_v63, %v3257_v12  ;;  %3862 = vxpose.xlu2.b32.start [1/2] (short) %v3471_v60, 128  ;;  %v3687_v44 = vpop.f32.mrf.mxu2  ;;  %v3732_v52 = vpop.f32.mrf.mxu3 }
 0x57e   :  { %v3361_v51 = vadd.f32 %v3360_v62, %v3316_v55 }
 0x580   :  { %v3434_v14 = vadd.f32 %v3433_v58, %v3361_v51 }
 0x582   :  { %v3475_v21 = vadd.f32 %v3474_v53, %v3434_v14 }
 0x583   :  { %v3515_v31 = vpop.f32.mrf.mxu0  ;;  %v3628_v35 = vpop.f32.mrf.mxu1 }
 0x584   :  { %3863 = vxpose.xlu2.b32.end [2/2] (short) %v3475_v21, 128  ;;  %v3516_v41 = vadd.f32 %v3515_v31, %v3102_v29 }
 0x586   :  { %v3625_v4 = vadd.f32 %v3624_v8, %v3516_v41 }
 0x588   :  { %v3683_v22 = vadd.f32 %v3682_v45, %v3625_v4 }
 0x58a   :  { %v3727_v37 = vadd.f32 %v3726_v18, %v3683_v22 }
 0x58b   :  { %v3523_v59 = vpop.f32.mrf.mxu0 }
 0x58c   :  { %v3524_v7 = vadd.f32 %v3523_v59, %v3102_v29 }
 0x58e   :  { %v3629_v1 = vadd.f32 %v3628_v35, %v3524_v7 }
 0x590   :  { %v3688_v32 = vadd.f32 %v3687_v44, %v3629_v1 }
 0x592   :  { %v3733_v47 = vadd.f32 %v3732_v52, %v3688_v32 }
 0x59b   :  { %v3842_v39 = vpop.f32.mrf.mxu1 }
 0x5a3   :  { %v3801_v46 = vpop.f32.mrf.mxu0  ;;  %v3846_v33 = vpop.f32.mrf.mxu1 }
 0x5a4   :  { %v3802_v56 = vadd.f32 %v3801_v46, %v3727_v37 }
 0x5a6   :  { %v3843_v5 = vadd.f32 %v3842_v39, %v3802_v56 }
 0x5a8   :  { %4566 = vxpose.xlu0.b32.start [1/2] (short) %v3843_v5, 128 }
 0x5ab   :  { %v3805_v6 = vpop.f32.mrf.mxu0 }
 0x5ac   :  { %v3806_v15 = vadd.f32 %v3805_v6, %v3733_v47 }
 0x5ae   :  { %v3847_v38 = vadd.f32 %v3846_v33, %v3806_v15 }
 0x5b0   :  { %4567 = vxpose.xlu0.b32.end [2/2] (short) %v3847_v38, 128 }
 0x615   :  { %v3878_v24 = vpop.trf.xlu2 }
 0x616   :  { %v3895_v48 = vsel %vm1318_vm2, %v3878_v24, 0 }
 0x617   :  { %v9099_v10 = vand.u32 4294901760, %v3895_v48 }
 0x619   :  { %v3961_v30 = vsub.f32 %v3895_v48, %v9099_v10  ;;  %4116 = vmatmul.f32.vlgmr.msrb.gmra.mxu3 %v9099_v10 }
 0x61a   :  { %6436 = vmatpush.msk.msrb.mxu3 %vm8914_vm5, %v10379_v19 }
 0x61b   :  { %v3962_v61 = vand.u32 4294901760, %v3961_v30  ;;  %4202 = vmatmul.f32.vlgmr.msra.gmra.mxu0 %v3961_v30 }
 0x61c   :  { %6437 = vmatpush.msk.msrb.mxu3 %vm9073_vm6, %v10379_v19  ;;  %5117 = vmatpush.msra.mxu0 %v4105_v17 }
 0x61d   :  { %v3963_v40 = vsub.f32 %v3961_v30, %v3962_v61  ;;  %4302 = vmatmul.f32.vlgmr.msra.gmra.mxu1 %v3962_v61  ;;  %v3879_v34 = vpop.trf.xlu2 }
 0x61e   :  { %v3898_v42 = vsel %vm1318_vm2, %v3879_v34, 0  ;;  %5121 = vmatpush.msra.mxu0 %v4111_v20  ;;  %6438 = vmatpush.msk.msra.mxu1 %vm8914_vm5, %v10379_v19 }
 0x61f   :  { %v3964_v16 = vand.u32 4294901760, %v3963_v40  ;;  %v9113_v13 = vand.u32 4294901760, %v3898_v42 }
 0x620   :  { %6439 = vmatpush.msk.msra.mxu1 %vm9073_vm6, %v10379_v19 }
 0x621   :  { %v3969_v28 = vsub.f32 %v3898_v42, %v9113_v13  ;;  %3965 = vmatmul.f32.vlgmr.msrb.gmra.mxu2 %v3964_v16  ;;  %4120 = vmatmul.f32.gmra.mxu3 %v9113_v13 }
 0x622   :  { %4900 = vmatpush.msrb.mxu2 %v4104_v26 }
 0x623   :  { %4207 = vmatmul.f32.gmra.mxu0 %v3969_v28  ;;  %v3970_v25 = vand.u32 4294901760, %v3969_v28 }
 0x624   :  { %4903 = vmatpush.msrb.mxu2 %v4110_v49 }
 0x625   :  { %4308 = vmatmul.f32.gmra.mxu1 %v3970_v25  ;;  %v3880_v23 = vpop.trf.xlu2  ;;  %v3971_v2 = vsub.f32 %v3969_v28, %v3970_v25 }
 0x626   :  { %v3901_v9 = vsel %vm1318_vm2, %v3880_v23, 0 }
 0x627   :  { %v9121_v12 = vand.u32 4294901760, %v3901_v9  ;;  %v3972_v60 = vand.u32 4294901760, %v3971_v2 }
 0x629   :  { %v3977_v63 = vsub.f32 %v3901_v9, %v9121_v12  ;;  %3973 = vmatmul.f32.gmra.mxu2 %v3972_v60  ;;  %4124 = vmatmul.f32.gmra.mxu3 %v9121_v12 }
 0x62b   :  { %4212 = vmatmul.f32.gmra.mxu0 %v3977_v63  ;;  %v3978_v55 = vand.u32 4294901760, %v3977_v63 }
 0x62d   :  { %4314 = vmatmul.f32.gmra.mxu1 %v3978_v55  ;;  %v3881_v62 = vpop.trf.xlu2  ;;  %v3979_v51 = vsub.f32 %v3977_v63, %v3978_v55 }
 0x62e   :  { %v3904_v58 = vsel %vm1318_vm2, %v3881_v62, 0 }
 0x62f   :  { %v9126_v14 = vand.u32 4294901760, %v3904_v58  ;;  %v3980_v53 = vand.u32 4294901760, %v3979_v51 }
 0x631   :  { %v3985_v21 = vsub.f32 %v3904_v58, %v9126_v14  ;;  %3981 = vmatmul.f32.gmra.mxu2 %v3980_v53  ;;  %4128 = vmatmul.f32.gmra.mxu3 %v9126_v14 }
 0x633   :  { %4217 = vmatmul.f32.gmra.mxu0 %v3985_v21  ;;  %v3986_v8 = vand.u32 4294901760, %v3985_v21 }
 0x635   :  { %4320 = vmatmul.f32.gmra.mxu1 %v3986_v8  ;;  %v3882_v31 = vpop.trf.xlu2  ;;  %v3987_v29 = vsub.f32 %v3985_v21, %v3986_v8 }
 0x636   :  { %v3907_v41 = vsel %vm1318_vm2, %v3882_v31, 0 }
 0x637   :  { %v9131_v45 = vand.u32 4294901760, %v3907_v41  ;;  %v3988_v4 = vand.u32 4294901760, %v3987_v29 }
 0x639   :  { %v3993_v35 = vsub.f32 %v3907_v41, %v9131_v45  ;;  %3989 = vmatmul.f32.gmra.mxu2 %v3988_v4  ;;  %4132 = vmatmul.f32.gmra.mxu3 %v9131_v45 }
 0x63b   :  { %4222 = vmatmul.f32.gmra.mxu0 %v3993_v35  ;;  %v3994_v59 = vand.u32 4294901760, %v3993_v35 }
 0x63d   :  { %4326 = vmatmul.f32.gmra.mxu1 %v3994_v59  ;;  %v3883_v7 = vpop.trf.xlu2  ;;  %v3995_v22 = vsub.f32 %v3993_v35, %v3994_v59 }
 0x63e   :  { %v3910_v18 = vsel %vm1318_vm2, %v3883_v7, 0 }
 0x63f   :  { %v9136_v1 = vand.u32 4294901760, %v3910_v18  ;;  %v3996_v37 = vand.u32 4294901760, %v3995_v22 }
 0x641   :  { %v4001_v39 = vsub.f32 %v3910_v18, %v9136_v1  ;;  %3997 = vmatmul.f32.gmra.mxu2 %v3996_v37  ;;  %4136 = vmatmul.f32.gmra.mxu3 %v9136_v1 }
 0x643   :  { %4227 = vmatmul.f32.gmra.mxu0 %v4001_v39  ;;  %v4002_v46 = vand.u32 4294901760, %v4001_v39 }
 0x645   :  { %4332 = vmatmul.f32.gmra.mxu1 %v4002_v46  ;;  %v3884_v56 = vpop.trf.xlu2  ;;  %v4003_v44 = vsub.f32 %v4001_v39, %v4002_v46 }
 0x646   :  { %v3913_v5 = vsel %vm1318_vm2, %v3884_v56, 0 }
 0x647   :  { %v9141_v32 = vand.u32 4294901760, %v3913_v5  ;;  %v4004_v52 = vand.u32 4294901760, %v4003_v44 }
 0x649   :  { %v4009_v47 = vsub.f32 %v3913_v5, %v9141_v32  ;;  %4005 = vmatmul.f32.gmra.mxu2 %v4004_v52  ;;  %4140 = vmatmul.f32.gmra.mxu3 %v9141_v32 }
 0x64b   :  { %4232 = vmatmul.f32.gmra.mxu0 %v4009_v47  ;;  %v4010_v6 = vand.u32 4294901760, %v4009_v47 }
 0x64c   :  { %v4582_v53 = vpop.trf.xlu0 }
 0x64d   :  { %4338 = vmatmul.f32.gmra.mxu1 %v4010_v6  ;;  %v3885_v15 = vpop.trf.xlu2  ;;  %v4011_v33 = vsub.f32 %v4009_v47, %v4010_v6  ;;  %v4599_v47 = vsel %vm1318_vm2, %v4582_v53, 0 }
 0x64e   :  { %v3916_v38 = vsel %vm1318_vm2, %v3885_v15, 0 }
 0x64f   :  { %v9146_v54 = vand.u32 4294901760, %v3916_v38  ;;  %v4012_v26 = vand.u32 4294901760, %v4011_v33 }
 0x651   :  { %v4017_v50 = vsub.f32 %v3916_v38, %v9146_v54  ;;  %4013 = vmatmul.f32.gmra.mxu2 %v4012_v26  ;;  %4144 = vmatmul.f32.gmra.mxu3 %v9146_v54 }
 0x653   :  { %4237 = vmatmul.f32.gmra.mxu0 %v4017_v50  ;;  %v4018_v36 = vand.u32 4294901760, %v4017_v50 }
 0x654   :  { %v4583_v59 = vpop.trf.xlu0 }
 0x655   :  { %4344 = vmatmul.f32.gmra.mxu1 %v4018_v36  ;;  %v3886_v17 = vpop.trf.xlu2  ;;  %v4019_v49 = vsub.f32 %v4017_v50, %v4018_v36  ;;  %v9184_v50 = vand.u32 4294901760, %v4599_v47 }
 0x656   :  { %v3919_v57 = vsel %vm1318_vm2, %v3886_v17, 0 }
 0x657   :  { %v9151_v20 = vand.u32 4294901760, %v3919_v57  ;;  %v4020_v27 = vand.u32 4294901760, %v4019_v49 }
 0x659   :  { %v4025_v0 = vsub.f32 %v3919_v57, %v9151_v20  ;;  %4021 = vmatmul.f32.gmra.mxu2 %v4020_v27  ;;  %4148 = vmatmul.f32.gmra.mxu3 %v9151_v20  ;;  %v9189_v57 = vsub.f32 %v4599_v47, %v9184_v50  ;;  %v4602_v27 = vsel %vm1318_vm2, %v4583_v59, 0 }
 0x65b   :  { %4242 = vmatmul.f32.gmra.mxu0 %v4025_v0  ;;  %v4026_v43 = vand.u32 4294901760, %v4025_v0 }
 0x65c   :  { %v4584_v44 = vpop.trf.xlu0 }
 0x65d   :  { %4350 = vmatmul.f32.gmra.mxu1 %v4026_v43  ;;  %v3887_v24 = vpop.trf.xlu2  ;;  %v4027_v48 = vsub.f32 %v4025_v0, %v4026_v43 }
 0x65e   :  { %v3922_v30 = vsel %vm1318_vm2, %v3887_v24, 0 }
 0x65f   :  { %v9156_v61 = vand.u32 4294901760, %v3922_v30  ;;  %v4028_v40 = vand.u32 4294901760, %v4027_v48 }
 0x661   :  { %v4033_v34 = vsub.f32 %v3922_v30, %v9156_v61  ;;  %4029 = vmatmul.f32.gmra.mxu2 %v4028_v40  ;;  %4152 = vmatmul.f32.gmra.mxu3 %v9156_v61  ;;  %v10193_v30 = vand.u32 4294901760, %v9189_v57 }
 0x663   :  { %4247 = vmatmul.f32.gmra.mxu0 %v4033_v34  ;;  %v4034_v42 = vand.u32 4294901760, %v4033_v34 }
 0x664   :  { %v4585_v36 = vpop.trf.xlu0 }
 0x665   :  { %4356 = vmatmul.f32.gmra.mxu1 %v4034_v42  ;;  %v3888_v16 = vpop.trf.xlu2  ;;  %v4035_v28 = vsub.f32 %v4033_v34, %v4034_v42  ;;  %v9196_v34 = vand.u32 4294901760, %v4602_v27 }
 0x666   :  { %v3925_v25 = vsel %vm1318_vm2, %v3888_v16, 0 }
 0x667   :  { %v9161_v23 = vand.u32 4294901760, %v3925_v25  ;;  %v4036_v2 = vand.u32 4294901760, %v4035_v28  ;;  %v4667_v28 = vsub.f32 %v9189_v57, %v10193_v30 }
 0x669   :  { %v4041_v9 = vsub.f32 %v3925_v25, %v9161_v23  ;;  %4037 = vmatmul.f32.gmra.mxu2 %v4036_v2  ;;  %4156 = vmatmul.f32.gmra.mxu3 %v9161_v23  ;;  %v9204_v2 = vsub.f32 %v4602_v27, %v9196_v34 }
 0x66b   :  { %4252 = vmatmul.f32.gmra.mxu0 %v4041_v9  ;;  %v4042_v60 = vand.u32 4294901760, %v4041_v9 }
 0x66c   :  { %v4586_v42 = vpop.trf.xlu0 }
 0x66d   :  { %4362 = vmatmul.f32.gmra.mxu1 %v4042_v60  ;;  %v3889_v63 = vpop.trf.xlu2  ;;  %v4043_v55 = vsub.f32 %v4041_v9, %v4042_v60  ;;  %v4605_v9 = vsel %vm1318_vm2, %v4584_v44, 0  ;;  %v4611_v47 = vsel %vm1318_vm2, %v4586_v42, 0 }
 0x66e   :  { %v3928_v62 = vsel %vm1318_vm2, %v3889_v63, 0  ;;  %v4668_v63 = vand.u32 4294901760, %v4667_v28 }
 0x66f   :  { %v9166_v51 = vand.u32 4294901760, %v3928_v62  ;;  %v4044_v58 = vand.u32 4294901760, %v4043_v55  ;;  %v10192_v55 = vand.u32 4294901760, %v9204_v2 }
 0x671   :  { %v4049_v21 = vsub.f32 %v3928_v62, %v9166_v51  ;;  %4045 = vmatmul.f32.gmra.mxu2 %v4044_v58  ;;  %4160 = vmatmul.f32.gmra.mxu3 %v9166_v51  ;;  %v9208_v58 = vand.u32 4294901760, %v4605_v9 }
 0x673   :  { %4257 = vmatmul.f32.gmra.mxu0 %v4049_v21  ;;  %v4050_v8 = vand.u32 4294901760, %v4049_v21 }
 0x675   :  { %4368 = vmatmul.f32.gmra.mxu1 %v4050_v8  ;;  %v3890_v31 = vpop.trf.xlu2  ;;  %v4051_v29 = vsub.f32 %v4049_v21, %v4050_v8  ;;  %v4587_v21 = vpop.trf.xlu0 }
 0x676   :  { %v3931_v41 = vsel %vm1318_vm2, %v3890_v31, 0  ;;  %v9212_v31 = vsub.f32 %v4605_v9, %v9208_v58  ;;  %v4614_v42 = vsel %vm1318_vm2, %v4587_v21, 0 }
 0x677   :  { %v9171_v4 = vand.u32 4294901760, %v3931_v41  ;;  %v4052_v35 = vand.u32 4294901760, %v4051_v29  ;;  %v4675_v29 = vsub.f32 %v9204_v2, %v10192_v55  ;;  %v9248_v9 = vand.u32 4294901760, %v4614_v42 }
 0x678   :  { %v10190_v59 = vand.u32 4294901760, %v9212_v31 }
 0x679   :  { %v4057_v7 = vsub.f32 %v3931_v41, %v9171_v4  ;;  %4053 = vmatmul.f32.gmra.mxu2 %v4052_v35  ;;  %4164 = vmatmul.f32.gmra.mxu3 %v9171_v4  ;;  %v4608_v35 = vsel %vm1318_vm2, %v4585_v36, 0 }
 0x67a   :  { %v4683_v44 = vsub.f32 %v9212_v31, %v10190_v59 }
 0x67b   :  { %4262 = vmatmul.f32.gmra.mxu0 %v4057_v7  ;;  %v4058_v22 = vand.u32 4294901760, %v4057_v7 }
 0x67d   :  { %4374 = vmatmul.f32.gmra.mxu1 %v4058_v22  ;;  %v3891_v18 = vpop.trf.xlu2  ;;  %v4059_v37 = vsub.f32 %v4057_v7, %v4058_v22  ;;  %v4676_v7 = vand.u32 4294901760, %v4675_v29  ;;  %v9220_v22 = vand.u32 4294901760, %v4608_v35 }
 0x67e   :  { %v3934_v39 = vsel %vm1318_vm2, %v3891_v18, 0 }
 0x67f   :  { %v9176_v46 = vand.u32 4294901760, %v3934_v39  ;;  %v4060_v56 = vand.u32 4294901760, %v4059_v37  ;;  %v4588_v37 = vpop.trf.xlu0 }
 0x681   :  { %v4065_v5 = vsub.f32 %v3934_v39, %v9176_v46  ;;  %4061 = vmatmul.f32.gmra.mxu2 %v4060_v56  ;;  %4168 = vmatmul.f32.gmra.mxu3 %v9176_v46  ;;  %v9225_v56 = vsub.f32 %v4608_v35, %v9220_v22  ;;  %v4617_v35 = vsel %vm1318_vm2, %v4588_v37, 0 }
 0x683   :  { %4267 = vmatmul.f32.gmra.mxu0 %v4065_v5  ;;  %v4066_v52 = vand.u32 4294901760, %v4065_v5 }
 0x685   :  { %4380 = vmatmul.f32.gmra.mxu1 %v4066_v52  ;;  %v3892_v6 = vpop.trf.xlu2  ;;  %v4067_v15 = vsub.f32 %v4065_v5, %v4066_v52 }
 0x686   :  { %v3937_v33 = vsel %vm1318_vm2, %v3892_v6, 0 }
 0x687   :  { %v9182_v38 = vand.u32 4294901760, %v3937_v33  ;;  %v4068_v26 = vand.u32 4294901760, %v4067_v15 }
 0x689   :  { %v4073_v17 = vsub.f32 %v3937_v33, %v9182_v38  ;;  %4069 = vmatmul.f32.gmra.mxu2 %v4068_v26  ;;  %4172 = vmatmul.f32.gmra.mxu3 %v9182_v38  ;;  %v4684_v33 = vand.u32 4294901760, %v4683_v44  ;;  %v9233_v26 = vand.u32 4294901760, %v4611_v47  ;;  %v9263_v44 = vand.u32 4294901760, %v4617_v35 }
 0x68b   :  { %4272 = vmatmul.f32.gmra.mxu0 %v4073_v17  ;;  %v4074_v49 = vand.u32 4294901760, %v4073_v17  ;;  %v9270_v37 = vsub.f32 %v4617_v35, %v9263_v44 }
 0x68d   :  { %4386 = vmatmul.f32.gmra.mxu1 %v4074_v49  ;;  %v3893_v0 = vpop.trf.xlu2  ;;  %v4075_v43 = vsub.f32 %v4073_v17, %v4074_v49  ;;  %v4589_v17 = vpop.trf.xlu0 }
 0x68e   :  { %v3940_v24 = vsel %vm1318_vm2, %v3893_v0, 0  ;;  %v9240_v0 = vsub.f32 %v4611_v47, %v9233_v26 }
 0x68f   :  { %v9193_v48 = vand.u32 4294901760, %v3940_v24  ;;  %v4076_v40 = vand.u32 4294901760, %v4075_v43 }
 0x690   :  { %v10187_v28 = vand.u32 4294901760, %v9240_v0 }
 0x691   :  { %v4081_v16 = vsub.f32 %v3940_v24, %v9193_v48  ;;  %4077 = vmatmul.f32.gmra.mxu2 %v4076_v40  ;;  %4176 = vmatmul.f32.gmra.mxu3 %v9193_v48 }
 0x692   :  { %v4699_v21 = vsub.f32 %v9240_v0, %v10187_v28 }
 0x693   :  { %4277 = vmatmul.f32.gmra.mxu0 %v4081_v16  ;;  %v4082_v25 = vand.u32 4294901760, %v4081_v16 }
 0x695   :  { %4392 = vmatmul.f32.gmra.mxu1 %v4082_v25  ;;  %v4083_v60 = vsub.f32 %v4081_v16, %v4082_v25 }
 0x697   :  { %v4084_v62 = vand.u32 4294901760, %v4083_v60 }
 0x698   :  { %v4203_v53 = vpop.f32.mrf.mxu0 }
 0x699   :  { %4085 = vmatmul.f32.gmra.mxu2 %v4084_v62  ;;  %4502 = vmatmul.f32.vlgmr.msra.gmra.mxu3 %v9099_v10 }
 0x69a   :  { %v4303_v8 = vpop.f32.mrf.mxu1 }
 0x69b   :  { %4669 = vmatmul.f32.vlgmr.msrb.gmra.mxu0 %v4668_v63 }
 0x69c   :  { %v4117_v41 = vpop.f32.mrf.mxu3 }
 0x69d   :  { %4820 = vmatmul.f32.vlgmr.msrb.gmra.mxu1 %v9184_v50 }
 0x6a0   :  { %v4208_v18 = vpop.f32.mrf.mxu0 }
 0x6a1   :  { %4419 = vmatmul.f32.vlgmr.msra.gmra.mxu2 %v9099_v10  ;;  %4506 = vmatmul.f32.gmra.mxu3 %v9113_v13  ;;  %v10189_v10 = vand.u32 4294901760, %v9225_v56 }
 0x6a2   :  { %v4309_v39 = vpop.f32.mrf.mxu1 }
 0x6a3   :  { %4677 = vmatmul.f32.gmra.mxu0 %v4676_v7  ;;  %v4691_v43 = vsub.f32 %v9225_v56, %v10189_v10 }
 0x6a4   :  { %v3966_v5 = vpop.f32.mrf.mxu2  ;;  %v4121_v52 = vpop.f32.mrf.mxu3 }
 0x6a5   :  { %v4118_v6 = vadd.f32 %v4117_v41, %v3966_v5  ;;  %4824 = vmatmul.f32.gmra.mxu1 %v9196_v34  ;;  %v4692_v25 = vand.u32 4294901760, %v4691_v43 }
 0x6a7   :  { %v4204_v15 = vadd.f32 %v4203_v53, %v4118_v6  ;;  %v9255_v53 = vsub.f32 %v4614_v42, %v9248_v9 }
 0x6a8   :  { %v4213_v36 = vpop.f32.mrf.mxu0 }
 0x6a9   :  { %4423 = vmatmul.f32.gmra.mxu2 %v9113_v13  ;;  %4510 = vmatmul.f32.gmra.mxu3 %v9121_v12  ;;  %v9237_v49 = vadd.f32 %v4303_v8, %v4204_v15  ;;  %v4590_v8 = vpop.trf.xlu0 }
 0x6aa   :  { %v4315_v27 = vpop.f32.mrf.mxu1 }
 0x6ab   :  { %4685 = vmatmul.f32.gmra.mxu0 %v4684_v33 }
 0x6ac   :  { %v3974_v24 = vpop.f32.mrf.mxu2  ;;  %v4125_v40 = vpop.f32.mrf.mxu3 }
 0x6ad   :  { %v4122_v16 = vadd.f32 %v4121_v52, %v3974_v24  ;;  %4828 = vmatmul.f32.gmra.mxu1 %v9208_v58 }
 0x6af   :  { %v4209_v13 = vadd.f32 %v4208_v18, %v4122_v16  ;;  %v10186_v18 = vand.u32 4294901760, %v9255_v53 }
 0x6b0   :  { %v4218_v60 = vpop.f32.mrf.mxu0 }
 0x6b1   :  { %4427 = vmatmul.f32.gmra.mxu2 %v9121_v12  ;;  %4514 = vmatmul.f32.gmra.mxu3 %v9126_v14  ;;  %v9252_v63 = vadd.f32 %v4309_v39, %v4209_v13  ;;  %v4700_v39 = vand.u32 4294901760, %v4699_v21  ;;  %v4707_v6 = vsub.f32 %v9255_v53, %v10186_v18 }
 0x6b2   :  { %v4321_v62 = vpop.f32.mrf.mxu1 }
 0x6b3   :  { %4693 = vmatmul.f32.gmra.mxu0 %v4692_v25 }
 0x6b4   :  { %v3982_v29 = vpop.f32.mrf.mxu2  ;;  %v4129_v41 = vpop.f32.mrf.mxu3 }
 0x6b5   :  { %v4126_v7 = vadd.f32 %v4125_v40, %v3982_v29  ;;  %4832 = vmatmul.f32.gmra.mxu1 %v9220_v22  ;;  %v4708_v40 = vand.u32 4294901760, %v4707_v6 }
 0x6b7   :  { %v4214_v12 = vadd.f32 %v4213_v36, %v4126_v7  ;;  %v4620_v36 = vsel %vm1318_vm2, %v4589_v17, 0 }
 0x6b8   :  { %v4223_v5 = vpop.f32.mrf.mxu0  ;;  %v9278_v42 = vand.u32 4294901760, %v4620_v36 }
 0x6b9   :  { %4431 = vmatmul.f32.gmra.mxu2 %v9126_v14  ;;  %4518 = vmatmul.f32.gmra.mxu3 %v9131_v45  ;;  %v9267_v52 = vadd.f32 %v4315_v27, %v4214_v12  ;;  %v4591_v14 = vpop.trf.xlu0  ;;  %v10184_v27 = vand.u32 4294901760, %v9270_v37 }
 0x6ba   :  { %v4327_v47 = vpop.f32.mrf.mxu1  ;;  %v9285_v17 = vsub.f32 %v4620_v36, %v9278_v42 }
 0x6bb   :  { %4701 = vmatmul.f32.gmra.mxu0 %v4700_v39 }
 0x6bc   :  { %v3990_v15 = vpop.f32.mrf.mxu2  ;;  %v4133_v33 = vpop.f32.mrf.mxu3 }
 0x6bd   :  { %v4130_v43 = vadd.f32 %v4129_v41, %v3990_v15  ;;  %4836 = vmatmul.f32.gmra.mxu1 %v9233_v26  ;;  %v4623_v41 = vsel %vm1318_vm2, %v4590_v8, 0 }
 0x6be   :  { %v9293_v12 = vand.u32 4294901760, %v4623_v41 }
 0x6bf   :  { %v4219_v24 = vadd.f32 %v4218_v60, %v4130_v43  ;;  %v4715_v60 = vsub.f32 %v9270_v37, %v10184_v27 }
 0x6c0   :  { %v4228_v16 = vpop.f32.mrf.mxu0  ;;  %v9300_v8 = vsub.f32 %v4623_v41, %v9293_v12 }
 0x6c1   :  { %4435 = vmatmul.f32.gmra.mxu2 %v9131_v45  ;;  %4522 = vmatmul.f32.gmra.mxu3 %v9136_v1  ;;  %v9282_v13 = vadd.f32 %v4321_v62, %v4219_v24  ;;  %v10182_v62 = vand.u32 4294901760, %v9285_v17  ;;  %v4716_v7 = vand.u32 4294901760, %v4715_v60  ;;  %v4592_v39 = vpop.trf.xlu0  ;;  %v4626_v24 = vsel %vm1318_vm2, %v4591_v14, 0 }
 0x6c2   :  { %v4333_v25 = vpop.f32.mrf.mxu1 }
 0x6c3   :  { %4709 = vmatmul.f32.gmra.mxu0 %v4708_v40 }
 0x6c4   :  { %v3998_v21 = vpop.f32.mrf.mxu2  ;;  %v4137_v29 = vpop.f32.mrf.mxu3 }
 0x6c5   :  { %v4134_v35 = vadd.f32 %v4133_v33, %v3998_v21  ;;  %4840 = vmatmul.f32.gmra.mxu1 %v9248_v9  ;;  %v9308_v21 = vand.u32 4294901760, %v4626_v24 }
 0x6c7   :  { %v4224_v45 = vadd.f32 %v4223_v5, %v4134_v35  ;;  %v4723_v5 = vsub.f32 %v9285_v17, %v10182_v62  ;;  %v9315_v14 = vsub.f32 %v4626_v24, %v9308_v21 }
 0x6c8   :  { %v4233_v6 = vpop.f32.mrf.mxu0 }
 0x6c9   :  { %4439 = vmatmul.f32.gmra.mxu2 %v9136_v1  ;;  %4526 = vmatmul.f32.gmra.mxu3 %v9141_v32  ;;  %v9297_v15 = vadd.f32 %v4327_v47, %v4224_v45  ;;  %v10183_v47 = vand.u32 4294901760, %v9300_v8  ;;  %v4724_v60 = vand.u32 4294901760, %v4723_v5  ;;  %v4593_v41 = vpop.trf.xlu0 }
 0x6ca   :  { %v4339_v36 = vpop.f32.mrf.mxu1 }
 0x6cb   :  { %4717 = vmatmul.f32.gmra.mxu0 %v4716_v7 }
 0x6cc   :  { %v4006_v33 = vpop.f32.mrf.mxu2  ;;  %v4141_v43 = vpop.f32.mrf.mxu3 }
 0x6cd   :  { %v4138_v40 = vadd.f32 %v4137_v29, %v4006_v33  ;;  %4844 = vmatmul.f32.gmra.mxu1 %v9263_v44  ;;  %v4629_v33 = vsel %vm1318_vm2, %v4592_v39, 0 }
 0x6ce   :  { %v9323_v62 = vand.u32 4294901760, %v4629_v33 }
 0x6cf   :  { %v4229_v1 = vadd.f32 %v4228_v16, %v4138_v40  ;;  %v4731_v16 = vsub.f32 %v9300_v8, %v10183_v47 }
 0x6d0   :  { %v4238_v35 = vpop.f32.mrf.mxu0  ;;  %v9330_v39 = vsub.f32 %v4629_v33, %v9323_v62 }
 0x6d1   :  { %4443 = vmatmul.f32.gmra.mxu2 %v9141_v32  ;;  %4530 = vmatmul.f32.gmra.mxu3 %v9146_v54  ;;  %v9312_v45 = vadd.f32 %v4333_v25, %v4229_v1  ;;  %v10185_v25 = vand.u32 4294901760, %v9315_v14  ;;  %v4732_v1 = vand.u32 4294901760, %v4731_v16 }
 0x6d2   :  { %v4345_v7 = vpop.f32.mrf.mxu1 }
 0x6d3   :  { %4725 = vmatmul.f32.gmra.mxu0 %v4724_v60 }
 0x6d4   :  { %v4014_v29 = vpop.f32.mrf.mxu2  ;;  %v4145_v5 = vpop.f32.mrf.mxu3 }
 0x6d5   :  { %v4142_v40 = vadd.f32 %v4141_v43, %v4014_v29  ;;  %4848 = vmatmul.f32.gmra.mxu1 %v9278_v42  ;;  %v4594_v43 = vpop.trf.xlu0 }
 0x6d7   :  { %v4234_v32 = vadd.f32 %v4233_v6, %v4142_v40  ;;  %v4739_v6 = vsub.f32 %v9315_v14, %v10185_v25  ;;  %v4632_v40 = vsel %vm1318_vm2, %v4593_v41, 0 }
 0x6d8   :  { %v4243_v60 = vpop.f32.mrf.mxu0 }
 0x6d9   :  { %4447 = vmatmul.f32.gmra.mxu2 %v9146_v54  ;;  %4534 = vmatmul.f32.gmra.mxu3 %v9151_v20  ;;  %v9327_v24 = vadd.f32 %v4339_v36, %v4234_v32  ;;  %v10188_v36 = vand.u32 4294901760, %v9330_v39  ;;  %v4740_v32 = vand.u32 4294901760, %v4739_v6  ;;  %v4635_v6 = vsel %vm1318_vm2, %v4594_v43, 0 }
 0x6da   :  { %v4351_v47 = vpop.f32.mrf.mxu1 }
 0x6db   :  { %4733 = vmatmul.f32.gmra.mxu0 %v4732_v1  ;;  %v9338_v1 = vand.u32 4294901760, %v4632_v40 }
 0x6dc   :  { %v4022_v16 = vpop.f32.mrf.mxu2  ;;  %v4149_v29 = vpop.f32.mrf.mxu3 }
 0x6dd   :  { %v4146_v27 = vadd.f32 %v4145_v5, %v4022_v16  ;;  %4852 = vmatmul.f32.gmra.mxu1 %v9293_v12  ;;  %v9345_v41 = vsub.f32 %v4632_v40, %v9338_v1 }
 0x6df   :  { %v4239_v54 = vadd.f32 %v4238_v35, %v4146_v27  ;;  %v4747_v27 = vsub.f32 %v9330_v39, %v10188_v36 }
 0x6e0   :  { %v4248_v33 = vpop.f32.mrf.mxu0 }
 0x6e1   :  { %4451 = vmatmul.f32.gmra.mxu2 %v9151_v20  ;;  %4538 = vmatmul.f32.gmra.mxu3 %v9156_v61  ;;  %v9342_v25 = vadd.f32 %v4345_v7, %v4239_v54  ;;  %v4595_v20 = vpop.trf.xlu0  ;;  %v10191_v7 = vand.u32 4294901760, %v9345_v41  ;;  %v4748_v54 = vand.u32 4294901760, %v4747_v27 }
 0x6e2   :  { %v4357_v18 = vpop.f32.mrf.mxu1 }
 0x6e3   :  { %4741 = vmatmul.f32.gmra.mxu0 %v4740_v32  ;;  %v9353_v32 = vand.u32 4294901760, %v4635_v6 }
 0x6e4   :  { %v4030_v35 = vpop.f32.mrf.mxu2  ;;  %v4153_v5 = vpop.f32.mrf.mxu3 }
 0x6e5   :  { %v4150_v16 = vadd.f32 %v4149_v29, %v4030_v35  ;;  %4856 = vmatmul.f32.gmra.mxu1 %v9308_v21  ;;  %v9360_v43 = vsub.f32 %v4635_v6, %v9353_v32  ;;  %v4638_v35 = vsel %vm1318_vm2, %v4595_v20, 0 }
 0x6e6   :  { %v9368_v59 = vand.u32 4294901760, %v4638_v35 }
 0x6e7   :  { %v4244_v28 = vadd.f32 %v4243_v60, %v4150_v16  ;;  %10395 = vst [vmem:[#allocation69_spill] sm:$0xff] %v9360_v43  ;;  %v4755_v60 = vsub.f32 %v9345_v41, %v10191_v7 }
 0x6e8   :  { %v4253_v40 = vpop.f32.mrf.mxu0 }
 0x6e9   :  { %4455 = vmatmul.f32.gmra.mxu2 %v9156_v61  ;;  %4542 = vmatmul.f32.gmra.mxu3 %v9161_v23  ;;  %v9357_v36 = vadd.f32 %v4351_v47, %v4244_v28  ;;  %v10194_v28 = vand.u32 4294901760, %v9360_v43  ;;  %v4756_v47 = vand.u32 4294901760, %v4755_v60 }
 0x6ea   :  { %v4363_v10 = vpop.f32.mrf.mxu1 }
 0x6eb   :  { %4749 = vmatmul.f32.gmra.mxu0 %v4748_v54  ;;  %v4596_v54 = vpop.trf.xlu0 }
 0x6ec   :  { %v4038_v29 = vpop.f32.mrf.mxu2  ;;  %v4157_v27 = vpop.f32.mrf.mxu3 }
 0x6ed   :  { %v4154_v16 = vadd.f32 %v4153_v5, %v4038_v29  ;;  %4860 = vmatmul.f32.gmra.mxu1 %v9323_v62  ;;  %v9375_v5 = vsub.f32 %v4638_v35, %v9368_v59  ;;  %v4641_v29 = vsel %vm1318_vm2, %v4596_v54, 0 }
 0x6ee   :  { %v9383_v30 = vand.u32 4294901760, %v4641_v29 }
 0x6ef   :  { %v4249_v61 = vadd.f32 %v4248_v33, %v4154_v16  ;;  %10396 = vst [vmem:[#allocation72_spill] sm:$0xff] %v9375_v5  ;;  %v4763_v33 = vsub.f32 %v9360_v43, %v10194_v28 }
 0x6f0   :  { %v4258_v6 = vpop.f32.mrf.mxu0 }
 0x6f1   :  { %4459 = vmatmul.f32.gmra.mxu2 %v9161_v23  ;;  %4546 = vmatmul.f32.gmra.mxu3 %v9166_v51  ;;  %v9372_v7 = vadd.f32 %v4357_v18, %v4249_v61  ;;  %v10197_v18 = vand.u32 4294901760, %v9375_v5  ;;  %v4764_v61 = vand.u32 4294901760, %v4763_v33 }
 0x6f2   :  { %v4369_v55 = vpop.f32.mrf.mxu1 }
 0x6f3   :  { %4757 = vmatmul.f32.gmra.mxu0 %v4756_v47  ;;  %v4597_v35 = vpop.trf.xlu0 }
 0x6f4   :  { %v4046_v20 = vpop.f32.mrf.mxu2  ;;  %v4161_v60 = vpop.f32.mrf.mxu3 }
 0x6f5   :  { %v4158_v16 = vadd.f32 %v4157_v27, %v4046_v20  ;;  %4864 = vmatmul.f32.gmra.mxu1 %v9338_v1  ;;  %v9390_v27 = vsub.f32 %v4641_v29, %v9383_v30  ;;  %v4644_v20 = vsel %vm1318_vm2, %v4597_v35, 0 }
 0x6f7   :  { %v4254_v23 = vadd.f32 %v4253_v40, %v4158_v16  ;;  %10398 = vst [vmem:[#allocation76_spill] sm:$0xff] %v9390_v27  ;;  %v4771_v40 = vsub.f32 %v9375_v5, %v10197_v18 }
 0x6f8   :  { %v4263_v47 = vpop.f32.mrf.mxu0 }
 0x6f9   :  { %4463 = vmatmul.f32.gmra.mxu2 %v9166_v51  ;;  %4550 = vmatmul.f32.gmra.mxu3 %v9171_v4  ;;  %v9387_v28 = vadd.f32 %v4363_v10, %v4254_v23  ;;  %v10200_v10 = vand.u32 4294901760, %v9390_v27  ;;  %v4772_v23 = vand.u32 4294901760, %v4771_v40 }
 0x6fa   :  { %v4375_v43 = vpop.f32.mrf.mxu1 }
 0x6fb   :  { %10397 = vst [vmem:[#allocation75_spill] sm:$0xff] %v9387_v28  ;;  %4765 = vmatmul.f32.gmra.mxu0 %v4764_v61  ;;  %v9398_v28 = vand.u32 4294901760, %v4644_v20 }
 0x6fc   :  { %v4054_v54 = vpop.f32.mrf.mxu2  ;;  %v4165_v33 = vpop.f32.mrf.mxu3 }
 0x6fd   :  { %v4162_v16 = vadd.f32 %v4161_v60, %v4054_v54  ;;  %4868 = vmatmul.f32.gmra.mxu1 %v9353_v32  ;;  %v9405_v35 = vsub.f32 %v4644_v20, %v9398_v28 }
 0x6ff   :  { %v4259_v51 = vadd.f32 %v4258_v6, %v4162_v16  ;;  %v4779_v6 = vsub.f32 %v9390_v27, %v10200_v10 }
 0x700   :  { %v4268_v61 = vpop.f32.mrf.mxu0 }
 0x701   :  { %4467 = vmatmul.f32.gmra.mxu2 %v9171_v4  ;;  %4554 = vmatmul.f32.gmra.mxu3 %v9176_v46  ;;  %v9402_v29 = vadd.f32 %v4369_v55, %v4259_v51  ;;  %v10203_v4 = vand.u32 4294901760, %v9405_v35  ;;  %v4780_v5 = vand.u32 4294901760, %v4779_v6 }
 0x702   :  { %v4381_v18 = vpop.f32.mrf.mxu1 }
 0x703   :  { %4773 = vmatmul.f32.gmra.mxu0 %v4772_v23  ;;  %v4787_v23 = vsub.f32 %v9405_v35, %v10203_v4 }
 0x704   :  { %v4062_v60 = vpop.f32.mrf.mxu2  ;;  %v4169_v40 = vpop.f32.mrf.mxu3 }
 0x705   :  { %v4166_v54 = vadd.f32 %v4165_v33, %v4062_v60  ;;  %4872 = vmatmul.f32.gmra.mxu1 %v9368_v59  ;;  %v4788_v6 = vand.u32 4294901760, %v4787_v23 }
 0x707   :  { %v4264_v16 = vadd.f32 %v4263_v47, %v4166_v54 }
 0x708   :  { %v4273_v55 = vpop.f32.mrf.mxu0 }
 0x709   :  { %4471 = vmatmul.f32.gmra.mxu2 %v9176_v46  ;;  %4558 = vmatmul.f32.gmra.mxu3 %v9182_v38  ;;  %v9414_v20 = vadd.f32 %v4375_v43, %v4264_v16 }
 0x70a   :  { %v4387_v51 = vpop.f32.mrf.mxu1 }
 0x70b   :  { %4781 = vmatmul.f32.gmra.mxu0 %v4780_v5 }
 0x70c   :  { %v4070_v33 = vpop.f32.mrf.mxu2  ;;  %v4173_v60 = vpop.f32.mrf.mxu3 }
 0x70d   :  { %v4170_v10 = vadd.f32 %v4169_v40, %v4070_v33  ;;  %4876 = vmatmul.f32.gmra.mxu1 %v9383_v30 }
 0x70f   :  { %v4269_v47 = vadd.f32 %v4268_v61, %v4170_v10  ;;  %v10399_v10 = vand.u32 4294901760, %v9189_v57 }
 0x710   :  { %v4278_v54 = vpop.f32.mrf.mxu0 }
 0x711   :  { %4475 = vmatmul.f32.gmra.mxu2 %v9182_v38  ;;  %4562 = vmatmul.f32.gmra.mxu3 %v9193_v48  ;;  %v9422_v46 = vadd.f32 %v4381_v18, %v4269_v47 }
 0x712   :  { %v4393_v43 = vpop.f32.mrf.mxu1 }
 0x713   :  { %4789 = vmatmul.f32.gmra.mxu0 %v4788_v6 }
 0x714   :  { %v4078_v5 = vpop.f32.mrf.mxu2  ;;  %v4177_v16 = vpop.f32.mrf.mxu3 }
 0x715   :  { %v4174_v27 = vadd.f32 %v4173_v60, %v4078_v5  ;;  %4880 = vmatmul.f32.gmra.mxu1 %v9398_v28 }
 0x717   :  { %v4274_v4 = vadd.f32 %v4273_v55, %v4174_v27 }
 0x718   :  { %v9425_v40 = vpop.f32.mrf.mxu0 }
 0x719   :  { %4479 = vmatmul.f32.gmra.mxu2 %v9193_v48  ;;  %5006 = vmatmul.f32.vlgmr.msrb.gmra.mxu3 %v10399_v10  ;;  %v9430_v38 = vadd.f32 %v4387_v51, %v4274_v4  ;;  %v10400_v48 = vand.u32 4294901760, %v9204_v2 }
 0x71a   :  { %v9432_v61 = vpop.f32.mrf.mxu1 }
 0x71b   :  { %5123 = vmatmul.f32.vlgmr.msra.gmra.mxu0 %v9184_v50 }
 0x71c   :  { %v4086_v18 = vpop.f32.mrf.mxu2  ;;  %v4503_v23 = vpop.f32.mrf.mxu3 }
 0x71d   :  { %v4178_v33 = vadd.f32 %v4177_v16, %v4086_v18  ;;  %5206 = vmatmul.f32.vlgmr.msra.gmra.mxu1 %v9184_v50 }
 0x71f   :  { %v4279_v60 = vadd.f32 %v4278_v54, %v4178_v33 }
 0x720   :  { %v9436_v27 = vpop.f32.mrf.mxu0 }
 0x721   :  { %4906 = vmatmul.f32.vlgmr.msrb.gmra.mxu2 %v9189_v57  ;;  %5012 = vmatmul.f32.gmra.mxu3 %v10400_v48  ;;  %v9441_v55 = vadd.f32 %v4393_v43, %v4279_v60  ;;  %v10401_v57 = vand.u32 4294901760, %v9212_v31 }
 0x722   :  { %v9443_v4 = vpop.f32.mrf.mxu1 }
 0x723   :  { %5127 = vmatmul.f32.gmra.mxu0 %v9196_v34 }
 0x724   :  { %v4420_v51 = vpop.f32.mrf.mxu2  ;;  %v4507_v47 = vpop.f32.mrf.mxu3 }
 0x725   :  { %v4421_v6 = vadd.f32 %v4420_v51, %v9237_v49  ;;  %5210 = vmatmul.f32.gmra.mxu1 %v9196_v34 }
 0x727   :  { %v9448_v50 = vadd.f32 %v4503_v23, %v4421_v6 }
 0x728   :  { %v9450_v54 = vpop.f32.mrf.mxu0 }
 0x729   :  { %4911 = vmatmul.f32.gmra.mxu2 %v9204_v2  ;;  %5018 = vmatmul.f32.gmra.mxu3 %v10401_v57  ;;  %v10402_v2 = vand.u32 4294901760, %v9225_v56 }
 0x72a   :  { %v9455_v43 = vpop.f32.mrf.mxu1 }
 0x72b   :  { %5131 = vmatmul.f32.gmra.mxu0 %v9208_v58 }
 0x72c   :  { %v4424_v5 = vpop.f32.mrf.mxu2  ;;  %v4511_v16 = vpop.f32.mrf.mxu3 }
 0x72d   :  { %v4425_v10 = vadd.f32 %v4424_v5, %v9252_v63  ;;  %5214 = vmatmul.f32.gmra.mxu1 %v9208_v58  ;;  %v6468_v5 = vld [vmem:[#allocation10] ss:$0 sm:$0xff] }
 0x72e   :  { %vm9497_vm7 = vcmp.eq.s32.totalorder %v10392_v3, %v6468_v5 }
 0x72f   :  { %v9460_v34 = vadd.f32 %v4507_v47, %v4425_v10  ;;  %6440 = vmatpush.msk.msra.mxu2 %vm9497_vm7, %v10379_v19  ;;  %6441 = vmatpush.msk.msrb.mxu1 %vm9497_vm7, %v10379_v19 }
 0x730   :  { %v9462_v49 = vpop.f32.mrf.mxu0 }
 0x731   :  { %4916 = vmatmul.f32.gmra.mxu2 %v9212_v31  ;;  %5024 = vmatmul.f32.gmra.mxu3 %v10402_v2  ;;  %v10403_v31 = vand.u32 4294901760, %v9240_v0  ;;  %v10411_v2 = vand.u32 4294901760, %v9270_v37 }
 0x732   :  { %v9467_v18 = vpop.f32.mrf.mxu1 }
 0x733   :  { %5135 = vmatmul.f32.gmra.mxu0 %v9220_v22 }
 0x734   :  { %v4428_v23 = vpop.f32.mrf.mxu2  ;;  %v4515_v33 = vpop.f32.mrf.mxu3 }
 0x735   :  { %v4429_v60 = vadd.f32 %v4428_v23, %v9267_v52  ;;  %5218 = vmatmul.f32.gmra.mxu1 %v9220_v22 }
 0x737   :  { %v9472_v58 = vadd.f32 %v4511_v16, %v4429_v60 }
 0x738   :  { %v9474_v63 = vpop.f32.mrf.mxu0 }
 0x739   :  { %4921 = vmatmul.f32.gmra.mxu2 %v9225_v56  ;;  %5030 = vmatmul.f32.gmra.mxu3 %v10403_v31  ;;  %v10405_v56 = vand.u32 4294901760, %v9255_v53 }
 0x73a   :  { %v9479_v48 = vpop.f32.mrf.mxu1 }
 0x73b   :  { %5139 = vmatmul.f32.gmra.mxu0 %v9233_v26 }
 0x73c   :  { %v4432_v51 = vpop.f32.mrf.mxu2  ;;  %v4519_v47 = vpop.f32.mrf.mxu3 }
 0x73d   :  { %v4433_v6 = vadd.f32 %v4432_v51, %v9282_v13  ;;  %5222 = vmatmul.f32.gmra.mxu1 %v9233_v26  ;;  %v10406_v26 = vmov 0 }
 0x73e   :  { %v10407_v26 = vsel %vm9497_vm7, 4294967295, %v10406_v26 }
 0x73f   :  { %v9484_v22 = vadd.f32 %v4515_v33, %v4433_v6  ;;  %10408 = vst [vmem:[#allocation65_spill] sm:$0xff] %v10407_v26 }
 0x740   :  { %v9486_v52 = vpop.f32.mrf.mxu0 }
 0x741   :  { %10404 = vst [vmem:[#allocation36_spill] sm:$0xff] %v9484_v22  ;;  %4926 = vmatmul.f32.gmra.mxu2 %v9240_v0  ;;  %5036 = vmatmul.f32.gmra.mxu3 %v10405_v56  ;;  %v10415_v56 = vand.u32 4294901760, %v9285_v17 }
 0x742   :  { %v9491_v57 = vpop.f32.mrf.mxu1 }
 0x743   :  { %5143 = vmatmul.f32.gmra.mxu0 %v9248_v9 }
 0x744   :  { %v4436_v16 = vpop.f32.mrf.mxu2  ;;  %v4523_v10 = vpop.f32.mrf.mxu3 }
 0x745   :  { %v4437_v13 = vadd.f32 %v4436_v16, %v9297_v15  ;;  %5226 = vmatmul.f32.gmra.mxu1 %v9248_v9  ;;  %v6427_v15 = vsel %vm9497_vm7, 1.0, %v10391_v11 }
 0x746   :  { %v9514_v3 = vsub.f32 %v6427_v15, %v6427_v15 }
 0x747   :  { %v9507_v0 = vadd.f32 %v4519_v47, %v4437_v13  ;;  %v10417_v13 = vand.u32 4294901760, %v9300_v8 }
 0x748   :  { %v9512_v9 = vpop.f32.mrf.mxu0  ;;  %10410 = vst [vmem:[#allocation73_spill] sm:$0xff] %v9514_v3  ;;  %v9522_v33 = vand.u32 4294901760, %v9514_v3  ;;  %5600 = vmatpush.msrb.mxu0 %v9514_v3 }
 0x749   :  { %10409 = vst [vmem:[#allocation66_spill] sm:$0xff] %v9507_v0  ;;  %4931 = vmatmul.f32.gmra.mxu2 %v9255_v53  ;;  %5042 = vmatmul.f32.gmra.mxu3 %v10411_v2 }
 0x74a   :  { %v9519_v23 = vpop.f32.mrf.mxu1  ;;  %10412 = vst [vmem:[#allocation74_spill] sm:$0xff] %v9522_v33  ;;  %v5515_v31 = vsub.f32 %v9514_v3, %v9522_v33  ;;  %5814 = vmatpush.msrb.mxu2 %v9522_v33 }
 0x74b   :  { %5147 = vmatmul.f32.gmra.mxu0 %v9263_v44 }
 0x74c   :  { %v4440_v60 = vpop.f32.mrf.mxu2  ;;  %v4527_v11 = vpop.f32.mrf.mxu3  ;;  %v9531_v51 = vand.u32 4294901760, %v5515_v31 }
 0x74d   :  { %v4441_v53 = vadd.f32 %v4440_v60, %v9312_v45  ;;  %5230 = vmatmul.f32.gmra.mxu1 %v9263_v44 }
 0x74e   :  { %10413 = vst [vmem:[#allocation35_spill] sm:$0xff] %v9531_v51  ;;  %5517 = vmatpush.msra.mxu3 %v9531_v51 }
 0x74f   :  { %v9533_v47 = vadd.f32 %v4523_v10, %v4441_v53 }
 0x750   :  { %v9535_v6 = vpop.f32.mrf.mxu0  ;;  %6442 = vmatpush.msk.msrb.mxu3 %vm9497_vm7, %v10379_v19 }
 0x751   :  { %10414 = vst [vmem:[#allocation61_spill] sm:$0xff] %v9533_v47  ;;  %4936 = vmatmul.f32.gmra.mxu2 %v9270_v37  ;;  %5048 = vmatmul.f32.gmra.mxu3 %v10415_v56 }
 0x752   :  { %v9541_v5 = vpop.f32.mrf.mxu1 }
 0x753   :  { %5151 = vmatmul.f32.gmra.mxu0 %v9278_v42 }
 0x754   :  { %v4444_v44 = vpop.f32.mrf.mxu2  ;;  %v4531_v45 = vpop.f32.mrf.mxu3 }
 0x755   :  { %v4445_v16 = vadd.f32 %v4444_v44, %v9327_v24  ;;  %5234 = vmatmul.f32.gmra.mxu1 %v9278_v42 }
 0x757   :  { %v9549_v10 = vadd.f32 %v4527_v11, %v4445_v16 }
 0x758   :  { %v9551_v37 = vpop.f32.mrf.mxu0 }
 0x759   :  { %10416 = vst [vmem:[#allocation62_spill] sm:$0xff] %v9549_v10  ;;  %4941 = vmatmul.f32.gmra.mxu2 %v9285_v17  ;;  %5054 = vmatmul.f32.gmra.mxu3 %v10417_v13  ;;  %v10419_v17 = vand.u32 4294901760, %v9315_v14 }
 0x75a   :  { %v9556_v15 = vpop.f32.mrf.mxu1 }
 0x75b   :  { %5155 = vmatmul.f32.gmra.mxu0 %v9293_v12 }
 0x75c   :  { %v4448_v2 = vpop.f32.mrf.mxu2  ;;  %v4535_v60 = vpop.f32.mrf.mxu3 }
 0x75d   :  { %v4449_v31 = vadd.f32 %v4448_v2, %v9342_v25  ;;  %5238 = vmatmul.f32.gmra.mxu1 %v9293_v12 }
 0x75f   :  { %v9561_v42 = vadd.f32 %v4531_v45, %v4449_v31 }
 0x760   :  { %v9563_v24 = vpop.f32.mrf.mxu0 }
 0x761   :  { %10418 = vst [vmem:[#allocation70_spill] sm:$0xff] %v9561_v42  ;;  %4946 = vmatmul.f32.gmra.mxu2 %v9300_v8  ;;  %5060 = vmatmul.f32.gmra.mxu3 %v10419_v17  ;;  %v10421_v8 = vand.u32 4294901760, %v9330_v39 }
 0x762   :  { %v9568_v11 = vpop.f32.mrf.mxu1 }
 0x763   :  { %5159 = vmatmul.f32.gmra.mxu0 %v9308_v21 }
 0x764   :  { %v4452_v53 = vpop.f32.mrf.mxu2  ;;  %v4539_v56 = vpop.f32.mrf.mxu3 }
 0x765   :  { %v4453_v44 = vadd.f32 %v4452_v53, %v9357_v36  ;;  %5242 = vmatmul.f32.gmra.mxu1 %v9308_v21 }
 0x767   :  { %v9573_v12 = vadd.f32 %v4535_v60, %v4453_v44  ;;  %v5286_v60 = vpop.trf.xlu1  ;;  %v10424_v44 = vld [vmem:[#allocation75_spill] sm:$0xff] }
 0x768   :  { %v9575_v25 = vpop.f32.mrf.mxu0 }
 0x769   :  { %10420 = vst [vmem:[#allocation71_spill] sm:$0xff] %v9573_v12  ;;  %4951 = vmatmul.f32.gmra.mxu2 %v9315_v14  ;;  %5066 = vmatmul.f32.gmra.mxu3 %v10421_v8  ;;  %v10423_v14 = vand.u32 4294901760, %v9345_v41 }
 0x76a   :  { %v9580_v45 = vpop.f32.mrf.mxu1 }
 0x76b   :  { %5163 = vmatmul.f32.gmra.mxu0 %v9323_v62 }
 0x76c   :  { %v4456_v16 = vpop.f32.mrf.mxu2  ;;  %v4543_v13 = vpop.f32.mrf.mxu3 }
 0x76d   :  { %v4457_v2 = vadd.f32 %v4456_v16, %v9372_v7  ;;  %5246 = vmatmul.f32.gmra.mxu1 %v9323_v62 }
 0x76f   :  { %v9585_v21 = vadd.f32 %v4539_v56, %v4457_v2  ;;  %v5287_v16 = vpop.trf.xlu1 }
 0x770   :  { %v9587_v36 = vpop.f32.mrf.mxu0 }
 0x771   :  { %10422 = vst [vmem:[#allocation34_spill] sm:$0xff] %v9585_v21  ;;  %4956 = vmatmul.f32.gmra.mxu2 %v9330_v39  ;;  %5072 = vmatmul.f32.gmra.mxu3 %v10423_v14  ;;  %v10426_v39 = vld [vmem:[#allocation69_spill] sm:$0xff] }
 0x772   :  { %v9592_v31 = vpop.f32.mrf.mxu1  ;;  %v10427_v8 = vand.u32 4294901760, %v10426_v39 }
 0x773   :  { %5167 = vmatmul.f32.gmra.mxu0 %v9338_v1 }
 0x774   :  { %v4460_v17 = vpop.f32.mrf.mxu2  ;;  %v4547_v53 = vpop.f32.mrf.mxu3 }
 0x775   :  { %v4461_v7 = vadd.f32 %v4460_v17, %v10424_v44  ;;  %5250 = vmatmul.f32.gmra.mxu1 %v9338_v1 }
 0x777   :  { %v9597_v62 = vadd.f32 %v4543_v13, %v4461_v7  ;;  %v5288_v7 = vpop.trf.xlu1 }
 0x778   :  { %v9599_v56 = vpop.f32.mrf.mxu0 }
 0x779   :  { %10425 = vst [vmem:[#allocation57_spill] sm:$0xff] %v9597_v62  ;;  %4961 = vmatmul.f32.gmra.mxu2 %v9345_v41  ;;  %5078 = vmatmul.f32.gmra.mxu3 %v10427_v8  ;;  %v10429_v41 = vld [vmem:[#allocation72_spill] sm:$0xff] }
 0x77a   :  { %v9604_v2 = vpop.f32.mrf.mxu1  ;;  %v10430_v44 = vand.u32 4294901760, %v10429_v41 }
 0x77b   :  { %5171 = vmatmul.f32.gmra.mxu0 %v9353_v32 }
 0x77c   :  { %v4464_v14 = vpop.f32.mrf.mxu2  ;;  %v4551_v33 = vpop.f32.mrf.mxu3 }
 0x77d   :  { %v4465_v17 = vadd.f32 %v4464_v14, %v9402_v29  ;;  %5254 = vmatmul.f32.gmra.mxu1 %v9353_v32 }
 0x77f   :  { %v9609_v1 = vadd.f32 %v4547_v53, %v4465_v17 }
 0x780   :  { %v9611_v13 = vpop.f32.mrf.mxu0 }
 0x781   :  { %10428 = vst [vmem:[#allocation58_spill] sm:$0xff] %v9609_v1  ;;  %4966 = vmatmul.f32.gmra.mxu2 %v10426_v39  ;;  %5084 = vmatmul.f32.gmra.mxu3 %v10430_v44  ;;  %v10432_v39 = vld [vmem:[#allocation76_spill] sm:$0xff]  ;;  %v5289_v44 = vpop.trf.xlu1 }
 0x782   :  { %v9616_v8 = vpop.f32.mrf.mxu1  ;;  %v10433_v14 = vand.u32 4294901760, %v10432_v39 }
 0x783   :  { %5175 = vmatmul.f32.gmra.mxu0 %v9368_v59 }
 0x784   :  { %v4468_v3 = vpop.f32.mrf.mxu2  ;;  %v4555_v26 = vpop.f32.mrf.mxu3 }
 0x785   :  { %v4469_v29 = vadd.f32 %v4468_v3, %v9414_v20  ;;  %5258 = vmatmul.f32.gmra.mxu1 %v9368_v59  ;;  %v5304_v20 = vsel %vm5302_vm8, %v5286_v60, 0 }
 0x787   :  { %v9621_v32 = vadd.f32 %v4551_v33, %v4469_v29  ;;  %v9636_v33 = vand.u32 4294901760, %v5304_v20  ;;  %v10435_v29 = vand.u32 4294901760, %v9405_v35 }
 0x788   :  { %v9623_v53 = vpop.f32.mrf.mxu0 }
 0x789   :  { %10431 = vst [vmem:[#allocation67_spill] sm:$0xff] %v9621_v32  ;;  %4971 = vmatmul.f32.gmra.mxu2 %v10429_v41  ;;  %5090 = vmatmul.f32.gmra.mxu3 %v10433_v14  ;;  %v5369_v32 = vsub.f32 %v5304_v20, %v9636_v33 }
 0x78a   :  { %v9628_v17 = vpop.f32.mrf.mxu1 }
 0x78b   :  { %5179 = vmatmul.f32.gmra.mxu0 %v9383_v30 }
 0x78c   :  { %v4472_v19 = vpop.f32.mrf.mxu2  ;;  %v4559_v51 = vpop.f32.mrf.mxu3 }
 0x78d   :  { %v4473_v59 = vadd.f32 %v4472_v19, %v9422_v46  ;;  %5262 = vmatmul.f32.gmra.mxu1 %v9383_v30  ;;  %v5290_v19 = vpop.trf.xlu1 }
 0x78f   :  { %v9634_v3 = vadd.f32 %v4555_v26, %v4473_v59  ;;  %v5307_v26 = vsel %vm5302_vm8, %v5287_v16, 0  ;;  %v5370_v59 = vand.u32 4294901760, %v5369_v32 }
 0x790   :  { %v9638_v41 = vpop.f32.mrf.mxu0 }
 0x791   :  { %10434 = vst [vmem:[#allocation68_spill] sm:$0xff] %v9634_v3  ;;  %4976 = vmatmul.f32.gmra.mxu2 %v10432_v39  ;;  %5096 = vmatmul.f32.gmra.mxu3 %v10435_v29  ;;  %v9652_v3 = vand.u32 4294901760, %v5307_v26  ;;  %v5371_v1 = vsub.f32 %v5369_v32, %v5370_v59 }
 0x792   :  { %v9643_v14 = vpop.f32.mrf.mxu1 }
 0x793   :  { %5183 = vmatmul.f32.gmra.mxu0 %v9398_v28  ;;  %v5377_v62 = vsub.f32 %v5307_v26, %v9652_v3 }
 0x794   :  { %v4476_v46 = vpop.f32.mrf.mxu2  ;;  %v4563_v30 = vpop.f32.mrf.mxu3 }
 0x795   :  { %v4477_v60 = vadd.f32 %v4476_v46, %v9430_v38  ;;  %5266 = vmatmul.f32.gmra.mxu1 %v9398_v28  ;;  %v5310_v38 = vsel %vm5302_vm8, %v5288_v7, 0  ;;  %v5372_v46 = vand.u32 4294901760, %v5371_v1  ;;  %v5313_v1 = vsel %vm5302_vm8, %v5289_v44, 0 }
 0x796   :  { %v9668_v42 = vand.u32 4294901760, %v5313_v1 }
 0x797   :  { %v9650_v39 = vadd.f32 %v4559_v51, %v4477_v60  ;;  %v5291_v51 = vpop.trf.xlu1 }
 0x798   :  { %v5124_v29 = vpop.f32.mrf.mxu0  ;;  %v5393_v44 = vsub.f32 %v5313_v1, %v9668_v42 }
 0x799   :  { %10436 = vst [vmem:[#allocation33_spill] sm:$0xff] %v9650_v39  ;;  %4981 = vmatmul.f32.gmra.mxu2 %v9405_v35  ;;  %5519 = vmatmul.f32.vlgmr.msra.gmra.mxu3 %v9636_v33  ;;  %v9661_v39 = vand.u32 4294901760, %v5310_v38  ;;  %v5378_v35 = vand.u32 4294901760, %v5377_v62 }
 0x79a   :  { %v5207_v20 = vpop.f32.mrf.mxu1 }
 0x79b   :  { %5603 = vmatmul.f32.vlgmr.msrb.gmra.mxu0 %v5369_v32  ;;  %v4822_v32 = vadd.f32 %v9432_v61, %v9425_v40  ;;  %v5385_v7 = vsub.f32 %v5310_v38, %v9661_v39  ;;  %v4826_v61 = vadd.f32 %v9443_v4, %v9436_v27 }
 0x79c   :  { %v4480_v16 = vpop.f32.mrf.mxu2  ;;  %v5007_v21 = vpop.f32.mrf.mxu3 }
 0x79d   :  { %v4481_v28 = vadd.f32 %v4480_v16, %v9441_v55  ;;  %5702 = vmatmul.f32.vlgmr.msrb.gmra.mxu1 %v5370_v59  ;;  %v5379_v55 = vsub.f32 %v5377_v62, %v5378_v35 }
 0x79f   :  { %v9659_v60 = vadd.f32 %v4563_v30, %v4481_v28  ;;  %v5292_v10 = vpop.trf.xlu1 }
 0x7a0   :  { %v5128_v12 = vpop.f32.mrf.mxu0 }
 0x7a1   :  { %10437 = vst [vmem:[#allocation53_spill] sm:$0xff] %v9659_v60  ;;  %5373 = vmatmul.f32.vlgmr.msra.gmra.mxu2 %v5372_v46  ;;  %5523 = vmatmul.f32.gmra.mxu3 %v9652_v3  ;;  %v5380_v60 = vand.u32 4294901760, %v5379_v55  ;;  %v5386_v46 = vand.u32 4294901760, %v5385_v7 }
 0x7a2   :  { %v5211_v26 = vpop.f32.mrf.mxu1 }
 0x7a3   :  { %5608 = vmatmul.f32.gmra.mxu0 %v5377_v62 }
 0x7a4   :  { %v4907_v59 = vpop.f32.mrf.mxu2  ;;  %v5013_v16 = vpop.f32.mrf.mxu3 }
 0x7a5   :  { %v4908_v30 = vadd.f32 %v4907_v59, %v4822_v32  ;;  %5708 = vmatmul.f32.gmra.mxu1 %v5378_v35  ;;  %v5316_v32 = vsel %vm5302_vm8, %v5290_v19, 0 }
 0x7a6   :  { %v9677_v59 = vand.u32 4294901760, %v5316_v32 }
 0x7a7   :  { %v5008_v28 = vadd.f32 %v5007_v21, %v4908_v30  ;;  %v5387_v21 = vsub.f32 %v5385_v7, %v5386_v46  ;;  %v5394_v30 = vand.u32 4294901760, %v5393_v44  ;;  %v5293_v27 = vpop.trf.xlu1 }
 0x7a8   :  { %v5132_v47 = vpop.f32.mrf.mxu0  ;;  %v5401_v19 = vsub.f32 %v5316_v32, %v9677_v59 }
 0x7a9   :  { %v5125_v0 = vadd.f32 %v5124_v29, %v5008_v28  ;;  %5381 = vmatmul.f32.gmra.mxu2 %v5380_v60  ;;  %5527 = vmatmul.f32.gmra.mxu3 %v9661_v39  ;;  %v5388_v60 = vand.u32 4294901760, %v5387_v21 }
 0x7aa   :  { %v5215_v40 = vpop.f32.mrf.mxu1 }
 0x7ab   :  { %v9673_v62 = vadd.f32 %v5207_v20, %v5125_v0  ;;  %5613 = vmatmul.f32.gmra.mxu0 %v5385_v7  ;;  %v4830_v0 = vadd.f32 %v9455_v43, %v9450_v54  ;;  %v5395_v7 = vsub.f32 %v5393_v44, %v5394_v30  ;;  %v4834_v43 = vadd.f32 %v9467_v18, %v9462_v49 }
 0x7ac   :  { %v4912_v38 = vpop.f32.mrf.mxu2  ;;  %v5019_v35 = vpop.f32.mrf.mxu3 }
 0x7ad   :  { %10438 = vst [vmem:[#allocation54_spill] sm:$0xff] %v9673_v62  ;;  %v4913_v55 = vadd.f32 %v4912_v38, %v4826_v61  ;;  %5714 = vmatmul.f32.gmra.mxu1 %v5386_v46  ;;  %v5319_v46 = vsel %vm5302_vm8, %v5291_v51, 0  ;;  %v5396_v21 = vand.u32 4294901760, %v5395_v7 }
 0x7ae   :  { %v9686_v38 = vand.u32 4294901760, %v5319_v46 }
 0x7af   :  { %v5014_v29 = vadd.f32 %v5013_v16, %v4913_v55  ;;  %v5402_v55 = vand.u32 4294901760, %v5401_v19 }
 0x7b0   :  { %v5136_v28 = vpop.f32.mrf.mxu0  ;;  %v5409_v51 = vsub.f32 %v5319_v46, %v9686_v38 }
 0x7b1   :  { %v5129_v22 = vadd.f32 %v5128_v12, %v5014_v29  ;;  %5389 = vmatmul.f32.gmra.mxu2 %v5388_v60  ;;  %5531 = vmatmul.f32.gmra.mxu3 %v9668_v42 }
 0x7b2   :  { %v5219_v4 = vpop.f32.mrf.mxu1 }
 0x7b3   :  { %v9682_v20 = vadd.f32 %v5211_v26, %v5129_v22  ;;  %5618 = vmatmul.f32.gmra.mxu0 %v5393_v44  ;;  %v5403_v26 = vsub.f32 %v5401_v19, %v5402_v55  ;;  %v5294_v44 = vpop.trf.xlu1 }
 0x7b4   :  { %v4917_v16 = vpop.f32.mrf.mxu2  ;;  %v5025_v1 = vpop.f32.mrf.mxu3 }
 0x7b5   :  { %10439 = vst [vmem:[#allocation63_spill] sm:$0xff] %v9682_v20  ;;  %v4918_v61 = vadd.f32 %v4917_v16, %v4830_v0  ;;  %5720 = vmatmul.f32.gmra.mxu1 %v5394_v30  ;;  %v5322_v30 = vsel %vm5302_vm8, %v5292_v10, 0  ;;  %v5404_v7 = vand.u32 4294901760, %v5403_v26 }
 0x7b6   :  { %v9695_v16 = vand.u32 4294901760, %v5322_v30 }
 0x7b7   :  { %v5020_v12 = vadd.f32 %v5019_v35, %v4918_v61  ;;  %v5410_v61 = vand.u32 4294901760, %v5409_v51 }
 0x7b8   :  { %v5140_v29 = vpop.f32.mrf.mxu0  ;;  %v5417_v10 = vsub.f32 %v5322_v30, %v9695_v16 }
 0x7b9   :  { %v5133_v60 = vadd.f32 %v5132_v47, %v5020_v12  ;;  %5397 = vmatmul.f32.gmra.mxu2 %v5396_v21  ;;  %5535 = vmatmul.f32.gmra.mxu3 %v9677_v59  ;;  %v5411_v46 = vsub.f32 %v5409_v51, %v5410_v61 }
 0x7ba   :  { %v5223_v54 = vpop.f32.mrf.mxu1 }
 0x7bb   :  { %v9691_v22 = vadd.f32 %v5215_v40, %v5133_v60  ;;  %5623 = vmatmul.f32.gmra.mxu0 %v5401_v19  ;;  %v4838_v40 = vadd.f32 %v9479_v48, %v9474_v63  ;;  %v5412_v26 = vand.u32 4294901760, %v5411_v46 }
 0x7bc   :  { %v4922_v35 = vpop.f32.mrf.mxu2  ;;  %v5031_v32 = vpop.f32.mrf.mxu3 }
 0x7bd   :  { %v4923_v0 = vadd.f32 %v4922_v35, %v4834_v43  ;;  %5726 = vmatmul.f32.gmra.mxu1 %v5402_v55  ;;  %v5325_v55 = vsel %vm5302_vm8, %v5293_v27, 0 }
 0x7be   :  { %v9704_v35 = vand.u32 4294901760, %v5325_v55 }
 0x7bf   :  { %v5026_v47 = vadd.f32 %v5025_v1, %v4923_v0  ;;  %v5418_v0 = vand.u32 4294901760, %v5417_v10 }
 0x7c0   :  { %v5144_v12 = vpop.f32.mrf.mxu0  ;;  %v5425_v27 = vsub.f32 %v5325_v55, %v9704_v35 }
 0x7c1   :  { %v5137_v49 = vadd.f32 %v5136_v28, %v5026_v47  ;;  %5405 = vmatmul.f32.gmra.mxu2 %v5404_v7  ;;  %5539 = vmatmul.f32.gmra.mxu3 %v9686_v38  ;;  %v5295_v28 = vpop.trf.xlu1  ;;  %v5419_v30 = vsub.f32 %v5417_v10, %v5418_v0 }
 0x7c2   :  { %v5227_v18 = vpop.f32.mrf.mxu1 }
 0x7c3   :  { %v9700_v19 = vadd.f32 %v5219_v4, %v5137_v49  ;;  %5628 = vmatmul.f32.gmra.mxu0 %v5409_v51  ;;  %v4842_v4 = vadd.f32 %v9491_v57, %v9486_v52 }
 0x7c4   :  { %v4927_v1 = vpop.f32.mrf.mxu2  ;;  %v5037_v21 = vpop.f32.mrf.mxu3 }
 0x7c5   :  { %v4928_v60 = vadd.f32 %v4927_v1, %v4838_v40  ;;  %5732 = vmatmul.f32.gmra.mxu1 %v5410_v61  ;;  %v5328_v61 = vsel %vm5302_vm8, %v5294_v44, 0  ;;  %v5420_v40 = vand.u32 4294901760, %v5419_v30  ;;  %v5426_v1 = vand.u32 4294901760, %v5425_v27 }
 0x7c6   :  { %v9713_v46 = vand.u32 4294901760, %v5328_v61 }
 0x7c7   :  { %v5032_v43 = vadd.f32 %v5031_v32, %v4928_v60 }
 0x7c8   :  { %v5148_v47 = vpop.f32.mrf.mxu0  ;;  %v5433_v44 = vsub.f32 %v5328_v61, %v9713_v46 }
 0x7c9   :  { %v5141_v63 = vadd.f32 %v5140_v29, %v5032_v43  ;;  %5413 = vmatmul.f32.gmra.mxu2 %v5412_v26  ;;  %5543 = vmatmul.f32.gmra.mxu3 %v9695_v16  ;;  %v5296_v60 = vpop.trf.xlu1 }
 0x7ca   :  { %v5231_v48 = vpop.f32.mrf.mxu1 }
 0x7cb   :  { %v9709_v51 = vadd.f32 %v5223_v54, %v5141_v63  ;;  %5633 = vmatmul.f32.gmra.mxu0 %v5417_v10  ;;  %v4846_v54 = vadd.f32 %v9519_v23, %v9512_v9 }
 0x7cc   :  { %v4932_v32 = vpop.f32.mrf.mxu2  ;;  %v5043_v7 = vpop.f32.mrf.mxu3 }
 0x7cd   :  { %v4933_v49 = vadd.f32 %v4932_v32, %v4842_v4  ;;  %5738 = vmatmul.f32.gmra.mxu1 %v5418_v0  ;;  %v5331_v0 = vsel %vm5302_vm8, %v5295_v28, 0  ;;  %v5434_v32 = vand.u32 4294901760, %v5433_v44 }
 0x7ce   :  { %v9722_v30 = vand.u32 4294901760, %v5331_v0 }
 0x7cf   :  { %v5038_v29 = vadd.f32 %v5037_v21, %v4933_v49  ;;  %v5427_v21 = vsub.f32 %v5425_v27, %v5426_v1  ;;  %v5435_v61 = vsub.f32 %v5433_v44, %v5434_v32 }
 0x7d0   :  { %v5152_v43 = vpop.f32.mrf.mxu0 }
 0x7d1   :  { %v5145_v52 = vadd.f32 %v5144_v12, %v5038_v29  ;;  %5421 = vmatmul.f32.gmra.mxu2 %v5420_v40  ;;  %5547 = vmatmul.f32.gmra.mxu3 %v9704_v35  ;;  %v5428_v4 = vand.u32 4294901760, %v5427_v21  ;;  %v5297_v23 = vpop.trf.xlu1 }
 0x7d2   :  { %v5235_v57 = vpop.f32.mrf.mxu1 }
 0x7d3   :  { %v9718_v10 = vadd.f32 %v5227_v18, %v5145_v52  ;;  %5638 = vmatmul.f32.gmra.mxu0 %v5425_v27  ;;  %v4850_v27 = vadd.f32 %v9541_v5, %v9535_v6 }
 0x7d4   :  { %v4937_v55 = vpop.f32.mrf.mxu2  ;;  %v5049_v26 = vpop.f32.mrf.mxu3 }
 0x7d5   :  { %v4938_v63 = vadd.f32 %v4937_v55, %v4846_v54  ;;  %5744 = vmatmul.f32.gmra.mxu1 %v5426_v1  ;;  %v5334_v1 = vsel %vm5302_vm8, %v5296_v60, 0  ;;  %v5436_v54 = vand.u32 4294901760, %v5435_v61 }
 0x7d6   :  { %v9735_v21 = vand.u32 4294901760, %v5334_v1 }
 0x7d7   :  { %v5044_v12 = vadd.f32 %v5043_v7, %v4938_v63  ;;  %v5441_v7 = vsub.f32 %v5331_v0, %v9722_v30 }
 0x7d8   :  { %v9724_v49 = vpop.f32.mrf.mxu0  ;;  %v5449_v60 = vsub.f32 %v5334_v1, %v9735_v21 }
 0x7d9   :  { %v5149_v9 = vadd.f32 %v5148_v47, %v5044_v12  ;;  %5429 = vmatmul.f32.gmra.mxu2 %v5428_v4  ;;  %5551 = vmatmul.f32.gmra.mxu3 %v9713_v46  ;;  %v5442_v55 = vand.u32 4294901760, %v5441_v7  ;;  %v5298_v0 = vpop.trf.xlu1 }
 0x7da   :  { %v9727_v18 = vpop.f32.mrf.mxu1 }
 0x7db   :  { %v9731_v28 = vadd.f32 %v5231_v48, %v5149_v9  ;;  %5643 = vmatmul.f32.gmra.mxu0 %v5433_v44  ;;  %v4854_v48 = vadd.f32 %v9556_v15, %v9551_v37 }
 0x7dc   :  { %v4942_v29 = vpop.f32.mrf.mxu2  ;;  %v5055_v40 = vpop.f32.mrf.mxu3 }
 0x7dd   :  { %v4943_v47 = vadd.f32 %v4942_v29, %v4850_v27  ;;  %5750 = vmatmul.f32.gmra.mxu1 %v5434_v32  ;;  %v5337_v32 = vsel %vm5302_vm8, %v5297_v23, 0  ;;  %v5450_v29 = vand.u32 4294901760, %v5449_v60 }
 0x7de   :  { %v9750_v61 = vand.u32 4294901760, %v5337_v32 }
 0x7df   :  { %v5050_v52 = vadd.f32 %v5049_v26, %v4943_v47  ;;  %v5443_v26 = vsub.f32 %v5441_v7, %v5442_v55  ;;  %v5451_v23 = vsub.f32 %v5449_v60, %v5450_v29 }
 0x7e0   :  { %v9737_v63 = vpop.f32.mrf.mxu0 }
 0x7e1   :  { %v5153_v6 = vadd.f32 %v5152_v43, %v5050_v52  ;;  %5437 = vmatmul.f32.gmra.mxu2 %v5436_v54  ;;  %5555 = vmatmul.f32.gmra.mxu3 %v9722_v30  ;;  %v5444_v27 = vand.u32 4294901760, %v5443_v26  ;;  %v5299_v54 = vpop.trf.xlu1 }
 0x7e2   :  { %v9740_v5 = vpop.f32.mrf.mxu1 }
 0x7e3   :  { %v9744_v44 = vadd.f32 %v5235_v57, %v5153_v6  ;;  %5648 = vmatmul.f32.gmra.mxu0 %v5441_v7  ;;  %v4858_v57 = vadd.f32 %v9568_v11, %v9563_v24  ;;  %v5457_v7 = vsub.f32 %v5337_v32, %v9750_v61  ;;  %v5452_v6 = vand.u32 4294901760, %v5451_v23 }
 0x7e4   :  { %v4947_v12 = vpop.f32.mrf.mxu2  ;;  %v5061_v4 = vpop.f32.mrf.mxu3  ;;  %v4862_v11 = vadd.f32 %v9580_v45, %v9575_v25  ;;  %v4866_v45 = vadd.f32 %v9592_v31, %v9587_v36 }
 0x7e5   :  { %v4948_v43 = vadd.f32 %v4947_v12, %v4854_v48  ;;  %5756 = vmatmul.f32.gmra.mxu1 %v5442_v55  ;;  %v5458_v26 = vand.u32 4294901760, %v5457_v7 }
 0x7e7   :  { %v9748_v9 = vadd.f32 %v5055_v40, %v4948_v43  ;;  %v5340_v40 = vsel %vm5302_vm8, %v5298_v0, 0  ;;  %v5459_v0 = vsub.f32 %v5457_v7, %v5458_v26 }
 0x7e8   :  { %v5164_v37 = vpop.f32.mrf.mxu0  ;;  %v9759_v48 = vand.u32 4294901760, %v5340_v40 }
 0x7e9   :  { %5445 = vmatmul.f32.gmra.mxu2 %v5444_v27  ;;  %5559 = vmatmul.f32.gmra.mxu3 %v9735_v21 }
 0x7ea   :  { %v5247_v15 = vpop.f32.mrf.mxu1 }
 0x7eb   :  { %5653 = vmatmul.f32.gmra.mxu0 %v5449_v60  ;;  %v5465_v60 = vsub.f32 %v5340_v40, %v9759_v48 }
 0x7ec   :  { %v4952_v1 = vpop.f32.mrf.mxu2  ;;  %v5067_v47 = vpop.f32.mrf.mxu3 }
 0x7ed   :  { %v4953_v52 = vadd.f32 %v4952_v1, %v4858_v57  ;;  %5762 = vmatmul.f32.gmra.mxu1 %v5450_v29  ;;  %v5460_v57 = vand.u32 4294901760, %v5459_v0  ;;  %v5466_v1 = vand.u32 4294901760, %v5465_v60 }
 0x7ef   :  { %v9757_v55 = vadd.f32 %v5061_v4, %v4953_v52  ;;  %v5343_v4 = vsel %vm5302_vm8, %v5299_v54, 0  ;;  %v5300_v52 = vpop.trf.xlu1 }
 0x7f0   :  { %v5168_v12 = vpop.f32.mrf.mxu0  ;;  %v9766_v23 = vand.u32 4294901760, %v5343_v4 }
 0x7f1   :  { %5453 = vmatmul.f32.gmra.mxu2 %v5452_v6  ;;  %5563 = vmatmul.f32.gmra.mxu3 %v9750_v61 }
 0x7f2   :  { %v5251_v24 = vpop.f32.mrf.mxu1  ;;  %v5473_v40 = vsub.f32 %v5343_v4, %v9766_v23 }
 0x7f3   :  { %5658 = vmatmul.f32.gmra.mxu0 %v5457_v7 }
 0x7f4   :  { %v4957_v32 = vpop.f32.mrf.mxu2  ;;  %v5073_v43 = vpop.f32.mrf.mxu3 }
 0x7f5   :  { %v4958_v27 = vadd.f32 %v4957_v32, %v4862_v11  ;;  %5768 = vmatmul.f32.gmra.mxu1 %v5458_v26  ;;  %v5346_v11 = vsel %vm5302_vm8, %v5300_v52, 0 }
 0x7f7   :  { %v5068_v29 = vadd.f32 %v5067_v47, %v4958_v27  ;;  %v5467_v47 = vsub.f32 %v5465_v60, %v5466_v1  ;;  %v9775_v27 = vand.u32 4294901760, %v5346_v11  ;;  %v5301_v36 = vpop.trf.xlu1 }
 0x7f8   :  { %v5172_v6 = vpop.f32.mrf.mxu0  ;;  %v5349_v52 = vsel %vm5302_vm8, %v5301_v36, 0 }
 0x7f9   :  { %v5165_v62 = vadd.f32 %v5164_v37, %v5068_v29  ;;  %5461 = vmatmul.f32.gmra.mxu2 %v5460_v57  ;;  %5567 = vmatmul.f32.gmra.mxu3 %v9759_v48  ;;  %v5468_v32 = vand.u32 4294901760, %v5467_v47  ;;  %v5474_v29 = vand.u32 4294901760, %v5473_v40 }
 0x7fa   :  { %v5255_v25 = vpop.f32.mrf.mxu1 }
 0x7fb   :  { %v9771_v7 = vadd.f32 %v5247_v15, %v5165_v62  ;;  %5663 = vmatmul.f32.gmra.mxu0 %v5465_v60  ;;  %v4870_v62 = vadd.f32 %v9604_v2, %v9599_v56  ;;  %v5481_v60 = vsub.f32 %v5346_v11, %v9775_v27  ;;  %v4874_v56 = vadd.f32 %v9616_v8, %v9611_v13 }
 0x7fc   :  { %v4962_v54 = vpop.f32.mrf.mxu2  ;;  %v5079_v26 = vpop.f32.mrf.mxu3  ;;  %v4878_v13 = vadd.f32 %v9628_v17, %v9623_v53 }
 0x7fd   :  { %v4963_v0 = vadd.f32 %v4962_v54, %v4866_v45  ;;  %5774 = vmatmul.f32.gmra.mxu1 %v5466_v1  ;;  %v9784_v54 = vand.u32 4294901760, %v5349_v52 }
 0x7ff   :  { %v5074_v37 = vadd.f32 %v5073_v43, %v4963_v0  ;;  %v5475_v43 = vsub.f32 %v5473_v40, %v5474_v29  ;;  %v5482_v0 = vand.u32 4294901760, %v5481_v60 }
 0x800   :  { %v5176_v57 = vpop.f32.mrf.mxu0 }
 0x801   :  { %v5169_v20 = vadd.f32 %v5168_v12, %v5074_v37  ;;  %5469 = vmatmul.f32.gmra.mxu2 %v5468_v32  ;;  %5571 = vmatmul.f32.gmra.mxu3 %v9766_v23  ;;  %v5476_v47 = vand.u32 4294901760, %v5475_v43 }
 0x802   :  { %v5259_v31 = vpop.f32.mrf.mxu1 }
 0x803   :  { %v9780_v15 = vadd.f32 %v5251_v24, %v5169_v20  ;;  %5668 = vmatmul.f32.gmra.mxu0 %v5473_v40  ;;  %v5489_v20 = vsub.f32 %v5349_v52, %v9784_v54  ;;  %v5483_v40 = vsub.f32 %v5481_v60, %v5482_v0 }
 0x804   :  { %v4967_v4 = vpop.f32.mrf.mxu2  ;;  %v5085_v1 = vpop.f32.mrf.mxu3 }
 0x805   :  { %v4968_v45 = vadd.f32 %v4967_v4, %v4870_v62  ;;  %5780 = vmatmul.f32.gmra.mxu1 %v5474_v29  ;;  %v5490_v62 = vand.u32 4294901760, %v5489_v20 }
 0x807   :  { %v5080_v12 = vadd.f32 %v5079_v26, %v4968_v45  ;;  %v5491_v4 = vsub.f32 %v5489_v20, %v5490_v62 }
 0x808   :  { %v5180_v32 = vpop.f32.mrf.mxu0 }
 0x809   :  { %v5173_v37 = vadd.f32 %v5172_v6, %v5080_v12  ;;  %5477 = vmatmul.f32.gmra.mxu2 %v5476_v47  ;;  %5575 = vmatmul.f32.gmra.mxu3 %v9775_v27  ;;  %v5484_v6 = vand.u32 4294901760, %v5483_v40  ;;  %v5492_v47 = vand.u32 4294901760, %v5491_v4 }
 0x80a   :  { %v5263_v24 = vpop.f32.mrf.mxu1 }
 0x80b   :  { %v9789_v2 = vadd.f32 %v5255_v25, %v5173_v37  ;;  %5673 = vmatmul.f32.gmra.mxu0 %v5481_v60 }
 0x80c   :  { %v4972_v26 = vpop.f32.mrf.mxu2  ;;  %v5091_v11 = vpop.f32.mrf.mxu3 }
 0x80d   :  { %v4973_v29 = vadd.f32 %v4972_v26, %v4874_v56  ;;  %5786 = vmatmul.f32.gmra.mxu1 %v5482_v0 }
 0x80f   :  { %v5086_v36 = vadd.f32 %v5085_v1, %v4973_v29 }
 0x810   :  { %v5184_v25 = vpop.f32.mrf.mxu0 }
 0x811   :  { %v5177_v43 = vadd.f32 %v5176_v57, %v5086_v36  ;;  %5485 = vmatmul.f32.gmra.mxu2 %v5484_v6  ;;  %5579 = vmatmul.f32.gmra.mxu3 %v9784_v54  ;;  %v4882_v57 = vadd.f32 %v9643_v14, %v9638_v41 }
 0x812   :  { %v5267_v45 = vpop.f32.mrf.mxu1 }
 0x813   :  { %v9795_v8 = vadd.f32 %v5259_v31, %v5177_v43  ;;  %5678 = vmatmul.f32.gmra.mxu0 %v5489_v20 }
 0x814   :  { %v4977_v60 = vpop.f32.mrf.mxu2  ;;  %v5097_v52 = vpop.f32.mrf.mxu3 }
 0x815   :  { %v4978_v12 = vadd.f32 %v4977_v60, %v4878_v13  ;;  %5792 = vmatmul.f32.gmra.mxu1 %v5490_v62 }
 0x817   :  { %v5092_v1 = vadd.f32 %v5091_v11, %v4978_v12 }
 0x818   :  { %v5604_v37 = vpop.f32.mrf.mxu0 }
 0x819   :  { %v5181_v0 = vadd.f32 %v5180_v32, %v5092_v1  ;;  %5493 = vmatmul.f32.gmra.mxu2 %v5492_v47  ;;  %5898 = vmatmul.f32.vlgmr.msrb.gmra.mxu3 %v9636_v33 }
 0x81a   :  { %v5703_v20 = vpop.f32.mrf.mxu1 }
 0x81b   :  { %v9800_v53 = vadd.f32 %v5263_v24, %v5181_v0 }
 0x81c   :  { %v4982_v17 = vpop.f32.mrf.mxu2  ;;  %v5520_v31 = vpop.f32.mrf.mxu3 }
 0x81d   :  { %v4983_v56 = vadd.f32 %v4982_v17, %v4882_v57 }
 0x81f   :  { %v5098_v40 = vadd.f32 %v5097_v52, %v4983_v56 }
 0x820   :  { %v5609_v6 = vpop.f32.mrf.mxu0 }
 0x821   :  { %v5185_v26 = vadd.f32 %v5184_v25, %v5098_v40  ;;  %5816 = vmatmul.f32.vlgmr.msrb.gmra.mxu2 %v9636_v33  ;;  %5902 = vmatmul.f32.gmra.mxu3 %v9652_v3 }
 0x822   :  { %v5709_v14 = vpop.f32.mrf.mxu1 }
 0x823   :  { %v9804_v32 = vadd.f32 %v5267_v45, %v5185_v26 }
 0x824   :  { %v5374_v11 = vpop.f32.mrf.mxu2  ;;  %v5524_v29 = vpop.f32.mrf.mxu3 }
 0x825   :  { %v5521_v36 = vadd.f32 %v5520_v31, %v5374_v11 }
 0x827   :  { %v5605_v41 = vadd.f32 %v5604_v37, %v5521_v36 }
 0x828   :  { %v5614_v25 = vpop.f32.mrf.mxu0 }
 0x829   :  { %5820 = vmatmul.f32.gmra.mxu2 %v9652_v3  ;;  %5906 = vmatmul.f32.gmra.mxu3 %v9661_v39  ;;  %v9808_v24 = vadd.f32 %v5703_v20, %v5605_v41 }
 0x82a   :  { %v5715_v60 = vpop.f32.mrf.mxu1 }
 0x82c   :  { %v5382_v62 = vpop.f32.mrf.mxu2  ;;  %v5528_v43 = vpop.f32.mrf.mxu3 }
 0x82d   :  { %v5525_v13 = vadd.f32 %v5524_v29, %v5382_v62 }
 0x82f   :  { %v5610_v33 = vadd.f32 %v5609_v6, %v5525_v13 }
 0x830   :  { %v5619_v47 = vpop.f32.mrf.mxu0 }
 0x831   :  { %5824 = vmatmul.f32.gmra.mxu2 %v9661_v39  ;;  %5910 = vmatmul.f32.gmra.mxu3 %v9668_v42  ;;  %v9812_v4 = vadd.f32 %v5709_v14, %v5610_v33 }
 0x832   :  { %v5721_v39 = vpop.f32.mrf.mxu1 }
 0x834   :  { %v5390_v52 = vpop.f32.mrf.mxu2  ;;  %v5532_v45 = vpop.f32.mrf.mxu3 }
 0x835   :  { %v5529_v12 = vadd.f32 %v5528_v43, %v5390_v52 }
 0x837   :  { %v5615_v3 = vadd.f32 %v5614_v25, %v5529_v12 }
 0x839   :  { %5828 = vmatmul.f32.gmra.mxu2 %v9668_v42  ;;  %5914 = vmatmul.f32.gmra.mxu3 %v9677_v59  ;;  %v9816_v1 = vadd.f32 %v5715_v60, %v5615_v3  ;;  %v5624_v42 = vpop.f32.mrf.mxu0 }
 0x83a   :  { %v5727_v11 = vpop.f32.mrf.mxu1 }
 0x83c   :  { %v5398_v0 = vpop.f32.mrf.mxu2  ;;  %v5536_v57 = vpop.f32.mrf.mxu3 }
 0x83d   :  { %v5533_v17 = vadd.f32 %v5532_v45, %v5398_v0 }
 0x83f   :  { %v5620_v31 = vadd.f32 %v5619_v47, %v5533_v17 }
 0x841   :  { %5832 = vmatmul.f32.gmra.mxu2 %v9677_v59  ;;  %5918 = vmatmul.f32.gmra.mxu3 %v9686_v38  ;;  %v9820_v37 = vadd.f32 %v5721_v39, %v5620_v31 }
 0x844   :  { %v5406_v56 = vpop.f32.mrf.mxu2  ;;  %v5540_v20 = vpop.f32.mrf.mxu3 }
 0x845   :  { %v5537_v40 = vadd.f32 %v5536_v57, %v5406_v56 }
 0x847   :  { %v5625_v26 = vadd.f32 %v5624_v42, %v5537_v40 }
 0x849   :  { %5836 = vmatmul.f32.gmra.mxu2 %v9686_v38  ;;  %5922 = vmatmul.f32.gmra.mxu3 %v9695_v16  ;;  %v9824_v29 = vadd.f32 %v5727_v11, %v5625_v26 }
 0x84c   :  { %v5414_v36 = vpop.f32.mrf.mxu2  ;;  %v5544_v6 = vpop.f32.mrf.mxu3 }
 0x84d   :  { %v9826_v41 = vadd.f32 %v5540_v20, %v5414_v36 }
 0x851   :  { %5840 = vmatmul.f32.gmra.mxu2 %v9695_v16  ;;  %5926 = vmatmul.f32.gmra.mxu3 %v9704_v35 }
 0x854   :  { %v5422_v59 = vpop.f32.mrf.mxu2  ;;  %v5548_v14 = vpop.f32.mrf.mxu3 }
 0x855   :  { %v9830_v62 = vadd.f32 %v5544_v6, %v5422_v59 }
 0x859   :  { %5844 = vmatmul.f32.gmra.mxu2 %v9704_v35  ;;  %5930 = vmatmul.f32.gmra.mxu3 %v9713_v46 }
 0x85c   :  { %v5430_v38 = vpop.f32.mrf.mxu2  ;;  %v9834_v43 = vpop.f32.mrf.mxu3 }
 0x85d   :  { %v9836_v13 = vadd.f32 %v5548_v14, %v5430_v38  ;;  %v5629_v38 = vpop.f32.mrf.mxu0 }
 0x861   :  { %5848 = vmatmul.f32.gmra.mxu2 %v9713_v46  ;;  %5934 = vmatmul.f32.gmra.mxu3 %v9722_v30 }
 0x864   :  { %v9840_v16 = vpop.f32.mrf.mxu2  ;;  %v5556_v33 = vpop.f32.mrf.mxu3 }
 0x869   :  { %5852 = vmatmul.f32.gmra.mxu2 %v9722_v30  ;;  %5938 = vmatmul.f32.gmra.mxu3 %v9735_v21 }
 0x86c   :  { %v5446_v25 = vpop.f32.mrf.mxu2  ;;  %v5560_v35 = vpop.f32.mrf.mxu3 }
 0x86d   :  { %v9844_v60 = vadd.f32 %v5556_v33, %v5446_v25 }
 0x871   :  { %5856 = vmatmul.f32.gmra.mxu2 %v9735_v21  ;;  %5942 = vmatmul.f32.gmra.mxu3 %v9750_v61 }
 0x874   :  { %v5454_v52 = vpop.f32.mrf.mxu2  ;;  %v5564_v45 = vpop.f32.mrf.mxu3 }
 0x875   :  { %v9848_v46 = vadd.f32 %v5560_v35, %v5454_v52  ;;  %v5733_v52 = vpop.f32.mrf.mxu1 }
 0x879   :  { %5860 = vmatmul.f32.gmra.mxu2 %v9750_v61  ;;  %5946 = vmatmul.f32.gmra.mxu3 %v9759_v48 }
 0x87c   :  { %v5462_v12 = vpop.f32.mrf.mxu2  ;;  %v5568_v30 = vpop.f32.mrf.mxu3 }
 0x87d   :  { %v9852_v3 = vadd.f32 %v5564_v45, %v5462_v12 }
 0x881   :  { %5864 = vmatmul.f32.gmra.mxu2 %v9759_v48  ;;  %5950 = vmatmul.f32.gmra.mxu3 %v9766_v23 }
 0x884   :  { %v5470_v47 = vpop.f32.mrf.mxu2  ;;  %v5572_v21 = vpop.f32.mrf.mxu3 }
 0x885   :  { %v9856_v0 = vadd.f32 %v5568_v30, %v5470_v47  ;;  %v5634_v30 = vpop.f32.mrf.mxu0 }
 0x889   :  { %5868 = vmatmul.f32.gmra.mxu2 %v9766_v23  ;;  %5954 = vmatmul.f32.gmra.mxu3 %v9775_v27 }
 0x88c   :  { %v5478_v57 = vpop.f32.mrf.mxu2  ;;  %v5576_v61 = vpop.f32.mrf.mxu3 }
 0x88d   :  { %v9860_v17 = vadd.f32 %v5572_v21, %v5478_v57 }
 0x891   :  { %5872 = vmatmul.f32.gmra.mxu2 %v9775_v27  ;;  %5958 = vmatmul.f32.gmra.mxu3 %v9784_v54 }
 0x894   :  { %v5486_v39 = vpop.f32.mrf.mxu2  ;;  %v5580_v48 = vpop.f32.mrf.mxu3 }
 0x895   :  { %v9864_v31 = vadd.f32 %v5576_v61, %v5486_v39  ;;  %v10440_v39 = vld [vmem:[#allocation36_spill] sm:$0xff] }
 0x899   :  { %5876 = vmatmul.f32.gmra.mxu2 %v9784_v54 }
 0x89c   :  { %v5494_v56 = vpop.f32.mrf.mxu2  ;;  %v5899_v20 = vpop.f32.mrf.mxu3 }
 0x89d   :  { %v9867_v40 = vadd.f32 %v5580_v48, %v5494_v56 }
 0x8a4   :  { %v5817_v23 = vpop.f32.mrf.mxu2  ;;  %v5903_v42 = vpop.f32.mrf.mxu3 }
 0x8a5   :  { %v5818_v26 = vadd.f32 %v5817_v23, %v9808_v24  ;;  %v5639_v23 = vpop.f32.mrf.mxu0 }
 0x8a7   :  { %v5900_v11 = vadd.f32 %v5899_v20, %v5818_v26 }
 0x8a9   :  { %v5962_v36 = vmul.f32 %v5900_v11, %v9448_v50  ;;  %v10441_v11 = vld [vmem:[#allocation66_spill] sm:$0xff] }
 0x8ac   :  { %v5821_v27 = vpop.f32.mrf.mxu2  ;;  %v5907_v6 = vpop.f32.mrf.mxu3 }
 0x8ad   :  { %v5822_v59 = vadd.f32 %v5821_v27, %v9812_v4  ;;  %v5739_v4 = vpop.f32.mrf.mxu1 }
 0x8af   :  { %v5904_v14 = vadd.f32 %v5903_v42, %v5822_v59 }
 0x8b1   :  { %v5963_v33 = vmul.f32 %v5904_v14, %v9460_v34 }
 0x8b3   :  { %v5978_v54 = vadd.f32 %v5963_v33, %v5962_v36  ;;  %v5635_v33 = vadd.f32 %v5634_v30, %v9830_v62 }
 0x8b4   :  { %v5825_v25 = vpop.f32.mrf.mxu2  ;;  %v5911_v35 = vpop.f32.mrf.mxu3 }
 0x8b5   :  { %v5826_v45 = vadd.f32 %v5825_v25, %v9816_v1  ;;  %v5630_v1 = vadd.f32 %v5629_v38, %v9826_v41 }
 0x8b7   :  { %v5908_v12 = vadd.f32 %v5907_v6, %v5826_v45  ;;  %v5734_v6 = vadd.f32 %v5733_v52, %v5630_v1  ;;  %v10443_v52 = vld [vmem:[#allocation62_spill] sm:$0xff] }
 0x8b8   :  { %v10444_v1 = vld [vmem:[#allocation70_spill] sm:$0xff] }
 0x8b9   :  { %v5964_v24 = vmul.f32 %v5908_v12, %v9472_v58  ;;  %v5745_v58 = vpop.f32.mrf.mxu1 }
 0x8bb   :  { %v5979_v47 = vadd.f32 %v5978_v54, %v5964_v24  ;;  %v5644_v54 = vpop.f32.mrf.mxu0 }
 0x8bc   :  { %v5829_v50 = vpop.f32.mrf.mxu2  ;;  %v5915_v21 = vpop.f32.mrf.mxu3 }
 0x8bd   :  { %v5830_v57 = vadd.f32 %v5829_v50, %v9820_v37  ;;  %v5640_v50 = vadd.f32 %v5639_v23, %v9836_v13 }
 0x8bf   :  { %v5912_v61 = vadd.f32 %v5911_v35, %v5830_v57  ;;  %v10442_v35 = vld [vmem:[#allocation61_spill] sm:$0xff]  ;;  %v5746_v30 = vadd.f32 %v5745_v58, %v5640_v50 }
 0x8c1   :  { %v5965_v48 = vmul.f32 %v5912_v61, %v10440_v39  ;;  %v5751_v12 = vpop.f32.mrf.mxu1  ;;  %v5553_v39 = vadd.f32 %v9834_v43, %v9840_v16  ;;  %v10445_v16 = vld [vmem:[#allocation71_spill] sm:$0xff] }
 0x8c3   :  { %v5980_v34 = vadd.f32 %v5979_v47, %v5965_v48  ;;  %v5649_v57 = vpop.f32.mrf.mxu0 }
 0x8c4   :  { %v5833_v56 = vpop.f32.mrf.mxu2  ;;  %v5919_v20 = vpop.f32.mrf.mxu3 }
 0x8c5   :  { %v5834_v42 = vadd.f32 %v5833_v56, %v9824_v29  ;;  %v5740_v29 = vadd.f32 %v5739_v4, %v5635_v33 }
 0x8c7   :  { %v5916_v26 = vadd.f32 %v5915_v21, %v5834_v42  ;;  %v5645_v42 = vadd.f32 %v5644_v54, %v5553_v39 }
 0x8c9   :  { %v5966_v36 = vmul.f32 %v5916_v26, %v10441_v11  ;;  %v5752_v13 = vadd.f32 %v5751_v12, %v5645_v42 }
 0x8cb   :  { %v5981_v27 = vadd.f32 %v5980_v34, %v5966_v36  ;;  %v5654_v11 = vpop.f32.mrf.mxu0 }
 0x8cc   :  { %v5837_v59 = vpop.f32.mrf.mxu2  ;;  %v5923_v37 = vpop.f32.mrf.mxu3 }
 0x8cd   :  { %v5838_v14 = vadd.f32 %v5837_v59, %v5734_v6  ;;  %v5650_v59 = vadd.f32 %v5649_v57, %v9844_v60 }
 0x8cf   :  { %v5920_v25 = vadd.f32 %v5919_v20, %v5838_v14  ;;  %v5757_v20 = vpop.f32.mrf.mxu1 }
 0x8d0   :  { %v5758_v33 = vadd.f32 %v5757_v20, %v5650_v59 }
 0x8d1   :  { %v5967_v45 = vmul.f32 %v5920_v25, %v10442_v35 }
 0x8d3   :  { %v5982_v24 = vadd.f32 %v5981_v27, %v5967_v45  ;;  %v5659_v45 = vpop.f32.mrf.mxu0 }
 0x8d4   :  { %v5841_v47 = vpop.f32.mrf.mxu2  ;;  %v5927_v41 = vpop.f32.mrf.mxu3 }
 0x8d5   :  { %v5842_v38 = vadd.f32 %v5841_v47, %v5740_v29  ;;  %v10446_v47 = vld [vmem:[#allocation34_spill] sm:$0xff] }
 0x8d7   :  { %v5924_v21 = vadd.f32 %v5923_v37, %v5842_v38  ;;  %v5763_v43 = vpop.f32.mrf.mxu1 }
 0x8d9   :  { %v5968_v61 = vmul.f32 %v5924_v21, %v10443_v52  ;;  %v5660_v52 = vadd.f32 %v5659_v45, %v9852_v3 }
 0x8db   :  { %v5983_v62 = vadd.f32 %v5982_v24, %v5968_v61  ;;  %v5655_v24 = vadd.f32 %v5654_v11, %v9848_v46  ;;  %v5664_v39 = vpop.f32.mrf.mxu0 }
 0x8dc   :  { %v5845_v48 = vpop.f32.mrf.mxu2  ;;  %v5931_v34 = vpop.f32.mrf.mxu3  ;;  %v5665_v42 = vadd.f32 %v5664_v39, %v9856_v0 }
 0x8dd   :  { %v5846_v56 = vadd.f32 %v5845_v48, %v5746_v30  ;;  %v5764_v50 = vadd.f32 %v5763_v43, %v5655_v24  ;;  %v10449_v43 = vld [vmem:[#allocation67_spill] sm:$0xff] }
 0x8df   :  { %v5928_v4 = vadd.f32 %v5927_v41, %v5846_v56  ;;  %v5769_v41 = vpop.f32.mrf.mxu1 }
 0x8e1   :  { %v5969_v26 = vmul.f32 %v5928_v4, %v10444_v1 }
 0x8e3   :  { %v5984_v36 = vadd.f32 %v5983_v62, %v5969_v26  ;;  %v10447_v62 = vld [vmem:[#allocation57_spill] sm:$0xff]  ;;  %v10448_v26 = vld [vmem:[#allocation58_spill] sm:$0xff] }
 0x8e4   :  { %v5849_v23 = vpop.f32.mrf.mxu2  ;;  %v5935_v27 = vpop.f32.mrf.mxu3 }
 0x8e5   :  { %v5850_v6 = vadd.f32 %v5849_v23, %v5752_v13 }
 0x8e7   :  { %v5932_v37 = vadd.f32 %v5931_v34, %v5850_v6  ;;  %v5770_v34 = vadd.f32 %v5769_v41, %v5660_v52  ;;  %v5775_v56 = vpop.f32.mrf.mxu1  ;;  %v10451_v52 = vld [vmem:[#allocation33_spill] sm:$0xff] }
 0x8e8   :  { %v5776_v23 = vadd.f32 %v5775_v56, %v5665_v42 }
 0x8e9   :  { %v5970_v58 = vmul.f32 %v5932_v37, %v10445_v16 }
 0x8eb   :  { %v5985_v14 = vadd.f32 %v5984_v36, %v5970_v58  ;;  %v5669_v36 = vpop.f32.mrf.mxu0 }
 0x8ec   :  { %v5853_v25 = vpop.f32.mrf.mxu2  ;;  %v5939_v35 = vpop.f32.mrf.mxu3  ;;  %v5670_v59 = vadd.f32 %v5669_v36, %v9860_v17 }
 0x8ed   :  { %v5854_v54 = vadd.f32 %v5853_v25, %v5758_v33 }
 0x8ef   :  { %v5936_v29 = vadd.f32 %v5935_v27, %v5854_v54  ;;  %v5781_v6 = vpop.f32.mrf.mxu1 }
 0x8f0   :  { %v5782_v33 = vadd.f32 %v5781_v6, %v5670_v59 }
 0x8f1   :  { %v5971_v12 = vmul.f32 %v5936_v29, %v10446_v47  ;;  %v10450_v29 = vld [vmem:[#allocation68_spill] sm:$0xff] }
 0x8f3   :  { %v5986_v38 = vadd.f32 %v5985_v14, %v5971_v12  ;;  %v5674_v25 = vpop.f32.mrf.mxu0 }
 0x8f4   :  { %v5857_v21 = vpop.f32.mrf.mxu2  ;;  %v5943_v57 = vpop.f32.mrf.mxu3  ;;  %v5675_v54 = vadd.f32 %v5674_v25, %v9864_v31 }
 0x8f5   :  { %v5858_v60 = vadd.f32 %v5857_v21, %v5764_v50 }
 0x8f7   :  { %v5940_v61 = vadd.f32 %v5939_v35, %v5858_v60  ;;  %v5787_v24 = vpop.f32.mrf.mxu1 }
 0x8f8   :  { %v5788_v41 = vadd.f32 %v5787_v24, %v5675_v54 }
 0x8f9   :  { %v5972_v30 = vmul.f32 %v5940_v61, %v10447_v62 }
 0x8fb   :  { %v5987_v48 = vadd.f32 %v5986_v38, %v5972_v30  ;;  %v5679_v21 = vpop.f32.mrf.mxu0 }
 0x8fc   :  { %v5861_v20 = vpop.f32.mrf.mxu2  ;;  %v5947_v1 = vpop.f32.mrf.mxu3  ;;  %v5680_v60 = vadd.f32 %v5679_v21, %v9867_v40 }
 0x8fd   :  { %v5862_v46 = vadd.f32 %v5861_v20, %v5770_v34  ;;  %v10452_v20 = vld [vmem:[#allocation53_spill] sm:$0xff] }
 0x8ff   :  { %v5944_v4 = vadd.f32 %v5943_v57, %v5862_v46  ;;  %v5793_v39 = vpop.f32.mrf.mxu1 }
 0x900   :  { %v5794_v30 = vadd.f32 %v5793_v39, %v5680_v60 }
 0x901   :  { %v5973_v11 = vmul.f32 %v5944_v4, %v10448_v26 }
 0x903   :  { %v5988_v13 = vadd.f32 %v5987_v48, %v5973_v11  ;;  %v10453_v11 = vlaneseq }
 0x904   :  { %v5865_v27 = vpop.f32.mrf.mxu2  ;;  %v5951_v58 = vpop.f32.mrf.mxu3 }
 0x905   :  { %v5866_v3 = vadd.f32 %v5865_v27, %v5776_v23  ;;  %v6000_v36 = vand.u32 127, %v10453_v11 }
 0x907   :  { %v5948_v37 = vadd.f32 %v5947_v1, %v5866_v3  ;;  %vm6001_vm9 = vcmp.lt.s32.totalorder %v6000_v36, 20 }
 0x909   :  { %v5974_v16 = vmul.f32 %v5948_v37, %v10449_v43 }
 0x90b   :  { %v5989_v14 = vadd.f32 %v5988_v13, %v5974_v16 }
 0x90c   :  { %v5869_v0 = vpop.f32.mrf.mxu2  ;;  %v5955_v38 = vpop.f32.mrf.mxu3 }
 0x90d   :  { %v5870_v35 = vadd.f32 %v5869_v0, %v5782_v33 }
 0x90f   :  { %v5952_v45 = vadd.f32 %v5951_v58, %v5870_v35 }
 0x911   :  { %v5975_v47 = vmul.f32 %v5952_v45, %v10450_v29 }
 0x913   :  { %v5990_v12 = vadd.f32 %v5989_v14, %v5975_v47 }
 0x914   :  { %v5873_v50 = vpop.f32.mrf.mxu2  ;;  %v5959_v34 = vpop.f32.mrf.mxu3 }
 0x915   :  { %v5874_v17 = vadd.f32 %v5873_v50, %v5788_v41 }
 0x917   :  { %v5956_v57 = vadd.f32 %v5955_v38, %v5874_v17 }
 0x919   :  { %v5976_v61 = vmul.f32 %v5956_v57, %v10451_v52 }
 0x91b   :  { %v5991_v62 = vadd.f32 %v5990_v12, %v5976_v61  ;;  %v5161_v61 = vadd.f32 %v9737_v63, %v9757_v55  ;;  %v5157_v55 = vadd.f32 %v9724_v49, %v9748_v9 }
 0x91c   :  { %v5877_v48 = vpop.f32.mrf.mxu2 }
 0x91d   :  { %v5878_v31 = vadd.f32 %v5877_v48, %v5794_v30  ;;  %v5244_v63 = vadd.f32 %v9740_v5, %v5161_v61  ;;  %v5240_v49 = vadd.f32 %v9727_v18, %v5157_v55 }
 0x91f   :  { %v5960_v56 = vadd.f32 %v5959_v34, %v5878_v31 }
 0x921   :  { %v5977_v46 = vmul.f32 %v5960_v56, %v10452_v20 }
 0x923   :  { %v5992_v42 = vadd.f32 %v5991_v62, %v5977_v46 }
 0x925   :  { %v5993_v4 = vrot.slane %v5992_v42, 4 }
 0x927   :  { %v5994_v1 = vadd.f32 %v5993_v4, %v5992_v42 }
 0x929   :  { %v5995_v26 = vrot.slane %v5994_v1, 2 }
 0x92b   :  { %v5996_v13 = vadd.f32 %v5995_v26, %v5994_v1 }
 0x92d   :  { %v5997_v40 = vrot.slane %v5996_v13, 1 }
 0x92f   :  { %v5998_v23 = vadd.f32 %v5997_v40, %v5996_v13 }
 0x931   :  { %v6002_v27 = vsel %vm6001_vm9, %v5998_v23, -1e+30 }
 0x932   :  { %6003 = vmax.xlane.f32.xlu2 %v6002_v27 }
 0x9a5   :  { %v6004_v3 = vpop.xlane.xlu2 %6003 }
 0x9a6   :  { %v6005_v6 = vsub.f32 %v6002_v27, %v6004_v3 }
 0x9a8   :  { %v6006_v59 = vmul.f32 1.442695, %v6005_v6 }
 0x9aa   :  { %6469 = vpow2.f32 %v6006_v59 }
 0x9b0   :  { %v6470_v37 = vpop.eup %6469 }
 0x9b1   :  { %6008 = vadd.xlane.f32.xlu1 %v6470_v37 }
 0xa24   :  { %v6009_v43 = vpop.xlane.xlu1 %6008 }
 0xa25   :  { %6471 = vrcp.f32 %v6009_v43  ;;  %v6021_v33 = vand.u32 2147483648, %v6009_v43  ;;  %v6019_v0 = vand.u32 2147483647, %v6009_v43  ;;  %vm6015_vm11 = vweird.f32 %v6009_v43 }
 0xa27   :  { %v6022_v54 = vor.u32 1.1754944e-38, %v6021_v33  ;;  %vm6020_vm13 = vcmp.eq.f32.partialorder %v6019_v0, 8.507059e+37 }
 0xa2b   :  { %v6472_v16 = vpop.eup %6471 }
 0xa2c   :  { %v6011_v58 = vmul.f32 %v6472_v16, %v6009_v43  ;;  %vm6016_vm10 = vweird.f32 %v6472_v16 }
 0xa2d   :  { %vm6017_vm12 = vmor %vm6015_vm11, %vm6016_vm10 }
 0xa2e   :  { %v6012_v14 = vsub.f32 1.0, %v6011_v58 }
 0xa30   :  { %v6013_v25 = vmul.f32 %v6472_v16, %v6012_v14 }
 0xa32   :  { %v6014_v35 = vadd.f32 %v6472_v16, %v6013_v25 }
 0xa34   :  { %v6018_v45 = vsel %vm6017_vm12, %v6472_v16, %v6014_v35 }
 0xa35   :  { %v6023_v24 = vsel %vm6020_vm13, %v6022_v54, %v6018_v45 }
 0xa36   :  { %v9903_v29 = vmul.f32 %v6470_v37, %v6023_v24 }
 0xa38   :  { %v6040_v47 = vmul.f32 %v9903_v29, %v9804_v32  ;;  %v6039_v12 = vmul.f32 %v9903_v29, %v9800_v53  ;;  %v6038_v41 = vmul.f32 %v9903_v29, %v9795_v8  ;;  %v6037_v21 = vmul.f32 %v9903_v29, %v9789_v2 }
 0xa39   :  { %v6036_v8 = vmul.f32 %v9903_v29, %v9780_v15  ;;  %v6035_v62 = vmul.f32 %v9903_v29, %v9771_v7  ;;  %v6034_v56 = vmul.f32 %v9903_v29, %v5244_v63  ;;  %v6033_v36 = vmul.f32 %v9903_v29, %v5240_v49 }
 0xa3a   :  { %v9911_v38 = vand.u32 4294901760, %v6040_v47  ;;  %v9913_v50 = vand.u32 4294901760, %v6039_v12  ;;  %v9915_v17 = vand.u32 4294901760, %v6038_v41  ;;  %v9931_v52 = vand.u32 4294901760, %v6037_v21 }
 0xa3b   :  { %v9941_v15 = vand.u32 4294901760, %v6036_v8  ;;  %v9955_v7 = vand.u32 4294901760, %v6035_v62  ;;  %v9966_v9 = vand.u32 4294901760, %v6034_v56  ;;  %v9981_v27 = vand.u32 4294901760, %v6033_v36 }
 0xa3c   :  { %6042 = vmatpush.xpose.msra.mxu0 %v9911_v38  ;;  %v9921_v60 = vsub.f32 %v6040_v47, %v9911_v38  ;;  %6346 = vmatpush.xpose.msra.mxu3 %v9911_v38  ;;  %v9925_v53 = vsub.f32 %v6039_v12, %v9913_v50  ;;  %v9934_v2 = vsub.f32 %v6038_v41, %v9915_v17 }
 0xa3d   :  { %v9948_v34 = vsub.f32 %v6037_v21, %v9931_v52  ;;  %v9961_v5 = vsub.f32 %v6036_v8, %v9941_v15  ;;  %v9969_v4 = vsub.f32 %v6035_v62, %v9955_v7  ;;  %v9978_v13 = vsub.f32 %v6034_v56, %v9966_v9 }
 0xa3e   :  { %v6084_v32 = vand.u32 4294901760, %v9921_v60  ;;  %v6090_v57 = vand.u32 4294901760, %v9925_v53  ;;  %v6096_v31 = vand.u32 4294901760, %v9934_v2  ;;  %v6032_v3 = vmul.f32 %v9903_v29, %v9744_v44 }
 0xa3f   :  { %v6102_v42 = vand.u32 4294901760, %v9948_v34  ;;  %v6108_v11 = vand.u32 4294901760, %v9961_v5  ;;  %v6114_v18 = vand.u32 4294901760, %v9969_v4  ;;  %v6120_v59 = vand.u32 4294901760, %v9978_v13 }
 0xa40   :  { %6044 = vmatpush.xpose.msra.mxu0 %v9913_v50  ;;  %6279 = vmatpush.xpose.msra.mxu2 %v6084_v32  ;;  %v6085_v39 = vsub.f32 %v9921_v60, %v6084_v32  ;;  %v6091_v48 = vsub.f32 %v9925_v53, %v6090_v57  ;;  %v6097_v46 = vsub.f32 %v9934_v2, %v6096_v31  ;;  %v9989_v43 = vand.u32 4294901760, %v6032_v3 }
 0xa41   :  { %6348 = vmatpush.xpose.msra.mxu3 %v9913_v50  ;;  %v6103_v26 = vsub.f32 %v9948_v34, %v6102_v42  ;;  %v6109_v23 = vsub.f32 %v9961_v5, %v6108_v11  ;;  %v6115_v6 = vsub.f32 %v9969_v4, %v6114_v18  ;;  %v9992_v16 = vsub.f32 %v6033_v36, %v9981_v27 }
 0xa42   :  { %v6086_v30 = vand.u32 4294901760, %v6085_v39  ;;  %v6092_v20 = vand.u32 4294901760, %v6091_v48  ;;  %v6098_v1 = vand.u32 4294901760, %v6097_v46  ;;  %v6031_v58 = vmul.f32 %v9903_v29, %v9731_v28 }
 0xa43   :  { %v6104_v40 = vand.u32 4294901760, %v6103_v26  ;;  %v6110_v37 = vand.u32 4294901760, %v6109_v23  ;;  %v6116_v44 = vand.u32 4294901760, %v6115_v6  ;;  %v6121_v14 = vsub.f32 %v9978_v13, %v6120_v59 }
 0xa44   :  { %6046 = vmatpush.xpose.msra.mxu0 %v9915_v17  ;;  %6087 = vmatpush.xpose.msra.mxu1 %v6086_v30  ;;  %v6126_v33 = vand.u32 4294901760, %v9992_v16  ;;  %v10000_v25 = vand.u32 4294901760, %v6031_v58  ;;  %v10003_v0 = vsub.f32 %v6032_v3, %v9989_v43  ;;  %v6030_v35 = vmul.f32 %v9903_v29, %v9718_v10 }
 0xa45   :  { %6283 = vmatpush.xpose.msra.mxu2 %v6090_v57  ;;  %6350 = vmatpush.xpose.msra.mxu3 %v9915_v17  ;;  %v6122_v28 = vand.u32 4294901760, %v6121_v14  ;;  %v6029_v54 = vmul.f32 %v9903_v29, %v9709_v51  ;;  %v6028_v51 = vmul.f32 %v9903_v29, %v9700_v19  ;;  %v6027_v61 = vmul.f32 %v9903_v29, %v9691_v22 }
 0xa46   :  { %v6127_v45 = vsub.f32 %v9992_v16, %v6126_v33  ;;  %v6132_v24 = vand.u32 4294901760, %v10003_v0  ;;  %v10013_v47 = vand.u32 4294901760, %v6030_v35  ;;  %v10016_v12 = vsub.f32 %v6031_v58, %v10000_v25 }
 0xa47   :  { %v10020_v10 = vand.u32 4294901760, %v6029_v54  ;;  %v10031_v57 = vand.u32 4294901760, %v6028_v51  ;;  %v10042_v48 = vand.u32 4294901760, %v6027_v61 }
 0xa48   :  { %6048 = vmatpush.xpose.msra.mxu0 %v9931_v52  ;;  %6093 = vmatpush.xpose.msra.mxu1 %v6092_v20  ;;  %v6128_v41 = vand.u32 4294901760, %v6127_v45  ;;  %v6133_v21 = vsub.f32 %v10003_v0, %v6132_v24  ;;  %v6138_v8 = vand.u32 4294901760, %v10016_v12  ;;  %v10027_v32 = vsub.f32 %v6030_v35, %v10013_v47 }
 0xa49   :  { %6287 = vmatpush.xpose.msra.mxu2 %v6096_v31  ;;  %6352 = vmatpush.xpose.msra.mxu3 %v9931_v52  ;;  %v10038_v30 = vsub.f32 %v6029_v54, %v10020_v10  ;;  %v10454_v31 = vld [vmem:[#allocation63_spill] sm:$0xff]  ;;  %v10049_v20 = vsub.f32 %v6028_v51, %v10031_v57  ;;  %v10457_v45 = vmov 1.0  }
 0xa4a   :  { %v6134_v19 = vand.u32 4294901760, %v6133_v21  ;;  %v6139_v39 = vsub.f32 %v10016_v12, %v6138_v8  ;;  %v6144_v62 = vand.u32 4294901760, %v10027_v32  ;;  %v6026_v63 = vmul.f32 %v9903_v29, %v10454_v31  ;;  %v10456_v54 = vld [vmem:[#allocation35_spill] sm:$0xff] }
 0xa4b   :  { %v6150_v56 = vand.u32 4294901760, %v10038_v30  ;;  %v6156_v26 = vand.u32 4294901760, %v10049_v20 }
 0xa4c   :  { %6050 = vmatpush.xpose.msra.mxu0 %v9941_v15  ;;  %6099 = vmatpush.xpose.msra.mxu1 %v6098_v1  ;;  %v6140_v22 = vand.u32 4294901760, %v6139_v39  ;;  %v6145_v55 = vsub.f32 %v10027_v32, %v6144_v62  ;;  %v10053_v46 = vand.u32 4294901760, %v6026_v63 }
 0xa4d   :  { %6291 = vmatpush.xpose.msra.mxu2 %v6102_v42  ;;  %6354 = vmatpush.xpose.msra.mxu3 %v9941_v15  ;;  %v10056_v42 = vsub.f32 %v6027_v61, %v10042_v48  ;;  %v6151_v1 = vsub.f32 %v10038_v30, %v6150_v56  ;;  %v6157_v23 = vsub.f32 %v10049_v20, %v6156_v26 }
 0xa4e   :  { %v6146_v49 = vand.u32 4294901760, %v6145_v55  ;;  %v6167_v6 = vsub.f32 %v6026_v63, %v10053_v46 }
 0xa50   :  { %6052 = vmatpush.xpose.msra.mxu0 %v9955_v7  ;;  %6105 = vmatpush.xpose.msra.mxu1 %v6104_v40  ;;  %v6152_v40 = vand.u32 4294901760, %v6151_v1 }
 0xa51   :  { %6295 = vmatpush.xpose.msra.mxu2 %v6108_v11  ;;  %6356 = vmatpush.xpose.msra.mxu3 %v9955_v7  ;;  %v10455_v11 = vld [vmem:[#allocation54_spill] sm:$0xff] }
 0xa52   :  { %v6025_v36 = vmul.f32 %v9903_v29, %v10455_v11  ;;  %v6158_v29 = vand.u32 4294901760, %v6157_v23 }
 0xa54   :  { %6054 = vmatpush.xpose.msra.mxu0 %v9966_v9  ;;  %6111 = vmatpush.xpose.msra.mxu1 %v6110_v37  ;;  %v6071_v3 = vand.u32 4294901760, %v6025_v36  ;;  %v6168_v37 = vand.u32 4294901760, %v6167_v6 }
 0xa55   :  { %6299 = vmatpush.xpose.msra.mxu2 %v6114_v18  ;;  %6358 = vmatpush.xpose.msra.mxu3 %v9966_v9  ;;  %v6162_v18 = vand.u32 4294901760, %v10056_v42 }
 0xa56   :  { %v6173_v58 = vsub.f32 %v6025_v36, %v6071_v3  ;;  %v6169_v14 = vsub.f32 %v6167_v6, %v6168_v37 }
 0xa58   :  { %6056 = vmatpush.xpose.msra.mxu0 %v9981_v27  ;;  %6117 = vmatpush.xpose.msra.mxu1 %v6116_v44  ;;  %v6170_v35 = vand.u32 4294901760, %v6169_v14 }
 0xa59   :  { %6303 = vmatpush.xpose.msra.mxu2 %v6120_v59  ;;  %6360 = vmatpush.xpose.msra.mxu3 %v9981_v27  ;;  %v6163_v59 = vsub.f32 %v10056_v42, %v6162_v18 }
 0xa5b   :  { %v6164_v44 = vand.u32 4294901760, %v6163_v59 }
 0xa5c   :  { %6058 = vmatpush.xpose.msra.mxu0 %v9989_v43  ;;  %6123 = vmatpush.xpose.msra.mxu1 %v6122_v28 }
 0xa5d   :  { %6307 = vmatpush.xpose.msra.mxu2 %v6126_v33  ;;  %6362 = vmatpush.xpose.msra.mxu3 %v9989_v43  ;;  %v6174_v33 = vand.u32 4294901760, %v6173_v58 }
 0xa5f   :  { %v6175_v28 = vsub.f32 %v6173_v58, %v6174_v33 }
 0xa60   :  { %6060 = vmatpush.xpose.msra.mxu0 %v10000_v25  ;;  %6129 = vmatpush.xpose.msra.mxu1 %v6128_v41 }
 0xa61   :  { %6311 = vmatpush.xpose.msra.mxu2 %v6132_v24  ;;  %6364 = vmatpush.xpose.msra.mxu3 %v10000_v25  ;;  %v6176_v51 = vand.u32 4294901760, %v6175_v28 }
 0xa64   :  { %6062 = vmatpush.xpose.msra.mxu0 %v10013_v47  ;;  %6135 = vmatpush.xpose.msra.mxu1 %v6134_v19 }
 0xa65   :  { %6315 = vmatpush.xpose.msra.mxu2 %v6138_v8  ;;  %6366 = vmatpush.xpose.msra.mxu3 %v10013_v47 }
 0xa68   :  { %6064 = vmatpush.xpose.msra.mxu0 %v10020_v10  ;;  %6141 = vmatpush.xpose.msra.mxu1 %v6140_v22 }
 0xa69   :  { %6319 = vmatpush.xpose.msra.mxu2 %v6144_v62  ;;  %6368 = vmatpush.xpose.msra.mxu3 %v10020_v10 }
 0xa6c   :  { %6066 = vmatpush.xpose.msra.mxu0 %v10031_v57  ;;  %6147 = vmatpush.xpose.msra.mxu1 %v6146_v49 }
 0xa6d   :  { %6323 = vmatpush.xpose.msra.mxu2 %v6150_v56  ;;  %6370 = vmatpush.xpose.msra.mxu3 %v10031_v57 }
 0xa70   :  { %6068 = vmatpush.xpose.msra.mxu0 %v10042_v48  ;;  %6153 = vmatpush.xpose.msra.mxu1 %v6152_v40 }
 0xa71   :  { %6327 = vmatpush.xpose.msra.mxu2 %v6156_v26  ;;  %6372 = vmatpush.xpose.msra.mxu3 %v10042_v48 }
 0xa74   :  { %6070 = vmatpush.xpose.msra.mxu0 %v10053_v46  ;;  %6159 = vmatpush.xpose.msra.mxu1 %v6158_v29 }
 0xa75   :  { %6331 = vmatpush.xpose.msra.mxu2 %v6162_v18  ;;  %6374 = vmatpush.xpose.msra.mxu3 %v10053_v46 }
 0xa78   :  { %6072 = vmatpush.xpose.msra.mxu0 %v6071_v3  ;;  %6165 = vmatpush.xpose.msra.mxu1 %v6164_v44 }
 0xa79   :  { %6335 = vmatpush.xpose.msra.mxu2 %v6168_v37  ;;  %6376 = vmatpush.xpose.msra.mxu3 %v6071_v3 }
 0xa7b   :  { %6078 = vmatmul.f32.vlgmr.msra.gmra.mxu0 %v10456_v54 }
 0xa7c   :  { %6185 = vmatpush.xpose.msrb.mxu0 %v9921_v60  ;;  %6171 = vmatpush.xpose.msra.mxu1 %v6170_v35 }
 0xa7d   :  { %6445 = vmatmul.msk.f32.vlgmr.msra.gmra.mxu3 %vm9497_vm7, %v10457_v45  ;;  %6339 = vmatpush.xpose.msra.mxu2 %v6174_v33 }
 0xa80   :  { %6188 = vmatpush.xpose.msrb.mxu0 %v9925_v53  ;;  %6177 = vmatpush.xpose.msra.mxu1 %v6176_v51 }
 0xa81   :  { %6444 = vmatmul.msk.f32.vlgmr.msra.gmra.mxu2 %vm9497_vm7, %v10457_v45 }
 0xa83   :  { %6443 = vmatmul.msk.f32.vlgmr.msra.gmra.mxu1 %vm9497_vm7, %v10457_v45 }
 0xa84   :  { %6238 = vmatpush.xpose.msrb.mxu1 %v9911_v38  ;;  %6191 = vmatpush.xpose.msrb.mxu0 %v9934_v2  ;;  %v10459_v38 = vld [vmem:[#allocation73_spill] sm:$0xff] }
 0xa88   :  { %6240 = vmatpush.xpose.msrb.mxu1 %v9913_v50  ;;  %6194 = vmatpush.xpose.msrb.mxu0 %v9948_v34  ;;  %v10460_v50 = vld [vmem:[#allocation74_spill] sm:$0xff] }
 0xa8c   :  { %6242 = vmatpush.xpose.msrb.mxu1 %v9915_v17  ;;  %6197 = vmatpush.xpose.msrb.mxu0 %v9961_v5 }
 0xa90   :  { %6244 = vmatpush.xpose.msrb.mxu1 %v9931_v52  ;;  %6200 = vmatpush.xpose.msrb.mxu0 %v9969_v4 }
 0xa94   :  { %6246 = vmatpush.xpose.msrb.mxu1 %v9941_v15  ;;  %6203 = vmatpush.xpose.msrb.mxu0 %v9978_v13 }
 0xa98   :  { %6248 = vmatpush.xpose.msrb.mxu1 %v9955_v7  ;;  %6206 = vmatpush.xpose.msrb.mxu0 %v9992_v16 }
 0xa9c   :  { %6250 = vmatpush.xpose.msrb.mxu1 %v9966_v9  ;;  %6209 = vmatpush.xpose.msrb.mxu0 %v10003_v0 }
 0xaa0   :  { %6252 = vmatpush.xpose.msrb.mxu1 %v9981_v27  ;;  %6212 = vmatpush.xpose.msrb.mxu0 %v10016_v12 }
 0xaa4   :  { %6254 = vmatpush.xpose.msrb.mxu1 %v9989_v43  ;;  %6215 = vmatpush.xpose.msrb.mxu0 %v10027_v32 }
 0xaa8   :  { %6256 = vmatpush.xpose.msrb.mxu1 %v10000_v25  ;;  %6218 = vmatpush.xpose.msrb.mxu0 %v10038_v30 }
 0xaac   :  { %6258 = vmatpush.xpose.msrb.mxu1 %v10013_v47  ;;  %6221 = vmatpush.xpose.msrb.mxu0 %v10049_v20 }
 0xab0   :  { %6260 = vmatpush.xpose.msrb.mxu1 %v10020_v10  ;;  %6224 = vmatpush.xpose.msrb.mxu0 %v10056_v42 }
 0xab4   :  { %6262 = vmatpush.xpose.msrb.mxu1 %v10031_v57  ;;  %6227 = vmatpush.xpose.msrb.mxu0 %v6167_v6 }
 0xab8   :  { %6264 = vmatpush.xpose.msrb.mxu1 %v10042_v48  ;;  %6230 = vmatpush.xpose.msrb.mxu0 %v6173_v58 }
 0xabb   :  { %6233 = vmatmul.f32.vlgmr.msrb.gmra.mxu0 %v10459_v38 }
 0xabc   :  { %6266 = vmatpush.xpose.msrb.mxu1 %v10053_v46 }
 0xac0   :  { %6268 = vmatpush.xpose.msrb.mxu1 %v6071_v3 }
 0xac3   :  { %6272 = vmatmul.f32.vlgmr.msrb.gmra.mxu1 %v10460_v50 }
 0xaf8   :  { %v6079_v17 = vpop.f32.mrf.mxu0 }
 0xb00   :  { %v6180_v60 = vpop.f32.mrf.mxu1  ;;  %v6379_v5 = vpop.f32.mrf.mxu3 }
 0xb01   :  { %v6181_v53 = vadd.f32 %v6180_v60, %v6079_v17 }
 0xb04   :  { %v6342_v34 = vpop.f32.mrf.mxu2 }
 0xb38   :  { %v6234_v52 = vpop.f32.mrf.mxu0 }
 0xb39   :  { %v6235_v2 = vadd.f32 %v6234_v52, %v6181_v53 }
 0xb40   :  { %v6273_v15 = vpop.f32.mrf.mxu1 }
 0xb41   :  { %v6274_v7 = vadd.f32 %v6273_v15, %v6235_v2 }
 0xb43   :  { %v6343_v9 = vadd.f32 %v6342_v34, %v6274_v7 }
 0xb45   :  { %v6380_v4 = vadd.f32 %v6379_v5, %v6343_v9 }
 0xb47   :  { %6382 = vst [vmem:[#allocation13] sm:$0xff] %v6380_v4 }
 0xb48   :  { %6393 = dma.vmem_to_hbm [thread:$0]  %s6389_s1, 128, %s6391_s26, [#allocation4]  }
 0xb49   :  { %6649 = dma.done.wait [#allocation4], 128  }
 0xb4a   :  { %6650 = vsyncadd [#allocation4], 4294967168 }
 0xb4b   :  { %6398 = vsyncpa [#allocation3], 1 }
 0xb4c   :  { %6399 = vsyncpa [#allocation6], 1 }
 0xb4d   :  { %6400 = vsyncpa [#allocation9], 1 }
 0xb4e   :  { %6401 = vsyncpa [#allocation12], 1 }
 0xb4f   :  { %6402 = vsyncpa [#allocation4], 1 }

</bundles_post_ra>
